<compile_context>
chip_gen: v7x
topology: tpu7x:2x2x1
jax: 0.10.0
libtpu: 0.0.40
codegen_flags: <defaults>
</compile_context>

<pallas_src>
import math

import numpy as np
import jax
import jax.numpy as jnp
from jax.experimental import pallas as pl
from jax.experimental.pallas import tpu as pltpu

EPS = 1e-5
_LOG_EPS = math.log(EPS)                  # log(eps)
_LOG_1MEPS = math.log1p(-EPS)             # log(1 - eps)
_CLIP_Z = math.log((1.0 - EPS) / EPS)     # logit(1-eps): clip z <=> clip p


def _inverse(v):
    """JAX port of MultiExpertLoss.inverse: replace each value by the value of
    mirrored rank (smallest <-> largest), keeping positions."""
    value = jnp.sort(v)
    idx0 = jnp.argsort(v)
    idx1 = jnp.argsort(idx0)
    idx2 = v.shape[0] - 1 - idx1
    return value[idx2]


def _multi_expert_kernel(logits_ref, target_ref, params_ref, prior_me_ref,
                         cmask_ref, out_ref):
    t = target_ref[...].astype(jnp.float32)              # (TB, C)
    TB, C = t.shape

    w_bce = params_ref[0:1, :]                            # (1, C)  weight/(B*C)
    w_reg = params_ref[1:2, :]                            # (1, C)  symb/(P*B*n_c)
    shifts = params_ref[2:14, :]                          # (12, C) z' = z + shift
    prior_me = prior_me_ref[...]                          # (C, C)
    cmask = cmask_ref[...]                                # (C, C)  one parent/col

    x = logits_ref[...].astype(jnp.float32)               # (12, TB, C)

    # ---- sigmoid experts 0..5: BCE in logit space (one softplus each) ----
    z_sig = jnp.clip(x[0:6] + shifts[0:6][:, None, :], -_CLIP_Z, _CLIP_Z)
    e_sig = jnp.exp(z_sig)                                 # (6, TB, C)
    sp_sig = jnp.log(1.0 + e_sig)                          # softplus(z')
    # t*log(p) + (1-t)*log(1-p) == t*z' - softplus(z')  (z' clipped == p clipped)
    bce_sig = w_bce[None] * (t[None] * z_sig - sp_sig)     # (6, TB, C)

    # ---- local-softmax experts 6..11: one batched matmul, shared log(den) ----
    z_sm = x[6:12] + shifts[6:12][:, None, :]              # (6, TB, C)
    e_sm = jnp.exp(z_sm)
    dot_off = jnp.dot(e_sm.reshape(6 * TB, C), prior_me,
                      preferred_element_type=jnp.float32).reshape(6, TB, C)
    den = dot_off + e_sm + EPS                             # = e@prior_me + e + eps
    log_den = jnp.log(den)
    log_p = jnp.clip(z_sm - log_den, _LOG_EPS, _LOG_1MEPS)
    log_1mp = jnp.clip(jnp.log(dot_off + EPS) - log_den, _LOG_EPS, _LOG_1MEPS)
    bce_sm = w_bce[None] * (t[None] * log_p + (1.0 - t[None]) * log_1mp)

    # ---- symbiotic regularizer on experts 3..5 and 9..11 ----
    # parent broadcast via one MXU matmul per group (columns of cmask one-hot),
    # then a single masked softplus; weights already hold all mean scales.
    p_sig = jnp.clip(e_sig[3:6] / (1.0 + e_sig[3:6]), EPS, 1.0 - EPS)  # (3,TB,C)
    p_sm = jnp.clip(e_sm[3:6] / den[3:6], EPS, 1.0 - EPS)              # (3,TB,C)

    def reg_group(p3):
        p2 = p3.reshape(3 * TB, C)
        parent = jnp.dot(p2, cmask, preferred_element_type=jnp.float32)
        return jnp.sum(w_reg * jnp.log(1.0 + jnp.exp(p2 - parent)))

    partial = (-(jnp.sum(bce_sig.reshape(6 * TB, C))
                 + jnp.sum(bce_sm.reshape(6 * TB, C)))
               + reg_group(p_sig) + reg_group(p_sm))

    # Lane-dense per-tile partial (independent blocks -> "parallel" grid axis).
    out_ref[...] = jnp.full((1, 8, 128), partial, dtype=jnp.float32)


def _pick_tile_batch(B, cap=256):
    if B <= cap:
        return B
    for align in (32, 8, 1):
        for tb in range(cap, 0, -1):
            if B % tb == 0 and tb % align == 0:
                return tb
    return B


def multi_expert_loss(logits, target, cls_num_list, N, prior,
                      symbiotic=4.0, tile_batch=None):
    """Pallas implementation of MultiExpertLoss(cls_num_list, N, prior).forward."""
    E, B, C = logits.shape
    if E != 12:
        raise ValueError("MultiExpertLoss expects 12 expert logit maps")
    N = float(N)
    symbiotic = float(symbiotic)

    # ---- __init__-style parameter prep (host / plain JAX, not kernel work) ----
    cls = jnp.asarray(cls_num_list, dtype=jnp.float32)
    weight = N / cls
    v1_sig = jnp.log(N / cls - 1.0 + EPS)
    v2_sig = _inverse(v1_sig)
    v1_sm = jnp.log(cls / N + EPS)
    v2_sm = _inverse(v1_sm)

    zero = jnp.zeros_like(cls)
    # z' = z + shift[ex]   (sigmoid experts subtract, softmax experts add)
    shift_table = jnp.stack([
        zero, -v1_sig, -v1_sig + v2_sig,      # experts 0..2
        zero, -v1_sig, -v1_sig + v2_sig,      # experts 3..5
        zero, v1_sm, v1_sm - v2_sm,           # experts 6..8
        zero, v1_sm, v1_sm - v2_sm,           # experts 9..11
    ], axis=0)                                 # (12, C)

    w_bce = weight / float(B * C)              # BCE mean folded per element

    prior_np = np.asarray(prior, dtype=np.float32)
    prior_me = jnp.asarray((prior_np == 0).astype(np.float32))            # (C, C)

    prior_ms = (prior_np == 1).astype(np.float32) - np.eye(C, dtype=np.float32)
    row_sum = prior_ms.sum(axis=1)
    active_parents = np.nonzero(row_sum != 0)[0]
    num_parents = max(int(np.count_nonzero(row_sum)), 1)
    child_full = (prior_ms == 1).astype(np.float32)

    cmask_np = np.zeros((C, C), dtype=np.float32)     # parent -> children mask
    wreg_np = np.zeros((C,), dtype=np.float32)        # per-child-column weight
    for c in active_parents:
        cmask_np[c] = child_full[c]
        n_c = max(float(child_full[c].sum()), 1.0)
        wreg_np += child_full[c] * (symbiotic / (num_parents * B * n_c))
    if np.any(cmask_np.sum(axis=0) > 1.0):
        # TODO(synk): priors where a child has >1 active parent need per-parent
        # broadcasting; the single-matmul parent broadcast assumes disjoint sets.
        raise NotImplementedError("child classes must have a single active parent")
    cmask = jnp.asarray(cmask_np)

    params = jnp.concatenate(
        [w_bce[None, :], jnp.asarray(wreg_np)[None, :], shift_table], axis=0)  # (14, C)

    # ---- batch tiling ----
    tb = int(tile_batch) if tile_batch is not None else _pick_tile_batch(B)
    if B % tb != 0 or not (tb == B or tb % 8 == 0):
        raise ValueError(f"tile_batch={tb} must divide B={B} and be a multiple of 8")
    G = B // tb

    partials = pl.pallas_call(
        _multi_expert_kernel,
        out_shape=jax.ShapeDtypeStruct((G, 8, 128), jnp.float32),
        grid_spec=pltpu.PrefetchScalarGridSpec(
            num_scalar_prefetch=0,
            grid=(G,),
            in_specs=[
                pl.BlockSpec((E, tb, C), lambda i: (0, i, 0)),   # logits tile
                pl.BlockSpec((tb, C), lambda i: (i, 0)),         # target tile
                pl.BlockSpec((14, C), lambda i: (0, 0)),         # params (resident)
                pl.BlockSpec((C, C), lambda i: (0, 0)),          # prior_me (resident)
                pl.BlockSpec((C, C), lambda i: (0, 0)),          # child mask (resident)
            ],
            out_specs=pl.BlockSpec((1, 8, 128), lambda i: (i, 0, 0)),
        ),
        compiler_params=pltpu.CompilerParams(
            dimension_semantics=("parallel",),       # independent per-tile partials
            vmem_limit_bytes=32 * 1024 * 1024,
        ),
    )(logits, target, params, prior_me, cmask)

    return jnp.sum(partials[:, 0, 0])


def _multi_expert_loss_ref(logits, target, cls_num_list, N, prior, symbiotic=4.0):
    """Pure-JAX mirror of the PyTorch MultiExpertLoss.forward (sanity check)."""
    N = float(N)
    C = int(cls_num_list.shape[0])
    cls = jnp.asarray(cls_num_list, dtype=jnp.float32)
    weight = N / cls
    v1_sig = jnp.log(N / cls - 1.0 + EPS)
    v2_sig = _inverse(v1_sig)
    v1_sm = jnp.log(cls / N + EPS)
    v2_sm = _inverse(v1_sm)

    prior_np = np.asarray(prior, dtype=np.float32)
    prior_me = jnp.asarray((prior_np == 0).astype(np.float32))
    prior_ms = (prior_np == 1).astype(np.float32) - np.eye(C, dtype=np.float32)

    x = jnp.asarray(logits, dtype=jnp.float32)
    t = jnp.asarray(target, dtype=jnp.float32)

    def sigmoid(z):
        return 1.0 / (1.0 + jnp.exp(-z))

    def local_softmax(z):
        e = jnp.exp(z)
        den = jnp.dot(e, prior_me, precision="highest") + e
        return e / (den + EPS)

    acts = []
    for i in range(12):
        xi = x[i]
        if i in (0, 3):
            a = sigmoid(xi)
        elif i in (1, 4):
            a = sigmoid(xi - v1_sig)
        elif i in (2, 5):
            a = sigmoid(xi - v1_sig + v2_sig)
        elif i in (6, 9):
            a = local_softmax(xi)
        elif i in (7, 10):
            a = local_softmax(xi + v1_sm)
        else:
            a = local_softmax(xi + v1_sm - v2_sm)
        acts.append(jnp.clip(a, EPS, 1.0 - EPS))

    loss = jnp.float32(0.0)
    for i in range(12):
        p = acts[i]
        bce = -weight * (t * jnp.log(p) + (1.0 - t) * jnp.log(1.0 - p))
        loss = loss + jnp.mean(bce)

    num_parents = int(np.count_nonzero(prior_ms.sum(axis=1)))

    def symb_reg(p):
        r = jnp.float32(0.0)
        for c in range(C):
            row = prior_ms[c]
            if row.sum() != 0:
                leaf_idx = np.nonzero(row == 1)[0]
                parent = p[:, c]
                leafs = p[:, leaf_idx]
                r = r + jnp.mean(jnp.log(1.0 + jnp.exp(leafs - parent[:, None])))
        return r / num_parents

    for j in (3, 4, 5, 9, 10, 11):
        loss = loss + symbiotic * symb_reg(acts[j])
    return loss


if __name__ == "__main__":
    key = jax.random.PRNGKey(0)
    k1, k2 = jax.random.split(key)

    E, B, C = 12, 64, 128        # 12 experts, batch 64, 128 classes (lane-dense)

    # Long-tailed class frequencies and a 2-level hierarchy prior:
    # classes 0..7 are parents, each owning 15 leaf classes (8 + 8*15 = 128).
    cls_num_list = jnp.asarray(np.geomspace(1000.0, 20.0, C), dtype=jnp.float32)
    N = float(np.asarray(cls_num_list).sum())
    prior_np = np.eye(C, dtype=np.float32)
    for parent in range(8):
        prior_np[parent, 8 + parent * 15: 8 + (parent + 1) * 15] = 1.0
    prior = jnp.asarray(prior_np)

    logits = jax.random.normal(k1, (E, B, C), dtype=jnp.float32)
    # int8 multi-hot labels (kernel casts to f32) -> less HBM traffic.
    target = (jax.random.uniform(k2, (B, C)) > 0.8).astype(jnp.int8)

    loss = multi_expert_loss(logits, target, cls_num_list, N, prior,
                             symbiotic=4.0, tile_batch=32)   # 2 parallel batch tiles
    loss = jax.block_until_ready(loss)

    ref = _multi_expert_loss_ref(logits, target, cls_num_list, N, prior, symbiotic=4.0)
    ref = jax.block_until_ready(ref)

    assert jnp.isfinite(loss), loss
    assert jnp.allclose(loss, ref, rtol=2e-3, atol=1e-2), (loss, ref)
    print("KERNEL_OK")
</pallas_src>

<mosaic_0001>
module attributes {stable_mosaic.version = 11 : i64} {
  func.func @_multi_expert_kernel(%arg0: i32, %arg1: memref<12x32x128xf32, #tpu.memory_space<vmem>>, %arg2: memref<32x128xi8, #tpu.memory_space<vmem>>, %arg3: memref<14x128xf32, #tpu.memory_space<vmem>>, %arg4: memref<128x128xf32, #tpu.memory_space<vmem>>, %arg5: memref<128x128xf32, #tpu.memory_space<vmem>>, %arg6: memref<1x8x128xf32, #tpu.memory_space<vmem>>) attributes {dimension_semantics = [#tpu.dimension_semantics<parallel>], iteration_bounds = array<i64: 2>, scalar_prefetch = 0 : i64, scratch_operands = 0 : i64, tpu.core_type = #tpu.core_type<tc>, window_params = [{transform_indices = @transform_0, window_bounds = array<i64: 12, 32, 128>}, {transform_indices = @transform_1, window_bounds = array<i64: 32, 128>}, {pipeline_mode = #tpu.pipeline_mode<synchronous>, transform_indices = @transform_2, window_bounds = array<i64: 14, 128>}, {pipeline_mode = #tpu.pipeline_mode<synchronous>, transform_indices = @transform_3, window_bounds = array<i64: 128, 128>}, {pipeline_mode = #tpu.pipeline_mode<synchronous>, transform_indices = @transform_4, window_bounds = array<i64: 128, 128>}, {transform_indices = @transform_5, window_bounds = array<i64: 1, 8, 128>}]} {
    %c0 = arith.constant 0 : index
    %c0_0 = arith.constant 0 : index
    %0 = vector.load %arg2[%c0, %c0_0] : memref<32x128xi8, #tpu.memory_space<vmem>>, vector<32x128xi8>
    %1 = arith.sitofp %0 : vector<32x128xi8> to vector<32x128xf32>
    %c0_1 = arith.constant 0 : index
    %c0_2 = arith.constant 0 : index
    %2 = vector.load %arg3[%c0_1, %c0_2] : memref<14x128xf32, #tpu.memory_space<vmem>>, vector<1x128xf32>
    %c1 = arith.constant 1 : index
    %c0_3 = arith.constant 0 : index
    %3 = vector.load %arg3[%c1, %c0_3] : memref<14x128xf32, #tpu.memory_space<vmem>>, vector<1x128xf32>
    %c2 = arith.constant 2 : index
    %c0_4 = arith.constant 0 : index
    %4 = vector.load %arg3[%c2, %c0_4] : memref<14x128xf32, #tpu.memory_space<vmem>>, vector<12x128xf32>
    %c0_5 = arith.constant 0 : index
    %c0_6 = arith.constant 0 : index
    %5 = vector.load %arg4[%c0_5, %c0_6] : memref<128x128xf32, #tpu.memory_space<vmem>>, vector<128x128xf32>
    %c0_7 = arith.constant 0 : index
    %c0_8 = arith.constant 0 : index
    %6 = vector.load %arg5[%c0_7, %c0_8] : memref<128x128xf32, #tpu.memory_space<vmem>>, vector<128x128xf32>
    %c0_9 = arith.constant 0 : index
    %c0_10 = arith.constant 0 : index
    %c0_11 = arith.constant 0 : index
    %7 = vector.load %arg1[%c0_9, %c0_10, %c0_11] : memref<12x32x128xf32, #tpu.memory_space<vmem>>, vector<12x32x128xf32>
    %8 = vector.extract_strided_slice %7 {offsets = [0, 0, 0], sizes = [6, 32, 128], strides = [1, 1, 1]} : vector<12x32x128xf32> to vector<6x32x128xf32>
    %9 = vector.extract_strided_slice %4 {offsets = [0, 0], sizes = [6, 128], strides = [1, 1]} : vector<12x128xf32> to vector<6x128xf32>
    %10 = vector.shape_cast %9 : vector<6x128xf32> to vector<6x1x128xf32>
    %11 = vector.broadcast %10 : vector<6x1x128xf32> to vector<6x32x128xf32>
    %12 = arith.addf %8, %11 : vector<6x32x128xf32>
    %cst = arith.constant -11.5129156 : f32
    %cst_12 = arith.constant 11.5129156 : f32
    %13 = vector.broadcast %cst : f32 to vector<6x32x128xf32>
    %14 = arith.maximumf %13, %12 : vector<6x32x128xf32>
    %15 = vector.broadcast %cst_12 : f32 to vector<6x32x128xf32>
    %16 = arith.minimumf %15, %14 : vector<6x32x128xf32>
    %17 = math.exp %16 : vector<6x32x128xf32>
    %cst_13 = arith.constant 1.000000e+00 : f32
    %18 = vector.broadcast %cst_13 : f32 to vector<6x32x128xf32>
    %19 = arith.addf %18, %17 : vector<6x32x128xf32>
    %20 = math.log %19 : vector<6x32x128xf32>
    %21 = vector.shape_cast %2 : vector<1x128xf32> to vector<1x1x128xf32>
    %22 = vector.shape_cast %1 : vector<32x128xf32> to vector<1x32x128xf32>
    %23 = vector.broadcast %22 : vector<1x32x128xf32> to vector<6x32x128xf32>
    %24 = arith.mulf %23, %16 : vector<6x32x128xf32>
    %25 = arith.subf %24, %20 : vector<6x32x128xf32>
    %26 = vector.broadcast %21 : vector<1x1x128xf32> to vector<6x32x128xf32>
    %27 = arith.mulf %26, %25 : vector<6x32x128xf32>
    %28 = vector.extract_strided_slice %7 {offsets = [6, 0, 0], sizes = [6, 32, 128], strides = [1, 1, 1]} : vector<12x32x128xf32> to vector<6x32x128xf32>
    %29 = vector.extract_strided_slice %4 {offsets = [6, 0], sizes = [6, 128], strides = [1, 1]} : vector<12x128xf32> to vector<6x128xf32>
    %30 = vector.shape_cast %29 : vector<6x128xf32> to vector<6x1x128xf32>
    %31 = vector.broadcast %30 : vector<6x1x128xf32> to vector<6x32x128xf32>
    %32 = arith.addf %28, %31 : vector<6x32x128xf32>
    %33 = math.exp %32 : vector<6x32x128xf32>
    %34 = vector.shape_cast %33 : vector<6x32x128xf32> to vector<192x128xf32>
    %cst_14 = arith.constant dense<0.000000e+00> : vector<192x128xf32>
    %35 = tpu.matmul %34, %5, %cst_14 {dimension_numbers = #tpu.dot_dimension_numbers<[1], [0], [0], [1], [0, 0, 1, 1], [], []>} : vector<192x128xf32>, vector<128x128xf32>, vector<192x128xf32> -> vector<192x128xf32>
    %36 = vector.shape_cast %35 : vector<192x128xf32> to vector<6x32x128xf32>
    %37 = arith.addf %36, %33 : vector<6x32x128xf32>
    %cst_15 = arith.constant 9.99999974E-6 : f32
    %38 = vector.broadcast %cst_15 : f32 to vector<6x32x128xf32>
    %39 = arith.addf %37, %38 : vector<6x32x128xf32>
    %40 = math.log %39 : vector<6x32x128xf32>
    %41 = arith.subf %32, %40 : vector<6x32x128xf32>
    %cst_16 = arith.constant -11.5129251 : f32
    %cst_17 = arith.constant -1.00000498E-5 : f32
    %42 = vector.broadcast %cst_16 : f32 to vector<6x32x128xf32>
    %43 = arith.maximumf %42, %41 : vector<6x32x128xf32>
    %44 = vector.broadcast %cst_17 : f32 to vector<6x32x128xf32>
    %45 = arith.minimumf %44, %43 : vector<6x32x128xf32>
    %cst_18 = arith.constant 9.99999974E-6 : f32
    %46 = vector.broadcast %cst_18 : f32 to vector<6x32x128xf32>
    %47 = arith.addf %36, %46 : vector<6x32x128xf32>
    %48 = math.log %47 : vector<6x32x128xf32>
    %49 = arith.subf %48, %40 : vector<6x32x128xf32>
    %cst_19 = arith.constant -11.5129251 : f32
    %cst_20 = arith.constant -1.00000498E-5 : f32
    %50 = vector.broadcast %cst_19 : f32 to vector<6x32x128xf32>
    %51 = arith.maximumf %50, %49 : vector<6x32x128xf32>
    %52 = vector.broadcast %cst_20 : f32 to vector<6x32x128xf32>
    %53 = arith.minimumf %52, %51 : vector<6x32x128xf32>
    %54 = vector.shape_cast %2 : vector<1x128xf32> to vector<1x1x128xf32>
    %55 = vector.shape_cast %1 : vector<32x128xf32> to vector<1x32x128xf32>
    %56 = vector.broadcast %55 : vector<1x32x128xf32> to vector<6x32x128xf32>
    %57 = arith.mulf %56, %45 : vector<6x32x128xf32>
    %58 = vector.shape_cast %1 : vector<32x128xf32> to vector<1x32x128xf32>
    %cst_21 = arith.constant 1.000000e+00 : f32
    %59 = vector.broadcast %cst_21 : f32 to vector<1x32x128xf32>
    %60 = arith.subf %59, %58 : vector<1x32x128xf32>
    %61 = vector.broadcast %60 : vector<1x32x128xf32> to vector<6x32x128xf32>
    %62 = arith.mulf %61, %53 : vector<6x32x128xf32>
    %63 = arith.addf %57, %62 : vector<6x32x128xf32>
    %64 = vector.broadcast %54 : vector<1x1x128xf32> to vector<6x32x128xf32>
    %65 = arith.mulf %64, %63 : vector<6x32x128xf32>
    %66 = vector.extract_strided_slice %17 {offsets = [3, 0, 0], sizes = [3, 32, 128], strides = [1, 1, 1]} : vector<6x32x128xf32> to vector<3x32x128xf32>
    %67 = vector.extract_strided_slice %17 {offsets = [3, 0, 0], sizes = [3, 32, 128], strides = [1, 1, 1]} : vector<6x32x128xf32> to vector<3x32x128xf32>
    %cst_22 = arith.constant 1.000000e+00 : f32
    %68 = vector.broadcast %cst_22 : f32 to vector<3x32x128xf32>
    %69 = arith.addf %68, %67 : vector<3x32x128xf32>
    %70 = arith.divf %66, %69 : vector<3x32x128xf32>
    %cst_23 = arith.constant 9.99999974E-6 : f32
    %cst_24 = arith.constant 0.999989986 : f32
    %71 = vector.broadcast %cst_23 : f32 to vector<3x32x128xf32>
    %72 = arith.maximumf %71, %70 : vector<3x32x128xf32>
    %73 = vector.broadcast %cst_24 : f32 to vector<3x32x128xf32>
    %74 = arith.minimumf %73, %72 : vector<3x32x128xf32>
    %75 = vector.extract_strided_slice %33 {offsets = [3, 0, 0], sizes = [3, 32, 128], strides = [1, 1, 1]} : vector<6x32x128xf32> to vector<3x32x128xf32>
    %76 = vector.extract_strided_slice %39 {offsets = [3, 0, 0], sizes = [3, 32, 128], strides = [1, 1, 1]} : vector<6x32x128xf32> to vector<3x32x128xf32>
    %77 = arith.divf %75, %76 : vector<3x32x128xf32>
    %cst_25 = arith.constant 9.99999974E-6 : f32
    %cst_26 = arith.constant 0.999989986 : f32
    %78 = vector.broadcast %cst_25 : f32 to vector<3x32x128xf32>
    %79 = arith.maximumf %78, %77 : vector<3x32x128xf32>
    %80 = vector.broadcast %cst_26 : f32 to vector<3x32x128xf32>
    %81 = arith.minimumf %80, %79 : vector<3x32x128xf32>
    %82 = vector.shape_cast %27 : vector<6x32x128xf32> to vector<192x128xf32>
    %83 = vector.shape_cast %82 : vector<192x128xf32> to vector<1x192x128xf32>
    %cst_27 = arith.constant dense<0.000000e+00> : vector<1xf32>
    %84 = vector.multi_reduction <add>, %83, %cst_27 [1, 2] : vector<1x192x128xf32> to vector<1xf32>
    %85 = vector.shape_cast %84 : vector<1xf32> to vector<1x1x1xf32>
    %86 = vector.extract %85[0, 0, 0] : f32 from vector<1x1x1xf32>
    %87 = vector.shape_cast %65 : vector<6x32x128xf32> to vector<192x128xf32>
    %88 = vector.shape_cast %87 : vector<192x128xf32> to vector<1x192x128xf32>
    %cst_28 = arith.constant dense<0.000000e+00> : vector<1xf32>
    %89 = vector.multi_reduction <add>, %88, %cst_28 [1, 2] : vector<1x192x128xf32> to vector<1xf32>
    %90 = vector.shape_cast %89 : vector<1xf32> to vector<1x1x1xf32>
    %91 = vector.extract %90[0, 0, 0] : f32 from vector<1x1x1xf32>
    %92 = arith.addf %86, %91 : f32
    %cst_29 = arith.constant 0.000000e+00 : f32
    %93 = arith.subf %cst_29, %92 : f32
    %94 = vector.shape_cast %74 : vector<3x32x128xf32> to vector<96x128xf32>
    %cst_30 = arith.constant dense<0.000000e+00> : vector<96x128xf32>
    %95 = tpu.matmul %94, %6, %cst_30 {dimension_numbers = #tpu.dot_dimension_numbers<[1], [0], [0], [1], [0, 0, 1, 1], [], []>} : vector<96x128xf32>, vector<128x128xf32>, vector<96x128xf32> -> vector<96x128xf32>
    %96 = arith.subf %94, %95 : vector<96x128xf32>
    %97 = math.exp %96 : vector<96x128xf32>
    %cst_31 = arith.constant 1.000000e+00 : f32
    %98 = vector.broadcast %cst_31 : f32 to vector<96x128xf32>
    %99 = arith.addf %98, %97 : vector<96x128xf32>
    %100 = math.log %99 : vector<96x128xf32>
    %101 = vector.broadcast %3 : vector<1x128xf32> to vector<96x128xf32>
    %102 = arith.mulf %101, %100 : vector<96x128xf32>
    %103 = vector.shape_cast %102 : vector<96x128xf32> to vector<1x96x128xf32>
    %cst_32 = arith.constant dense<0.000000e+00> : vector<1xf32>
    %104 = vector.multi_reduction <add>, %103, %cst_32 [1, 2] : vector<1x96x128xf32> to vector<1xf32>
    %105 = vector.shape_cast %104 : vector<1xf32> to vector<1x1x1xf32>
    %106 = vector.extract %105[0, 0, 0] : f32 from vector<1x1x1xf32>
    %107 = arith.addf %93, %106 : f32
    %108 = vector.shape_cast %81 : vector<3x32x128xf32> to vector<96x128xf32>
    %cst_33 = arith.constant dense<0.000000e+00> : vector<96x128xf32>
    %109 = tpu.matmul %108, %6, %cst_33 {dimension_numbers = #tpu.dot_dimension_numbers<[1], [0], [0], [1], [0, 0, 1, 1], [], []>} : vector<96x128xf32>, vector<128x128xf32>, vector<96x128xf32> -> vector<96x128xf32>
    %110 = arith.subf %108, %109 : vector<96x128xf32>
    %111 = math.exp %110 : vector<96x128xf32>
    %cst_34 = arith.constant 1.000000e+00 : f32
    %112 = vector.broadcast %cst_34 : f32 to vector<96x128xf32>
    %113 = arith.addf %112, %111 : vector<96x128xf32>
    %114 = math.log %113 : vector<96x128xf32>
    %115 = vector.broadcast %3 : vector<1x128xf32> to vector<96x128xf32>
    %116 = arith.mulf %115, %114 : vector<96x128xf32>
    %117 = vector.shape_cast %116 : vector<96x128xf32> to vector<1x96x128xf32>
    %cst_35 = arith.constant dense<0.000000e+00> : vector<1xf32>
    %118 = vector.multi_reduction <add>, %117, %cst_35 [1, 2] : vector<1x96x128xf32> to vector<1xf32>
    %119 = vector.shape_cast %118 : vector<1xf32> to vector<1x1x1xf32>
    %120 = vector.extract %119[0, 0, 0] : f32 from vector<1x1x1xf32>
    %121 = arith.addf %107, %120 : f32
    %122 = vector.broadcast %121 : f32 to vector<1x8x128xf32>
    %c0_36 = arith.constant 0 : index
    %c0_37 = arith.constant 0 : index
    %c0_38 = arith.constant 0 : index
    %123 = vector.load %arg6[%c0_36, %c0_37, %c0_38] : memref<1x8x128xf32, #tpu.memory_space<vmem>>, vector<1x8x128xf32>
    tpu.vector_store %arg6[%c0_36, %c0_37, %c0_38], %122 {strides = array<i32>} : memref<1x8x128xf32, #tpu.memory_space<vmem>>, vector<1x8x128xf32>,
    return
  }
  func.func @transform_0(%arg0: i32) -> (i32, i32, i32) {
    %c0_i32 = arith.constant 0 : i32
    %c0_i32_0 = arith.constant 0 : i32
    %c0_i32_1 = arith.constant 0 : i32
    return %c0_i32, %arg0, %c0_i32_0 : i32, i32, i32
  }
  func.func @transform_1(%arg0: i32) -> (i32, i32) {
    %c0_i32 = arith.constant 0 : i32
    %c0_i32_0 = arith.constant 0 : i32
    return %arg0, %c0_i32 : i32, i32
  }
  func.func @transform_2(%arg0: i32) -> (i32, i32) {
    %c0_i32 = arith.constant 0 : i32
    %c0_i32_0 = arith.constant 0 : i32
    %c0_i32_1 = arith.constant 0 : i32
    return %c0_i32, %c0_i32_0 : i32, i32
  }
  func.func @transform_3(%arg0: i32) -> (i32, i32) {
    %c0_i32 = arith.constant 0 : i32
    %c0_i32_0 = arith.constant 0 : i32
    %c0_i32_1 = arith.constant 0 : i32
    return %c0_i32, %c0_i32_0 : i32, i32
  }
  func.func @transform_4(%arg0: i32) -> (i32, i32) {
    %c0_i32 = arith.constant 0 : i32
    %c0_i32_0 = arith.constant 0 : i32
    %c0_i32_1 = arith.constant 0 : i32
    return %c0_i32, %c0_i32_0 : i32, i32
  }
  func.func @transform_5(%arg0: i32) -> (i32, i32, i32) {
    %c0_i32 = arith.constant 0 : i32
    %c0_i32_0 = arith.constant 0 : i32
    %c0_i32_1 = arith.constant 0 : i32
    return %arg0, %c0_i32, %c0_i32_0 : i32, i32, i32
  }
}

</mosaic_0001>

<bundles_post_ra>
// kernel: tpu_custom_call.1
= control target key start
LH: loop header
LB: loop body
LE: loop exit
PB: predicated region body
PF: predicated region fallthrough
CT: control target
= control target key end

     0   :  { %s4944_s0 = inlined_call_operand.hbm [shape: f32[12,64,128], index: 0, kind: input, shape index: {}]   ;;  %s4945_s1 = inlined_call_operand.hbm [shape: s8[64,128], index: 1, kind: input, shape index: {}]   ;;  %s4946_s2 = inlined_call_operand.hbm [shape: f32[14,128], index: 2, kind: input, shape index: {}]   ;;  %s4947_s3 = inlined_call_operand.hbm [shape: f32[128,128], index: 3, kind: input, shape index: {}]   ;;  %s4948_s4 = inlined_call_operand.hbm [shape: f32[128,128], index: 4, kind: input, shape index: {}]   ;;  %s4949_s5 = inlined_call_operand.hbm [shape: f32[2,8,128], index: 5, kind: output, shape index: {}]  }
   0x1   :  { %5048 = sst [smem:[#allocation85_spill]] %s4944_s0 }
   0x2   :  { %5049 = sst [smem:[#allocation86_spill]] %s4947_s3 }
   0x3   :  { %10 = vsyncpa [#allocation3], 0 }
   0x4   :  { %12 = vsyncpa [#allocation3 + $0x1], 0 }
   0x5   :  { %13 = vsyncpa [#allocation6], 0 }
   0x6   :  { %15 = vsyncpa [#allocation6 + $0x1], 0 }
   0x7   :  { %16 = vsyncpa [#allocation9], 0 }
   0x8   :  { %17 = vsyncpa [#allocation4], 0 }
   0x9   :  { %19 = vsyncpa [#allocation4 + $0x1], 0  ;;  %s3426_s18 = smov 0   ;;  %s3428_s19 = smov 0  }
   0xa   :  { %s3430_s20 = smov 0   ;;  %s3432_s21 = smov 0  }
   0xb LB: > { %s3447_s22 = sadd.s32 4294967295, %s3380_s21   ;;  %s2277_s23 = sadd.s32 4294967294, %s3380_s21   ;;  %s3380_s21 = sphi %s3432_s21, %s5262_s21   ;;  %s3376_s20 = sphi %s3430_s20, %s5266_s20   ;;  %s3372_s19 = sphi %s3428_s19, %s5265_s19   ;;  %s3368_s18 = sphi %s3426_s18, %s5264_s18  }
   0xc   : > { %s3451_s24 = sadd.s32 1, %s3380_s21   ;;  %s32_s25 = sadd.s32 1, %s3376_s20 }
   0xd   : > { %5050 = sst [smem:[#allocation20_spill]] %s3451_s24  ;;  %s29_s26 = ssub.s32 %s3380_s21, %s3451_s24 }
   0xe   : > { %p39_p0 = scmp.ne.s32.totalorder %s3376_s20, %s3372_s19  ;;  %p30_p1 = scmp.eq.s32.totalorder %s29_s26, 0 }
   0xf   : > { %p40_p2 = scmp.eq.s32.totalorder %s3380_s21, 0  ;;  %p45_p3 = scmp.ne.s32.totalorder %s3372_s19, %s3368_s18 }
  0x10   : > { %p4950_p4 = scmp.eq.s32.totalorder %s3447_s22, 0  ;;  %p158_p7 = scmp.eq.s32.totalorder %s3447_s22, 1 }
  0x11   : > { %s3463_s27 = scalar_select %p30_p1, %s3376_s20, %s32_s25  }
  0x12   : > { %p3465_p5 = por %p40_p2, %p39_p0  ;;  %p3471_p6 = por %p4950_p4, %p45_p3 }
  0x13   : > { %5051 = sst [smem:[#allocation21_spill]] %s3463_s27  ;;  %p164_p8 = scmp.eq.s32.totalorder %s2277_s23, 1 }
  0x14   : > { %s5052_s28 = scalar_select %p3465_p5, 1, 0 }
  0x15   : > { %s5053_s29 = scalar_select %p3471_p6, 1, 0 }
  0x16   : > { %p2278_p9 = scmp.ge.s32.totalorder %s3380_s21, 1  ;;  %p171_p10 = scmp.lt.s32.totalorder %s3380_s21, 3 }
  0x17   : > { %p3478_p11 = por %p158_p7, %p39_p0  ;;  %p3482_p12 = por %p164_p8, %p45_p3 }
  0x18   : > { %p3486_p13 = pnand %p2278_p9, %p171_p10  ;;  %s3382_s8 = smov [#allocation8]  }
  0x19   : > { %s5054_s30 = scalar_select %p3478_p11, 1, 0 }
  0x1a   : > { %s5055_s6 = scalar_select %p3482_p12, 1, 0 }
  0x1b   : > { %s5056_s7 = scalar_select %p3486_p13, 1, 0 }
  0x1c   : > { %p2738_p1 = pneg %p3486_p13  ;;  %s196_s9 = sshll.u32 %s3382_s8, 4  ;;  %s197_s9 = int_to_ptr.vmem [resolvable:$true] %s196_s9 }
  0x1d   : > { %s3383_s11 = smov [#allocation7]   ;;  %s5058_s3 = sld [smem:[#allocation86_spill]] }
  0x1e   : > { %p3494_p2 = pnand %p2738_p1, %p4950_p4  ;;  %s183_s12 = sshll.u32 %s3383_s11, 4  ;;  %s3498_s12 = int_to_ptr.vmem [resolvable:$true] %s183_s12 }
  0x20   : > { %p3508_p3 = pneg %p3494_p2 }
  0x23   : > { %s3190_s15 = scalar_lea.hbm %s5058_s3, 2048 }
  0x24   : > { %p3191_p0 = scmp.ne.s32.totalorder %s5058_s3, %s3190_s15  ;;  %p3197_p9 = scmp.lt.u32.totalorder %s3190_s15, %s5058_s3 }
  0x26   : > { %p3193_p7 = pnand %p3508_p3, %p3191_p0 }
  0x28   : > { %p3194_p8 = pneg %p3193_p7 }
  0x2a   : > { %p3199_p10 = pnand %p3197_p9, %p3194_p8 }
  0x2c   : > { %3202 = shalt.err (!%p3199_p10)
}
  0x2d   : > { %s3203_s8 = scalar_lea.vmem %s197_s9, 2048  ;;  %p3211_p11 = scmp.lt.s32.totalorder %s197_s9, %s197_s9 }
  0x2e   : > { %p3204_p1 = scmp.ne.s32.totalorder %s197_s9, %s3203_s8  ;;  %p3212_p6 = scmp.lt.s32.totalorder %s3203_s8, %s3203_s8 }
  0x30   : > { %p3206_p4 = pnand %p3204_p1, %p3508_p3  ;;  %p3213_p13 = por %p3212_p6, %p3211_p11 }
  0x32   : > { %p3207_p12 = pneg %p3206_p4 }
  0x34   : > { %p3214_p5 = pnand %p3213_p13, %p3207_p12 }
  0x36   : > { %3217 = shalt.err (!%p3214_p5)
}
  0x37   : > { %s3384_s11 = smov 128   ;;  %s3385_s13 = smov 8  }
  0x38   : > { %2744 = dma.hbm_to_vmem [thread:$0]  (!%p3494_p2), %s5058_s3, 2048, %s197_s9, [#allocation9], %s3384_s11, %s3384_s11, %s3385_s13  }
  0x39   : > { %s3218_s25 = scalar_lea.hbm %s4946_s2, 256 }
  0x3a   : > { %p3219_p4 = scmp.ne.s32.totalorder %s4946_s2, %s3218_s25  ;;  %p3225_p11 = scmp.lt.u32.totalorder %s3218_s25, %s4946_s2 }
  0x3c   : > { %p3221_p5 = pnand %p3219_p4, %p3508_p3 }
  0x3e   : > { %p3222_p6 = pneg %p3221_p5 }
  0x40   : > { %p3227_p12 = pnand %p3225_p11, %p3222_p6 }
  0x42   : > { %3230 = shalt.err (!%p3227_p12)
}
  0x43   : > { %s3231_s9 = scalar_lea.vmem %s3498_s12, 256  ;;  %p3239_p8 = scmp.lt.s32.totalorder %s3498_s12, %s3498_s12 }
  0x44   : > { %p3232_p13 = scmp.ne.s32.totalorder %s3498_s12, %s3231_s9  ;;  %p3240_p9 = scmp.lt.s32.totalorder %s3231_s9, %s3231_s9 }
  0x46   : > { %p3234_p0 = pnand %p3232_p13, %p3508_p3  ;;  %p3241_p10 = por %p3240_p9, %p3239_p8 }
  0x48   : > { %p3235_p7 = pneg %p3234_p0 }
  0x4a   : > { %p3242_p1 = pnand %p3241_p10, %p3235_p7 }
  0x4c   : > { %3245 = shalt.err (!%p3242_p1)
}
  0x4d   : > { %2741 = dma.hbm_to_vmem [thread:$0]  (!%p3494_p2), %s4946_s2, 256, %s3498_s12, [#allocation6], %s3384_s11, %s3384_s11, %s3385_s13  }
  0x4e   : > { %s3386_s14 = smov [#allocation10]   ;;  %s3246_s25 = scalar_lea.hbm %s4948_s4, 2048 }
  0x4f   : > { %s209_s15 = sshll.u32 %s3386_s14, 4  ;;  %p3247_p4 = scmp.ne.s32.totalorder %s4948_s4, %s3246_s25  ;;  %s210_s15 = int_to_ptr.vmem [resolvable:$true] %s209_s15 }
  0x50   : > { %p3253_p11 = scmp.lt.u32.totalorder %s3246_s25, %s4948_s4 }
  0x51   : > { %p3249_p5 = pnand %p3247_p4, %p3508_p3 }
  0x53   : > { %p3250_p6 = pneg %p3249_p5 }
  0x55   : > { %p3255_p12 = pnand %p3253_p11, %p3250_p6 }
  0x57   : > { %3258 = shalt.err (!%p3255_p12)
}
  0x58   : > { %s3259_s12 = scalar_lea.vmem %s210_s15, 2048  ;;  %p3267_p8 = scmp.lt.s32.totalorder %s210_s15, %s210_s15 }
  0x59   : > { %p3260_p13 = scmp.ne.s32.totalorder %s210_s15, %s3259_s12  ;;  %p3268_p9 = scmp.lt.s32.totalorder %s3259_s12, %s3259_s12 }
  0x5b   : > { %p3262_p0 = pnand %p3260_p13, %p3508_p3  ;;  %p3269_p10 = por %p3268_p9, %p3267_p8 }
  0x5d   : > { %p3263_p7 = pneg %p3262_p0 }
  0x5f   : > { %p3270_p1 = pnand %p3269_p10, %p3263_p7 }
  0x61   : > { %3273 = shalt.err (!%p3270_p1)
}
  0x62   : > { %2747 = dma.hbm_to_vmem [thread:$0]  (!%p3494_p2), %s4948_s4, 2048, %s210_s15, [#allocation9], %s3384_s11, %s3384_s11, %s3385_s13  }
  0x63   : > { %p4957_p4 = scmp.ge.s32.totalorder %s3380_s21, 2 }
  0x65   : > { %219 = sbr.rel (%p4957_p4) target bundleno = 147 (0x93), region = 28 }
  0x6c   : > { %s223_s10 = sand.u32 1, %s3376_s20   ;;  %s2326_s27 = sshll.u32 %s3380_s21, 9 }
  0x6d   : > { %s2703_s23 = smul.u32 384, %s223_s10  ;;  %s3387_s14 = smov 1024  }
  0x6e   : > { %p5060_p3 = scmp.ne.s32.totalorder %s5052_s28, 0  ;;  %s5061_s0 = sld [smem:[#allocation85_spill]] }
  0x6f   : > { %s227_s25 = scalar_lea.vmem [#allocation2], %s2703_s23  ;;  %s3388_s8 = smov 512  }
  0x70   : > { %2720 = sst [smem:[#allocation13]] (%p5060_p3), %s3387_s14  ;;  %s246_s26 = sshll.u32 %s227_s25, 4  ;;  %s247_s26 = int_to_ptr.vmem [resolvable:$true] %s246_s26 }
  0x71   : > { %s2719_s11 = scalar_select %p5060_p3, [#allocation0], [#allocation14] }
  0x72   : > { %2721 = sst [smem:[#allocation13 + $0x1]] (%p5060_p3), %s3388_s8  ;;  %s3389_s9 = smov 4  }
  0x73   : > { %s238_s17 = sld [smem:[%s2719_s11]]   ;;  %s3390_s12 = smov 128  }
  0x74   : > { %s233_s16 = scalar_lea.hbm %s5061_s0, %s2326_s27  ;;  %2722 = sst [smem:[#allocation13 + $0x2]] (%p5060_p3), %s3389_s9 }
  0x75   : > { %2723 = sst [smem:[#allocation13 + $0x3]] (%p5060_p3), %s3390_s12  ;;  %s3391_s3 = smov 8  }
  0x76   : > { %2724 = sst [smem:[#allocation13 + $0x4]] (%p5060_p3), %s3390_s12  ;;  %s224_s23 = scalar_lea.sflag [#allocation3], %s223_s10 }
  0x77   : > { %2725 = sst [smem:[#allocation13 + $0x5]] (%p5060_p3), %s3391_s3  ;;  %s3392_s14 = smov [#allocation12]  }
  0x78   : > { %s269_s11 = sand.u32 1, %s3380_s21   ;;  %s2287_s13 = sshll.u32 %s223_s10, 3 }
  0x79   : > { %s2285_s24 = sshll.u32 %s238_s17, 26  ;;  %s2288_s15 = sshll.u32 %s3380_s21, 7 }
  0x7a   : > { %s2286_s27 = sadd.s32 134217728, %s2285_s24  ;;  %s273_s25 = scalar_lea.vmem [#allocation5], %s2287_s13 }
  0x7b   : > { %2726 = dma.general (%p5060_p3), %s233_s16, 6144, %s247_s26, %s224_s23, %s3392_s14, [#allocation13], %s2286_s27, 0  }
  0x7c   : > { %s280_s8 = sshll.u32 %s273_s25, 4  ;;  %s3603_s12 = scalar_lea.hbm %s4945_s1, %s2288_s15  ;;  %s281_s8 = int_to_ptr.vmem [resolvable:$true] %s280_s8 }
  0x7d   : > { %s270_s17 = scalar_lea.sflag [#allocation6], %s269_s11  ;;  %s3274_s16 = scalar_lea.hbm %s3603_s12, 128 }
  0x7e   : > { %p3275_p2 = scmp.ne.s32.totalorder %s3603_s12, %s3274_s16  ;;  %s3278_s3 = scalar_lea.hbm %s4945_s1, 256 }
  0x7f   : > { %p3279_p11 = scmp.lt.u32.totalorder %s3603_s12, %s4945_s1  ;;  %p3280_p12 = scmp.lt.u32.totalorder %s3278_s3, %s3274_s16 }
  0x80   : > { %p3276_p5 = pnand %p3275_p2, %p5060_p3  ;;  %p3282_p0 = scmp.lt.u32.totalorder %s3274_s16, %s3603_s12 }
  0x81   : > { %p3281_p13 = por %p3280_p12, %p3279_p11 }
  0x82   : > { %p3277_p6 = pneg %p3276_p5 }
  0x83   : > { %p3283_p7 = por %p3282_p0, %p3281_p13 }
  0x85   : > { %p3284_p8 = pnand %p3283_p7, %p3277_p6 }
  0x87   : > { %3287 = shalt.err (!%p3284_p8)
}
  0x88   : > { %s3288_s0 = scalar_lea.vmem %s281_s8, 128  ;;  %s3393_s23 = smov [#allocation5]  }
  0x89   : > { %p3289_p9 = scmp.ne.s32.totalorder %s281_s8, %s3288_s0  ;;  %s3292_s14 = sshll.u32 %s3393_s23, 4  ;;  %s3293_s14 = int_to_ptr.vmem [resolvable:$false] %s3292_s14 }
  0x8a   : > { %s3294_s11 = scalar_lea.vmem %s3293_s14, 256  ;;  %p3295_p2 = scmp.lt.s32.totalorder %s281_s8, %s3293_s14 }
  0x8b   : > { %p3290_p10 = pnand %p3289_p9, %p5060_p3  ;;  %p3296_p5 = scmp.lt.s32.totalorder %s3294_s11, %s3288_s0 }
  0x8d   : > { %p3291_p1 = pneg %p3290_p10  ;;  %p3297_p4 = por %p3296_p5, %p3295_p2 }
  0x8f   : > { %p3298_p11 = pnand %p3297_p4, %p3291_p1 }
  0x91   : > { %3301 = shalt.err (!%p3298_p11)
}
  0x92   : > { %2727 = dma.hbm_to_vmem [thread:$0]  (%p5060_p3), %s3603_s12, 128, %s281_s8, %s270_s17  }
  0x93 PF: > { %p5062_p6 = scmp.ne.s32.totalorder %s5056_s7, 0 }
  0x95   : > { %289 = sbr.rel (%p5062_p6) target bundleno = 1038 (0x40e), region = 40 }
  0x9c   : > { %s3625_s13 = sand.u32 1, %s3372_s19   ;;  %p5063_p4 = scmp.ne.s32.totalorder %s5053_s29, 0 }
  0x9d   : > { %s2704_s15 = smul.u32 384, %s3625_s13  ;;  %s292_s25 = scalar_lea.sflag [#allocation3], %s3625_s13 }
  0x9f   : > { %s3629_s9 = scalar_lea.vmem [#allocation2], %s2704_s15 }
  0xa0   : > { %3347 = dma.done.wait (%p5063_p4), %s292_s25, 6144  }
  0xa1   : > { %3349 = vsyncadd (%p5063_p4), %s292_s25, 4294961152  ;;  %s300_s28 = sand.u32 1, %s3447_s22   ;;  %s2290_s7 = sshll.u32 %s3625_s13, 3 }
  0xa2   : > { %s301_s8 = scalar_lea.sflag [#allocation6], %s300_s28  ;;  %s3639_s12 = scalar_lea.vmem [#allocation5], %s2290_s7 }
  0xa3   : > { %3351 = dma.done.wait (%p5063_p4), %s301_s8, 128  }
  0xa4   : > { %3353 = vsyncadd (%p5063_p4), %s301_s8, 4294967168  ;;  %p5064_p3 = scmp.eq.s32.totalorder %s3447_s22, 0 }
  0xa6   : > { %3355 = dma.done.wait (%p5064_p3), [#allocation6], 256   ;;  %p5065_p12 = pmov %p5064_p3 }
  0xa7   : > { %p5066_p13 = pmov %p5064_p3 }
  0xa8   : > { %3357 = vsyncadd (%p5065_p12), [#allocation6], 4294967040 }
  0xa9   : > { %3359 = dma.done.wait (%p5066_p13), [#allocation9], 4096   ;;  %p5067_p0 = pmov %p5064_p3 }
  0xaa   : > { %v3394_v0 = vmov 1966171168   ;;  %v447_v2 = vlaneseq  ;;  %v362_v3 = vld [vmem:[#allocation8] sm:$0xff]  ;;  %v363_v4 = vld [vmem:[#allocation8 + $0x8] sm:$0xff]  ;;  %v364_v5 = vld [vmem:[#allocation8 + $0x10] sm:$0xff]  ;;  %s2323_s24 = sshll.u32 %s3447_s22, 7 }
  0xab   : > { %3361 = vsyncadd (%p5067_p0), [#allocation9], 4294963200  ;;  %v445_v1 = vunpack.c.l.s4 %v3394_v0  ;;  %v2591_v6 = vpack.c.bf16 %v363_v4, %v362_v3  ;;  %v365_v7 = vld [vmem:[#allocation8 + $0x18] sm:$0xff]  ;;  %v366_v9 = vld [vmem:[#allocation8 + $0x20] sm:$0xff]  ;;  %s347_s27 = scalar_lea.vmem [#allocation11], %s2290_s7  ;;  %s4900_s25 = scalar_lea.hbm %s4949_s5, %s2323_s24 }
  0xac   : > { %v2595_v8 = vpack.c.bf16 %v365_v7, %v364_v5  ;;  %v367_v10 = vld [vmem:[#allocation8 + $0x28] sm:$0xff]  ;;  %v448_v12 = vshrl.u32 %v447_v2, 7  ;;  %v378_v13 = vld [vmem:[#allocation10] sm:$0xff]  ;;  %v368_v15 = vld [vmem:[#allocation8 + $0x30] sm:$0xff]  ;;  %s2156_s0 = sshll.u32 %s347_s27, 4  ;;  %p5259_p8 = scmp.ne.s32.totalorder %s5054_s30, 0  ;;  %s4902_s0 = int_to_ptr.vmem [resolvable:$true] %s2156_s0 }
  0xad   : > { %v446_v11 = vunpack.c.0.s8 %v445_v1  ;;  %2592 = vmatprep.subr.bf16.mxu0 %v2591_v6  ;;  %v2599_v14 = vpack.c.bf16 %v367_v10, %v366_v9  ;;  %v379_v16 = vld [vmem:[#allocation10 + $0x8] sm:$0xff]  ;;  %v369_v17 = vld [vmem:[#allocation8 + $0x38] sm:$0xff]  ;;  %v380_v19 = vld [vmem:[#allocation10 + $0x10] sm:$0xff]  ;;  %s3302_s28 = scalar_lea.vmem %s4902_s0, 128  ;;  %s3395_s22 = smov [#allocation11]  }
  0xae   : > { %2594 = vmatpush3.bf16.msra.mxu0 %v2591_v6  ;;  %v3653_v18 = vpack.c.bf16 %v379_v16, %v378_v13  ;;  %v381_v20 = vld [vmem:[#allocation10 + $0x18] sm:$0xff]  ;;  %v2603_v26 = vpack.c.bf16 %v369_v17, %v368_v15  ;;  %v382_v27 = vld [vmem:[#allocation10 + $0x20] sm:$0xff]  ;;  %v383_v28 = vld [vmem:[#allocation10 + $0x28] sm:$0xff]  ;;  %v3668_v33 = vsub.s32 0, %v448_v12  ;;  %p3303_p7 = scmp.ne.s32.totalorder %s4902_s0, %s3302_s28  ;;  %s3306_s7 = sshll.u32 %s3395_s22, 4  ;;  %s3307_s7 = int_to_ptr.vmem [resolvable:$false] %s3306_s7 }
  0xaf   : > { %2596 = vmatprep.subr.bf16.mxu0 %v2595_v8  ;;  %v3655_v21 = vsub.s32 %v446_v11, %v448_v12  ;;  %v3657_v22 = vpack.c.bf16 %v381_v20, %v380_v19  ;;  %v360_v23 = vld [vmem:[#allocation7 + $0x2] sm:$0xff]  ;;  %v370_v29 = vld [vmem:[#allocation8 + $0x40] sm:$0xff]  ;;  %v371_v30 = vld [vmem:[#allocation8 + $0x48] sm:$0xff]  ;;  %v3670_v34 = vpack.c.bf16 %v383_v28, %v382_v27  ;;  %s3308_s8 = scalar_lea.vmem %s3307_s7, 256  ;;  %p3309_p1 = scmp.lt.s32.totalorder %s4902_s0, %s3307_s7 }
  0xb0   : > { %2624 = vmatprep.subr.bf16.mxu1 %v3653_v18  ;;  %v443_v24 = vcombine.high %v360_v23, %v360_v23  ;;  %v384_v35 = vld [vmem:[#allocation10 + $0x30] sm:$0xff]  ;;  %v385_v36 = vld [vmem:[#allocation10 + $0x38] sm:$0xff]  ;;  %v2607_v41 = vpack.c.bf16 %v371_v30, %v370_v29  ;;  %v386_v48 = vld [vmem:[#allocation10 + $0x40] sm:$0xff]  ;;  %p3304_p9 = pnand %p3303_p7, %p5259_p8  ;;  %p3310_p2 = scmp.lt.s32.totalorder %s3308_s8, %s3302_s28 }
  0xb1   : > { %v3661_v25 = vrot.slane %v360_v23, %v3655_v21  ;;  %2626 = vmatpush3.bf16.msra.mxu1 %v3653_v18  ;;  %v372_v42 = vld [vmem:[#allocation8 + $0x50] sm:$0xff]  ;;  %v373_v43 = vld [vmem:[#allocation8 + $0x58] sm:$0xff]  ;;  %v3686_v46 = vpack.c.bf16 %v385_v36, %v384_v35  ;;  %v387_v49 = vld [vmem:[#allocation10 + $0x48] sm:$0xff] }
  0xb2   : > { %2598 = vmatpush3.bf16.msra.mxu0 %v2595_v8  ;;  %2628 = vmatprep.subr.bf16.mxu1 %v3657_v22  ;;  %v457_v31 = vrot.slane %v443_v24, %v3655_v21  ;;  %v3690_v50 = vld.sshfl [vmem:[#allocation7 + $0xa] sm:$0x33 pattern:$0x75316420]  ;;  %v2611_v51 = vpack.c.bf16 %v373_v43, %v372_v42  ;;  %v418_v52 = vld [vmem:[%s3629_s9 + $0xc0] sm:$0xff]  ;;  %v419_v55 = vld [vmem:[%s3629_s9 + $0xc8] sm:$0xff]  ;;  %v3701_v60 = vpack.c.bf16 %v387_v49, %v386_v48  ;;  %p3305_p10 = pneg %p3304_p9  ;;  %p3311_p5 = por %p3310_p2, %p3309_p1 }
  0xb3   : > { %2600 = vmatprep.subr.bf16.mxu0 %v2599_v14  ;;  %v466_v32 = vrot.slane %v3661_v25, %v3655_v21  ;;  %v420_v56 = vld [vmem:[%s3629_s9 + $0xd0] sm:$0xff]  ;;  %v374_v57 = vld [vmem:[#allocation8 + $0x60] sm:$0xff]  ;;  %v375_v58 = vld [vmem:[#allocation8 + $0x68] sm:$0xff]  ;;  %v3705_v63 = vrot.slane %v3690_v50, %v3655_v21  ;;  %v458_v5 = vcombine.high %v3661_v25, %v3661_v25 }
  0xb4   : > { %v459_v37 = vcombine.high %v457_v31, %v457_v31  ;;  %v3673_v38 = vrot.slane %v457_v31, %v3655_v21  ;;  %v421_v59 = vld [vmem:[%s3629_s9 + $0xd8] sm:$0xff]  ;;  %v388_v61 = vld [vmem:[#allocation10 + $0x50] sm:$0xff]  ;;  %v422_v3 = vld [vmem:[%s3629_s9 + $0xe0] sm:$0xff]  ;;  %v2615_v6 = vpack.c.bf16 %v375_v58, %v374_v57  ;;  %p3312_p11 = pnand %p3311_p5, %p3305_p10 }
  0xb5   : > { %v488_v39 = vcombine.high %v466_v32, %v466_v32  ;;  %v3676_v40 = vrot.slane %v466_v32, %v3668_v33  ;;  %2630 = vmatpush3.bf16.msra.mxu1 %v3657_v22  ;;  %v389_v62 = vld [vmem:[#allocation10 + $0x58] sm:$0xff]  ;;  %v423_v4 = vld [vmem:[%s3629_s9 + $0xe8] sm:$0xff]  ;;  %v376_v7 = vld [vmem:[#allocation8 + $0x70] sm:$0xff]  ;;  %v826_v20 = vrot.slane %v3705_v63, %v3668_v33  ;;  %v480_v28 = vrot.slane %v458_v5, %v3655_v21 }
  0xb6   : > { %2602 = vmatpush3.bf16.msra.mxu0 %v2599_v14  ;;  %v3680_v44 = vrot.slane %v459_v37, %v3655_v21  ;;  %2632 = vmatprep.subr.bf16.mxu1 %v3670_v34  ;;  %v789_v47 = vcombine.high %v3673_v38, %v3673_v38  ;;  %v377_v8 = vld [vmem:[#allocation8 + $0x78] sm:$0xff]  ;;  %v424_v11 = vld [vmem:[%s3629_s9 + $0xf0] sm:$0xff]  ;;  %v3726_v15 = vpack.c.bf16 %v389_v62, %v388_v61  ;;  %v390_v23 = vld [vmem:[#allocation10 + $0x60] sm:$0xff] }
  0xb7   : > { %2604 = vmatprep.subr.bf16.mxu0 %v2603_v26  ;;  %v3683_v45 = vrot.slane %v488_v39, %v3668_v33  ;;  %v391_v24 = vld [vmem:[#allocation10 + $0x68] sm:$0xff]  ;;  %v426_v27 = vld [vmem:[%s3629_s9 + $0x100] sm:$0xff]  ;;  %v2619_v29 = vpack.c.bf16 %v377_v8, %v376_v7  ;;  %v392_v39 = vld [vmem:[#allocation10 + $0x70] sm:$0xff]  ;;  %v489_v48 = vcombine.high %v480_v28, %v480_v28 }
  0xb8   : > { %v790_v53 = vcombine.high %v3680_v44, %v3680_v44  ;;  %v818_v54 = vrot.slane %v789_v47, %v3668_v33  ;;  %v3743_v31 = vpack.c.bf16 %v391_v24, %v390_v23  ;;  %v3748_v36 = vadd.f32 %v826_v20, %v426_v27  ;;  %v427_v37 = vld [vmem:[%s3629_s9 + $0x108] sm:$0xff]  ;;  %v428_v43 = vld [vmem:[%s3629_s9 + $0x110] sm:$0xff]  ;;  %v429_v49 = vld [vmem:[%s3629_s9 + $0x118] sm:$0xff] }
  0xb9   : > { %2634 = vmatpush3.bf16.msra.mxu1 %v3670_v34  ;;  %v798_v47 = vcombine.high %v3690_v50, %v3690_v50  ;;  %v505_v50 = vrot.slane %v489_v48, %v3668_v33  ;;  %v3771_v57 = vadd.f32 %v826_v20, %v428_v43  ;;  %v430_v58 = vld [vmem:[%s3629_s9 + $0x120] sm:$0xff]  ;;  %v3775_v61 = vadd.f32 %v826_v20, %v429_v49  ;;  %v408_v27 = vld [vmem:[%s3629_s9 + $0x70] sm:$0xff] }
  0xba   : > { %2606 = vmatpush3.bf16.msra.mxu0 %v2603_v26  ;;  %2636 = vmatprep.subr.bf16.mxu1 %v3686_v46  ;;  %v3707_v0 = vadd.f32 %v818_v54, %v418_v52  ;;  %v3709_v1 = vadd.f32 %v818_v54, %v419_v55  ;;  %v3711_v2 = vadd.f32 %v818_v54, %v420_v56  ;;  %v425_v26 = vld [vmem:[%s3629_s9 + $0xf8] sm:$0xff]  ;;  %v406_v55 = vld [vmem:[%s3629_s9 + $0x60] sm:$0xff] }
  0xbb   : > { %2608 = vmatprep.subr.bf16.mxu0 %v2607_v41  ;;  %v3717_v9 = vadd.f32 %v818_v54, %v421_v59  ;;  %v822_v10 = vrot.slane %v790_v53, %v3668_v33  ;;  %5071 = vst [vmem:[#allocation25_spill] sm:$0xff] %v3748_v36  ;;  %v3760_v52 = vadd.f32 %v826_v20, %v427_v37  ;;  %5073 = vst [vmem:[#allocation27_spill] sm:$0xff] %v3771_v57  ;;  %v432_v20 = vld [vmem:[%s3629_s9 + $0x130] sm:$0xff]  ;;  %v434_v43 = vld [vmem:[%s3629_s9 + $0x140] sm:$0xff] }
  0xbc   : > { %v869_v12 = vmul.f32 1.442695, %v3707_v0  ;;  %v871_v13 = vmul.f32 1.442695, %v3709_v1  ;;  %v873_v14 = vmul.f32 1.442695, %v3711_v2  ;;  %v3766_v54 = vrot.slane %v798_v47, %v3655_v21 }
  0xbd   : > { %2638 = vmatpush3.bf16.msra.mxu1 %v3686_v46  ;;  %v875_v16 = vmul.f32 1.442695, %v3717_v9  ;;  %v3729_v17 = vadd.f32 %v822_v10, %v422_v3  ;;  %v3731_v19 = vadd.f32 %v822_v10, %v423_v4  ;;  %v3735_v25 = vadd.f32 %v822_v10, %v424_v11  ;;  %5072 = vst [vmem:[#allocation26_spill] sm:$0xff] %v3760_v52  ;;  %v431_v21 = vld [vmem:[%s3629_s9 + $0x128] sm:$0xff] }
  0xbe   : > { %2610 = vmatpush3.bf16.msra.mxu0 %v2607_v41  ;;  %2640 = vmatprep.subr.bf16.mxu1 %v3701_v60  ;;  %2804 = vpow2.f32 %v869_v12  ;;  %v3746_v35 = vadd.f32 %v822_v10, %v425_v26  ;;  %v393_v41 = vld [vmem:[#allocation10 + $0x78] sm:$0xff]  ;;  %v885_v59 = vmul.f32 1.442695, %v3748_v36  ;;  %5074 = vst [vmem:[#allocation28_spill] sm:$0xff] %v3775_v61  ;;  %v830_v62 = vrot.slane %v3766_v54, %v3668_v33 }
  0xbf   : > { %2612 = vmatprep.subr.bf16.mxu0 %v2611_v51  ;;  %5068 = vst [vmem:[#allocation22_spill] sm:$0xff] %v3729_v17  ;;  %5069 = vst [vmem:[#allocation23_spill] sm:$0xff] %v3735_v25  ;;  %2806 = vpow2.f32 %v871_v13  ;;  %v877_v30 = vmul.f32 1.442695, %v3729_v17  ;;  %v879_v32 = vmul.f32 1.442695, %v3731_v19  ;;  %v3763_v53 = vpack.c.bf16 %v393_v41, %v392_v39 }
  0xc0   : > { %2808 = vpow2.f32 %v873_v14  ;;  %5070 = vst [vmem:[#allocation24_spill] sm:$0xff] %v3746_v35  ;;  %v881_v42 = vmul.f32 1.442695, %v3735_v25  ;;  %v883_v56 = vmul.f32 1.442695, %v3746_v35  ;;  %v3781_v3 = vadd.f32 %v505_v50, %v406_v55 }
  0xc1   : > { %2642 = vmatpush3.bf16.msra.mxu1 %v3701_v60  ;;  %2810 = vpow2.f32 %v875_v16  ;;  %v887_v5 = vmul.f32 1.442695, %v3760_v52  ;;  %v889_v8 = vmul.f32 1.442695, %v3771_v57  ;;  %v891_v11 = vmul.f32 1.442695, %v3775_v61 }
  0xc2   : > { %2614 = vmatpush3.bf16.msra.mxu0 %v2611_v51  ;;  %2644 = vmatprep.subr.bf16.mxu1 %v3726_v15  ;;  %2812 = vpow2.f32 %v877_v30  ;;  %v3758_v51 = vrot.slane %v480_v28, %v3668_v33  ;;  %v3798_v12 = vadd.f32 %v830_v62, %v431_v21  ;;  %v4961_v14 = vclamps-f32 %v3781_v3, 11.512916  ;;  %v407_v16 = vld [vmem:[%s3629_s9 + $0x68] sm:$0xff]  ;;  %v409_v28 = vld [vmem:[%s3629_s9 + $0x78] sm:$0xff]  ;;  %v416_v61 = vld [vmem:[%s3629_s9 + $0xb0] sm:$0xff] }
  0xc3   : > { %2616 = vmatprep.subr.bf16.mxu0 %v2615_v6  ;;  %2814 = vpow2.f32 %v879_v32  ;;  %v813_v23 = vcombine.high %v3705_v63, %v3705_v63  ;;  %v3821_v30 = vadd.f32 %v830_v62, %v432_v20  ;;  %v433_v32 = vld [vmem:[%s3629_s9 + $0x138] sm:$0xff]  ;;  %v3829_v41 = vadd.f32 %v505_v50, %v408_v27  ;;  %v439_v57 = vld [vmem:[%s3629_s9 + $0x168] sm:$0xff] }
  0xc4   : > { %2816 = vpow2.f32 %v881_v42  ;;  %5076 = vst [vmem:[#allocation30_spill] sm:$0xff] %v3798_v12  ;;  %v895_v63 = vmul.f32 1.442695, %v3798_v12  ;;  %v616_v39 = vmul.f32 1.442695, %v4961_v14  ;;  %v3831_v42 = vadd.f32 %v505_v50, %v409_v28  ;;  %v410_v28 = vld [vmem:[%s3629_s9 + $0x80] sm:$0xff] }
  0xc5   : > { %2646 = vmatpush3.bf16.msra.mxu1 %v3726_v15  ;;  %2818 = vpow2.f32 %v883_v56  ;;  %5077 = vst [vmem:[#allocation31_spill] sm:$0xff] %v3821_v30  ;;  %v834_v47 = vrot.slane %v813_v23, %v3668_v33  ;;  %v897_v55 = vmul.f32 1.442695, %v3821_v30  ;;  %v3840_v56 = vadd.f32 %v830_v62, %v433_v32 }
  0xc6   : > { %2618 = vmatpush3.bf16.msra.mxu0 %v2615_v6  ;;  %2648 = vmatprep.subr.bf16.mxu1 %v3743_v31  ;;  %v3788_v6 = vadd.f32 %v830_v62, %v430_v58  ;;  %2820 = vpow2.f32 %v885_v59  ;;  %v4958_v58 = vclamps-f32 %v3831_v42, 11.512916 }
  0xc7   : > { %2620 = vmatprep.subr.bf16.mxu0 %v2619_v29  ;;  %2822 = vpow2.f32 %v887_v5  ;;  %5078 = vst [vmem:[#allocation32_spill] sm:$0xff] %v3840_v56  ;;  %v3848_v21 = vadd.f32 %v834_v47, %v434_v43  ;;  %v435_v5 = vld [vmem:[%s3629_s9 + $0x148] sm:$0xff]  ;;  %v509_v43 = vrot.slane %v3673_v38, %v3668_v33 }
  0xc8   : > { %v3784_v4 = vpop.eup %2804  ;;  %5075 = vst [vmem:[#allocation29_spill] sm:$0xff] %v3788_v6  ;;  %v893_v26 = vmul.f32 1.442695, %v3788_v6  ;;  %2824 = vpow2.f32 %v889_v8  ;;  %v622_v23 = vmul.f32 1.442695, %v4958_v58  ;;  %v3864_v27 = vadd.f32 %v834_v47, %v435_v5 }
  0xc9   : > { %2650 = vmatpush3.bf16.msra.mxu1 %v3743_v31  ;;  %v3790_v7 = vpop.eup %2806  ;;  %2455 = vmatprep.mubr.f32.mxu0 %v3784_v4  ;;  %2826 = vpow2.f32 %v891_v11  ;;  %5079 = vst [vmem:[#allocation33_spill] sm:$0xff] %v3848_v21  ;;  %v436_v11 = vld [vmem:[%s3629_s9 + $0x150] sm:$0xff] }
  0xca   : > { %2622 = vmatpush3.bf16.msra.mxu0 %v2619_v29  ;;  %2652 = vmatprep.subr.bf16.mxu1 %v3763_v53  ;;  %v3794_v10 = vpop.eup %2808  ;;  %v3819_v29 = vadd.f32 %v505_v50, %v407_v16  ;;  %2828 = vpow2.f32 %v893_v26  ;;  %v4959_v50 = vclamps-f32 %v3829_v41, 11.512916  ;;  %v437_v16 = vld [vmem:[%s3629_s9 + $0x158] sm:$0xff]  ;;  %v899_v26 = vmul.f32 1.442695, %v3840_v56  ;;  %5081 = vst [vmem:[#allocation35_spill] sm:$0xff] %v3864_v27 }
  0xcb   : > { %2656 = vmatprep.subr.bf16.mxu0 %v3653_v18  ;;  %v3800_v13 = vpop.eup %2810  ;;  %2830 = vpow2.f32 %v895_v63  ;;  %v411_v63 = vld [vmem:[%s3629_s9 + $0x88] sm:$0xff]  ;;  %v903_v58 = vmul.f32 1.442695, %v3864_v27 }
  0xcc   : > { %v3809_v24 = vpop.eup %2812  ;;  %v4960_v49 = vclamps-f32 %v3819_v29, 11.512916  ;;  %2832 = vpow2.f32 %v616_v39  ;;  %v620_v62 = vmul.f32 1.442695, %v4959_v50  ;;  %v901_v39 = vmul.f32 1.442695, %v3848_v21 }
  0xcd   : > { %2456 = vmatmul.mubr.f32.vlgmr.msra.gmra.mrb[0].mxu0 %v3790_v7  ;;  %2654 = vmatpush3.bf16.msra.mxu1 %v3763_v53  ;;  %v3824_v37 = vpop.eup %2814  ;;  %v3887_v14 = vadd.f32 %v509_v43, %v411_v63  ;;  %v814_v63 = vcombine.high %v3766_v54, %v3766_v54 }
  0xce   : > { %2458 = vmatprep.mubr.f32.mxu0 %v3794_v10  ;;  %2658 = vmatpush3.bf16.msra.mxu0 %v3653_v18  ;;  %v3835_v48 = vpop.eup %2816  ;;  %v618_v59 = vmul.f32 1.442695, %v4960_v49  ;;  %v3885_v49 = vadd.f32 %v509_v43, %v410_v28  ;;  %v413_v28 = vld [vmem:[%s3629_s9 + $0x98] sm:$0xff] }
  0xcf   : > { %2687 = vmatprep.subr.bf16.mxu1 %v3653_v18  ;;  %2660 = vmatprep.subr.bf16.mxu0 %v3657_v22  ;;  %v3851_v8 = vpop.eup %2818  ;;  %5087 = vst [vmem:[#allocation41_spill] sm:$0xff] %v3887_v14  ;;  %v3914_v54 = vadd.f32 %v509_v43, %v413_v28 }
  0xd0   : > { %v3858_v20 = vpop.eup %2820  ;;  %2834 = vpow2.f32 %v618_v59  ;;  %v3875_v59 = vadd.f32 %v834_v47, %v436_v11  ;;  %5086 = vst [vmem:[#allocation40_spill] sm:$0xff] %v3885_v49  ;;  %v412_v11 = vld [vmem:[%s3629_s9 + $0x90] sm:$0xff] }
  0xd1   : > { %2459 = vmatmul.mubr.f32.gmra.mrb[2].mxu0 %v3800_v13  ;;  %5080 = vst [vmem:[#allocation34_spill] sm:$0xff] %v3858_v20  ;;  %2836 = vpow2.f32 %v897_v55  ;;  %v3869_v32 = vpop.eup %2822  ;;  %v3877_v55 = vadd.f32 %v834_v47, %v437_v16  ;;  %v4965_v16 = vclamps-f32 %v3885_v49, 11.512916  ;;  %5091 = vst [vmem:[#allocation45_spill] sm:$0xff] %v3914_v54  ;;  %v5099_v36 = vclamps-f32 %v3914_v54, 11.512916 }
  0xd2   : > { %2461 = vmatprep.mubr.f32.mxu0 %v3809_v24  ;;  %2662 = vmatpush3.bf16.msra.mxu0 %v3657_v22  ;;  %5082 = vst [vmem:[#allocation36_spill] sm:$0xff] %v3875_v59  ;;  %v3879_v5 = vpop.eup %2824  ;;  %2838 = vpow2.f32 %v620_v62  ;;  %v905_v38 = vmul.f32 1.442695, %v3875_v59 }
  0xd3   : > { %2664 = vmatprep.subr.bf16.mxu0 %v3670_v34  ;;  %5083 = vst [vmem:[#allocation37_spill] sm:$0xff] %v3877_v55  ;;  %5084 = vst [vmem:[#allocation38_spill] sm:$0xff] %v3879_v5  ;;  %v3883_v50 = vpop.eup %2826  ;;  %2840 = vpow2.f32 %v622_v23  ;;  %v907_v47 = vmul.f32 1.442695, %v3877_v55  ;;  %v4966_v23 = vclamps-f32 %v3887_v14, 11.512916  ;;  %v3909_v55 = vadd.f32 %v509_v43, %v412_v11 }
  0xd4   : > { %5085 = vst [vmem:[#allocation39_spill] sm:$0xff] %v3883_v50  ;;  %2842 = vpow2.f32 %v899_v26  ;;  %v3894_v62 = vpop.eup %2828  ;;  %v624_v59 = vmul.f32 1.442695, %v4965_v16  ;;  %v414_v14 = vld [vmem:[%s3629_s9 + $0xa0] sm:$0xff] }
  0xd5   : > { %2462 = vmatmul.mubr.f32.gmra.mrb[4].mxu0 %v3824_v37  ;;  %5088 = vst [vmem:[#allocation42_spill] sm:$0xff] %v3894_v62  ;;  %2844 = vpow2.f32 %v901_v39  ;;  %v3903_v26 = vpop.eup %2830  ;;  %v626_v39 = vmul.f32 1.442695, %v4966_v23  ;;  %5090 = vst [vmem:[#allocation44_spill] sm:$0xff] %v3909_v55  ;;  %v3927_v23 = vld [vmem:[%s3639_s12] sm:$0xff] }
  0xd6   : > { %2464 = vmatprep.mubr.f32.mxu0 %v3835_v48  ;;  %2666 = vmatpush3.bf16.msra.mxu0 %v3670_v34  ;;  %2846 = vpow2.f32 %v903_v58  ;;  %5089 = vst [vmem:[#allocation43_spill] sm:$0xff] %v3903_v26  ;;  %v3912_v21 = vpop.eup %2832  ;;  %v350_v28 = vunpack.c.0.s8 %v3927_v23  ;;  %v351_v56 = vunpack.c.1.s8 %v3927_v23  ;;  %v5096_v6 = vclamps-f32 %v3909_v55, 11.512916 }
  0xd7   : > { %2668 = vmatprep.subr.bf16.mxu0 %v3686_v46  ;;  %2848 = vpow2.f32 %v905_v38  ;;  %v652_v16 = vadd.f32 1.0, %v3912_v21  ;;  %v3922_v38 = vrot.slane %v814_v63, %v3668_v33 }
  0xd8   : > { %2850 = vpow2.f32 %v907_v47  ;;  %v438_v47 = vld [vmem:[%s3629_s9 + $0x160] sm:$0xff]  ;;  %v628_v12 = vmul.f32 1.442695, %v5096_v6 }
  0xd9   : > { %2465 = vmatmul.mubr.f32.gmra.mrb[6].mxu0 %v3851_v8  ;;  %2852 = vpow2.f32 %v624_v59  ;;  %v3935_v59 = vrot.slane %v3680_v44, %v3668_v33  ;;  %v3951_v44 = vadd.f32 %v3922_v38, %v438_v47 }
  0xda   : > { %2467 = vmatprep.mubr.f32.mxu0 %v3858_v20  ;;  %2670 = vmatpush3.bf16.msra.mxu0 %v3686_v46  ;;  %v3917_v58 = vpop.eup %2834  ;;  %2854 = vpow2.f32 %v626_v39 }
  0xdb   : > { %2672 = vmatprep.subr.bf16.mxu0 %v3701_v60  ;;  %v3924_v11 = vpop.eup %2836  ;;  %v653_v43 = vadd.f32 1.0, %v3917_v58  ;;  %2856 = vlog2.f32 %v652_v16  ;;  %5093 = vst [vmem:[#allocation47_spill] sm:$0xff] %v3951_v44  ;;  %v3967_v47 = vadd.f32 %v3935_v59, %v414_v14  ;;  %v3982_v14 = vcvt.s32.f32 %v350_v28 }
  0xdc   : > { %5092 = vst [vmem:[#allocation46_spill] sm:$0xff] %v3924_v11  ;;  %v3938_v63 = vpop.eup %2838  ;;  %2858 = vrcp.f32 %v652_v16  ;;  %v415_v16 = vld [vmem:[%s3629_s9 + $0xa8] sm:$0xff]  ;;  %v909_v55 = vmul.f32 1.442695, %v3951_v44  ;;  %v3996_v54 = vadd.f32 %v3935_v59, %v416_v61  ;;  %v5105_v44 = vclamps-f32 %v3781_v3, 11.512916 }
  0xdd   : > { %2468 = vmatmul.mubr.f32.gmra.mrb[8].mxu0 %v3869_v32  ;;  %v3943_v39 = vpop.eup %2840  ;;  %2860 = vlog2.f32 %v653_v43  ;;  %v3948_v33 = vadd.f32 1.0, %v3938_v63  ;;  %5097 = vst [vmem:[#allocation50_spill] sm:$0xff] %v3967_v47 }
  0xde   : > { %2470 = vmatprep.mubr.f32.mxu0 %v3879_v5  ;;  %2674 = vmatpush3.bf16.msra.mxu0 %v3701_v60  ;;  %v3954_v27 = vpop.eup %2842  ;;  %2862 = vrcp.f32 %v653_v43  ;;  %v3958_v49 = vadd.f32 1.0, %v3943_v39  ;;  %5104 = vst [vmem:[#allocation56_spill] sm:$0xff] %v3996_v54 }
  0xdf   : > { %2676 = vmatprep.subr.bf16.mxu0 %v3726_v15  ;;  %5094 = vst [vmem:[#allocation48_spill] sm:$0xff] %v3954_v27  ;;  %v3960_v30 = vpop.eup %2844  ;;  %2864 = vrcp.f32 %v3948_v33 }
  0xe0   : > { %5095 = vst [vmem:[#allocation49_spill] sm:$0xff] %v3960_v30  ;;  %v3971_v43 = vpop.eup %2846  ;;  %2866 = vrcp.f32 %v3958_v49 }
  0xe1   : > { %2471 = vmatmul.mubr.f32.gmra.mrb[10].mxu0 %v3883_v50  ;;  %5098 = vst [vmem:[#allocation51_spill] sm:$0xff] %v3971_v43  ;;  %v3980_v6 = vpop.eup %2848  ;;  %v4000_v50 = vcvt.s32.f32 %v351_v56  ;;  %2868 = vpow2.f32 %v628_v12  ;;  %v5107_v12 = vclamps-f32 %v3819_v29, 11.512916 }
  0xe2   : > { %2473 = vmatprep.mubr.f32.mxu0 %v3894_v62  ;;  %2678 = vmatpush3.bf16.msra.mxu0 %v3726_v15  ;;  %v3977_v62 = vadd.f32 %v3935_v59, %v415_v16  ;;  %5101 = vst [vmem:[#allocation53_spill] sm:$0xff] %v3980_v6  ;;  %v3987_v5 = vpop.eup %2850  ;;  %v441_v16 = vld [vmem:[%s3629_s9 + $0x178] sm:$0xff] }
  0xe3   : > { %2680 = vmatprep.subr.bf16.mxu0 %v3743_v31  ;;  %5102 = vst [vmem:[#allocation54_spill] sm:$0xff] %v3987_v5  ;;  %v3998_v28 = vpop.eup %2852  ;;  %v4029_v25 = vadd.f32 %v3922_v38, %v441_v16 }
  0xe4   : > { %5100 = vst [vmem:[#allocation52_spill] sm:$0xff] %v3977_v62  ;;  %v4013_v61 = vadd.f32 1.0, %v3998_v28 }
  0xe5   : > { %2474 = vmatmul.mubr.f32.gmra.mrb[12].mxu0 %v3903_v26  ;;  %v440_v26 = vld [vmem:[%s3629_s9 + $0x170] sm:$0xff]  ;;  %5109 = vst [vmem:[#allocation59_spill] sm:$0xff] %v4029_v25 }
  0xe6   : > { %2476 = vmatprep.mubr.f32.mxu0 %v3924_v11  ;;  %2682 = vmatpush3.bf16.msra.mxu0 %v3743_v31  ;;  %v630_v11 = vmul.f32 1.442695, %v5099_v36  ;;  %v3992_v36 = vadd.f32 %v3922_v38, %v439_v57  ;;  %v4010_v57 = vpop.eup %2854  ;;  %v4017_v20 = vadd.f32 %v3922_v38, %v440_v26 }
  0xe7   : > { %2684 = vmatprep.subr.bf16.mxu0 %v3763_v53  ;;  %v2857_v3 = vpop.eup %2856  ;;  %v4026_v52 = vadd.f32 1.0, %v4010_v57 }
  0xe8   : > { %5103 = vst [vmem:[#allocation55_spill] sm:$0xff] %v3992_v36  ;;  %2870 = vpow2.f32 %v630_v11  ;;  %5106 = vst [vmem:[#allocation57_spill] sm:$0xff] %v4017_v20  ;;  %v2859_v11 = vpop.eup %2858  ;;  %v4031_v56 = vmul.f32 0.6931472, %v2857_v3  ;;  %v911_v26 = vmul.f32 1.442695, %v3992_v36 }
  0xe9   : > { %2477 = vmatmul.mubr.f32.gmra.mrb[14].mxu0 %v3954_v27  ;;  %v4005_v27 = vmul.f32 %v5105_v44, %v3982_v14  ;;  %v4022_v44 = vmul.f32 %v5107_v12, %v4000_v50  ;;  %2872 = vpow2.f32 %v909_v55  ;;  %v1515_v35 = vmul.f32 %v2859_v11, %v3912_v21 }
  0xea   : > { %2479 = vmatprep.mubr.f32.mxu0 %v3960_v30  ;;  %v417_v30 = vld [vmem:[%s3629_s9 + $0xb8] sm:$0xff]  ;;  %2686 = vmatpush3.bf16.msra.mxu0 %v3763_v53  ;;  %2874 = vrcp.f32 %v4013_v61  ;;  %v5111_v55 = vclamps-f32 %v3967_v47, 11.512916  ;;  %v5113_v36 = vclamps-f32 %v3977_v62, 11.512916 }
  0xeb   : > { %5108 = vst [vmem:[#allocation58_spill] sm:$0xff] %v4022_v44  ;;  %v4037_v12 = vadd.f32 %v3935_v59, %v417_v30  ;;  %v913_v30 = vmul.f32 1.442695, %v4017_v20  ;;  %v1538_v59 = vmax.f32 %v1515_v35, 1e-05  ;;  %2876 = vrcp.f32 %v4026_v52 }
  0xec   : > { %v632_v38 = vmul.f32 1.442695, %v5111_v55  ;;  %v634_v29 = vmul.f32 1.442695, %v5113_v36  ;;  %v915_v21 = vmul.f32 1.442695, %v4029_v25  ;;  %2878 = vpow2.f32 %v911_v26 }
  0xed   : > { %2480 = vmatmul.mubr.f32.gmra.mrb[16].mxu0 %v3971_v43  ;;  %5110 = vst [vmem:[#allocation60_spill] sm:$0xff] %v4037_v12  ;;  %v2861_v43 = vpop.eup %2860  ;;  %v5006_v36 = vclamps-f32 %v4037_v12, 11.512916  ;;  %v4059_v62 = vmin.f32 %v1538_v59, 0.99999 }
  0xee   : > { %2482 = vmatprep.mubr.f32.mxu0 %v3980_v6  ;;  %v2863_v16 = vpop.eup %2862  ;;  %v4045_v6 = vmul.f32 0.6931472, %v2861_v43  ;;  %v5114_v43 = vclamps-f32 %v3996_v54, 11.512916  ;;  %2880 = vpow2.f32 %v632_v38 }
  0xef   : > { %v1517_v17 = vmul.f32 %v2863_v16, %v3917_v58  ;;  %v2865_v11 = vpop.eup %2864  ;;  %2882 = vpow2.f32 %v634_v29  ;;  %2523 = vmatprep.mubr.f32.mxu1 %v4059_v62 }
  0xf0   : > { %5112 = vst [vmem:[#allocation61_spill] sm:$0xff] %v4045_v6  ;;  %v636_v3 = vmul.f32 1.442695, %v5114_v43  ;;  %v1519_v58 = vmul.f32 %v2865_v11, %v3938_v63  ;;  %v2867_v16 = vpop.eup %2866  ;;  %2884 = vpow2.f32 %v913_v30 }
  0xf1   : > { %2483 = vmatmul.mubr.f32.gmra.mrb[18].mxu0 %v3987_v5  ;;  %v1539_v35 = vmax.f32 %v1517_v17, 1e-05  ;;  %v2869_v47 = vpop.eup %2868  ;;  %v1521_v26 = vmul.f32 %v2867_v16, %v3943_v39  ;;  %2886 = vpow2.f32 %v915_v21  ;;  %v638_v17 = vmul.f32 1.442695, %v5006_v36 }
  0xf2   : > { %v1540_v55 = vmax.f32 %v1519_v58, 1e-05  ;;  %v2871_v43 = vpop.eup %2870  ;;  %v4066_v54 = vadd.f32 1.0, %v2869_v47  ;;  %2888 = vpow2.f32 %v636_v3 }
  0xf3   : > { %v4063_v25 = vmin.f32 %v1539_v35, 0.99999  ;;  %v4070_v63 = vpop.eup %2872  ;;  %v1541_v38 = vmax.f32 %v1521_v26, 1e-05  ;;  %v4075_v59 = vadd.f32 1.0, %v2871_v43 }
  0xf4   : > { %5115 = vst [vmem:[#allocation62_spill] sm:$0xff] %v4070_v63  ;;  %v4073_v29 = vmin.f32 %v1540_v55, 0.99999  ;;  %2890 = vrcp.f32 %v4066_v54  ;;  %2485 = vmatprep.mubr.f32.mxu0 %v4070_v63  ;;  %v2875_v39 = vpop.eup %2874 }
  0xf5   : > { %2524 = vmatmul.mubr.f32.vlgmr.msra.gmra.mrb[0].mxu1 %v4063_v25  ;;  %v4081_v30 = vmin.f32 %v1541_v38, 0.99999  ;;  %2892 = vrcp.f32 %v4075_v59  ;;  %v1523_v21 = vmul.f32 %v2875_v39, %v3998_v28  ;;  %v2877_v11 = vpop.eup %2876 }
  0xf6   : > { %5116 = vst [vmem:[#allocation63_spill] sm:$0xff] %v4073_v29  ;;  %2695 = vmatpush3.bf16.msra.mxu1 %v3653_v18  ;;  %2526 = vmatprep.mubr.f32.mxu1 %v4073_v29  ;;  %2894 = vpow2.f32 %v638_v17  ;;  %v4087_v3 = vpop.eup %2878  ;;  %v1525_v18 = vmul.f32 %v2877_v11, %v4010_v57 }
  0xf7   : > { %2688 = vmatprep.subr.bf16.mxu1 %v3657_v22  ;;  %5117 = vst [vmem:[#allocation64_spill] sm:$0xff] %v4087_v3  ;;  %v1542_v55 = vmax.f32 %v1523_v21, 1e-05  ;;  %2486 = vmatmul.mubr.f32.gmra.mrb[20].mxu0 %v4087_v3 }
  0xf8   : > { %v2881_v35 = vpop.eup %2880  ;;  %v1543_v28 = vmax.f32 %v1525_v18, 1e-05 }
  0xf9   : > { %2527 = vmatmul.mubr.f32.gmra.mrb[2].mxu1 %v4081_v30  ;;  %v2883_v58 = vpop.eup %2882  ;;  %v4093_v16 = vmin.f32 %v1542_v55, 0.99999  ;;  %v4095_v26 = vadd.f32 1.0, %v2881_v35 }
  0xfa   : > { %2696 = vmatpush3.bf16.msra.mxu1 %v3657_v22  ;;  %v4097_v17 = vpop.eup %2884  ;;  %v4099_v38 = vadd.f32 1.0, %v2883_v58  ;;  %v4104_v22 = vmin.f32 %v1543_v28, 0.99999 }
  0xfb   : > { %2689 = vmatprep.subr.bf16.mxu1 %v3670_v34  ;;  %5118 = vst [vmem:[#allocation65_spill] sm:$0xff] %v4093_v16  ;;  %5119 = vst [vmem:[#allocation66_spill] sm:$0xff] %v4095_v26  ;;  %v4101_v39 = vpop.eup %2886  ;;  %2529 = vmatprep.mubr.f32.mxu1 %v4093_v16  ;;  %2896 = vrcp.f32 %v4095_v26 }
  0xfc   : > { %5120 = vst [vmem:[#allocation67_spill] sm:$0xff] %v4097_v17  ;;  %5121 = vst [vmem:[#allocation68_spill] sm:$0xff] %v4099_v38  ;;  %2488 = vmatprep.mubr.f32.mxu0 %v4097_v17  ;;  %v2889_v57 = vpop.eup %2888  ;;  %2898 = vrcp.f32 %v4099_v38 }
  0xfd   : > { %5122 = vst [vmem:[#allocation69_spill] sm:$0xff] %v4101_v39  ;;  %5123 = vst [vmem:[#allocation70_spill] sm:$0xff] %v4104_v22  ;;  %2489 = vmatmul.mubr.f32.gmra.mrb[22].mxu0 %v4101_v39  ;;  %2530 = vmatmul.mubr.f32.gmra.mrb[4].mxu1 %v4104_v22  ;;  %v4112_v11 = vadd.f32 1.0, %v2889_v57  ;;  %v402_v39 = vld [vmem:[%s3629_s9 + $0x40] sm:$0xff] }
  0xfe   : > { %2697 = vmatpush3.bf16.msra.mxu1 %v3670_v34  ;;  %v2891_v21 = vpop.eup %2890 }
  0xff   : > { %5124 = vst [vmem:[#allocation71_spill] sm:$0xff] %v4112_v11  ;;  %2690 = vmatprep.subr.bf16.mxu1 %v3686_v46  ;;  %v2893_v55 = vpop.eup %2892  ;;  %v1527_v18 = vmul.f32 %v2891_v21, %v2869_v47  ;;  %2900 = vrcp.f32 %v4112_v11 }
 0x100   : > { %v2895_v28 = vpop.eup %2894  ;;  %v1529_v36 = vmul.f32 %v2893_v55, %v2871_v43 }
 0x101   : > { %v1544_v12 = vmax.f32 %v1527_v18, 1e-05  ;;  %v4116_v26 = vadd.f32 1.0, %v2895_v28 }
 0x102   : > { %2698 = vmatpush3.bf16.msra.mxu1 %v3686_v46  ;;  %v1545_v38 = vmax.f32 %v1529_v36, 1e-05 }
 0x103   : > { %5125 = vst [vmem:[#allocation72_spill] sm:$0xff] %v4116_v26  ;;  %2691 = vmatprep.subr.bf16.mxu1 %v3701_v60  ;;  %v4120_v34 = vmin.f32 %v1544_v12, 0.99999  ;;  %2902 = vrcp.f32 %v4116_v26 }
 0x104   : > { %v4123_v20 = vmin.f32 %v1545_v38, 0.99999 }
 0x105   : > { %5126 = vst [vmem:[#allocation73_spill] sm:$0xff] %v4120_v34  ;;  %2532 = vmatprep.mubr.f32.mxu1 %v4120_v34  ;;  %v2897_v47 = vpop.eup %2896  ;;  %v405_v34 = vld [vmem:[%s3629_s9 + $0x58] sm:$0xff] }
 0x106   : > { %5127 = vst [vmem:[#allocation74_spill] sm:$0xff] %v4123_v20  ;;  %2699 = vmatpush3.bf16.msra.mxu1 %v3701_v60  ;;  %v2899_v43 = vpop.eup %2898  ;;  %v1531_v46 = vmul.f32 %v2897_v47, %v2881_v35 }
 0x107   : > { %2533 = vmatmul.mubr.f32.gmra.mrb[6].mxu1 %v4123_v20  ;;  %2692 = vmatprep.subr.bf16.mxu1 %v3726_v15  ;;  %v1533_v36 = vmul.f32 %v2899_v43, %v2883_v58  ;;  %v394_v43 = vld [vmem:[%s3629_s9] sm:$0xff] }
 0x108   : > { %v1546_v21 = vmax.f32 %v1531_v46, 1e-05 }
 0x109   : > { %v2901_v12 = vpop.eup %2900  ;;  %v1547_v55 = vmax.f32 %v1533_v36, 1e-05  ;;  %v397_v36 = vld [vmem:[%s3629_s9 + $0x18] sm:$0xff] }
 0x10a   : > { %2700 = vmatpush3.bf16.msra.mxu1 %v3726_v15  ;;  %v4131_v38 = vmin.f32 %v1546_v21, 0.99999  ;;  %v1535_v18 = vmul.f32 %v2901_v12, %v2889_v57 }
 0x10b   : > { %2693 = vmatprep.subr.bf16.mxu1 %v3743_v31  ;;  %v4133_v60 = vmin.f32 %v1547_v55, 0.99999  ;;  %v398_v55 = vld [vmem:[%s3629_s9 + $0x20] sm:$0xff] }
 0x10c   : > { %5128 = vst [vmem:[#allocation75_spill] sm:$0xff] %v4131_v38  ;;  %2535 = vmatprep.mubr.f32.mxu1 %v4131_v38  ;;  %v1548_v35 = vmax.f32 %v1535_v18, 1e-05  ;;  %v4163_v18 = vadd.f32 %v3676_v40, %v397_v36  ;;  %v403_v38 = vld [vmem:[%s3629_s9 + $0x48] sm:$0xff] }
 0x10d   : > { %5129 = vst [vmem:[#allocation76_spill] sm:$0xff] %v4133_v60  ;;  %v2903_v26 = vpop.eup %2902  ;;  %2536 = vmatmul.mubr.f32.gmra.mrb[8].mxu1 %v4133_v60  ;;  %v404_v60 = vld [vmem:[%s3629_s9 + $0x50] sm:$0xff] }
 0x10e   : > { %2701 = vmatpush3.bf16.msra.mxu1 %v3743_v31  ;;  %v1537_v15 = vmul.f32 %v2903_v26, %v2895_v28  ;;  %v4139_v58 = vmin.f32 %v1548_v35, 0.99999  ;;  %v395_v31 = vld [vmem:[%s3629_s9 + $0x8] sm:$0xff]  ;;  %v4149_v26 = vadd.f32 %v3676_v40, %v394_v43  ;;  %v396_v28 = vld [vmem:[%s3629_s9 + $0x10] sm:$0xff]  ;;  %v4170_v43 = vadd.f32 %v3758_v51, %v398_v55 }
 0x10f   : > { %2694 = vmatprep.subr.bf16.mxu1 %v3763_v53  ;;  %v4153_v46 = vadd.f32 %v3676_v40, %v395_v31  ;;  %v4157_v21 = vadd.f32 %v3676_v40, %v396_v28  ;;  %v399_v35 = vld [vmem:[%s3629_s9 + $0x28] sm:$0xff]  ;;  %v400_v28 = vld [vmem:[%s3629_s9 + $0x30] sm:$0xff]  ;;  %v5018_v11 = vclamps-f32 %v4163_v18, 11.512916 }
 0x110   : > { %5130 = vst [vmem:[#allocation77_spill] sm:$0xff] %v4139_v58  ;;  %v1549_v57 = vmax.f32 %v1537_v15, 1e-05  ;;  %2538 = vmatprep.mubr.f32.mxu1 %v4139_v58  ;;  %v4177_v58 = vadd.f32 %v3758_v51, %v399_v35  ;;  %v4182_v36 = vadd.f32 %v3758_v51, %v400_v28 }
 0x111   : > { %v5015_v12 = vclamps-f32 %v4153_v46, 11.512916  ;;  %v5017_v15 = vclamps-f32 %v4157_v21, 11.512916  ;;  %v598_v55 = vmul.f32 1.442695, %v5018_v11 }
 0x112   : > { %2702 = vmatpush3.bf16.msra.mxu1 %v3763_v53  ;;  %v4143_v47 = vmin.f32 %v1549_v57, 0.99999  ;;  %v5014_v53 = vclamps-f32 %v4149_v26, 11.512916  ;;  %v5025_v35 = vclamps-f32 %v4182_v36, 11.512916 }
 0x113   : > { %v594_v31 = vmul.f32 1.442695, %v5015_v12  ;;  %v596_v40 = vmul.f32 1.442695, %v5017_v15  ;;  %v5022_v12 = vclamps-f32 %v4177_v58, 11.512916 }
 0x114   : > { %5131 = vst [vmem:[#allocation78_spill] sm:$0xff] %v4143_v47  ;;  %2539 = vmatmul.mubr.f32.gmra.mrb[10].mxu1 %v4143_v47  ;;  %v592_v57 = vmul.f32 1.442695, %v5014_v53  ;;  %v5021_v53 = vclamps-f32 %v4170_v43, 11.512916  ;;  %v401_v47 = vld [vmem:[%s3629_s9 + $0x38] sm:$0xff] }
 0x115   : > { %v602_v28 = vmul.f32 1.442695, %v5022_v12  ;;  %v4195_v15 = vadd.f32 %v3758_v51, %v401_v47  ;;  %s2143_s9 = scalar_lea.sflag [#allocation4], %s3625_s13 }
 0x116   : > { %2904 = vpow2.f32 %v592_v57  ;;  %v600_v57 = vmul.f32 1.442695, %v5021_v53 }
 0x117   : > { %2906 = vpow2.f32 %v594_v31  ;;  %v604_v31 = vmul.f32 1.442695, %v5025_v35  ;;  %v5031_v17 = vclamps-f32 %v4195_v15, 11.512916 }
 0x118   : > { %2908 = vpow2.f32 %v596_v40 }
 0x119   : > { %2910 = vpow2.f32 %v598_v55  ;;  %v606_v51 = vmul.f32 1.442695, %v5031_v17 }
 0x11a   : > { %2912 = vpow2.f32 %v600_v57 }
 0x11b   : > { %2914 = vpow2.f32 %v602_v28 }
 0x11c   : > { %2916 = vpow2.f32 %v604_v31  ;;  %v4207_v31 = vadd.f32 %v3683_v45, %v402_v39 }
 0x120   : > { %v2905_v40 = vpop.eup %2904 }
 0x121   : > { %v2907_v11 = vpop.eup %2906  ;;  %v640_v55 = vadd.f32 1.0, %v2905_v40  ;;  %v4210_v40 = vadd.f32 %v3683_v45, %v403_v38 }
 0x122   : > { %v2909_v53 = vpop.eup %2908  ;;  %v641_v12 = vadd.f32 1.0, %v2907_v11 }
 0x123   : > { %v2911_v47 = vpop.eup %2910  ;;  %v642_v57 = vadd.f32 1.0, %v2909_v53  ;;  %2918 = vlog2.f32 %v640_v55  ;;  %v4213_v53 = vadd.f32 %v3683_v45, %v404_v60  ;;  %v5039_v39 = vclamps-f32 %v4210_v40, 11.512916 }
 0x124   : > { %v2913_v35 = vpop.eup %2912  ;;  %2920 = vlog2.f32 %v641_v12  ;;  %v643_v28 = vadd.f32 1.0, %v2911_v47  ;;  %v4216_v12 = vadd.f32 %v3683_v45, %v405_v34 }
 0x125   : > { %2922 = vpow2.f32 %v606_v51  ;;  %v2915_v63 = vpop.eup %2914  ;;  %v644_v11 = vadd.f32 1.0, %v2913_v35  ;;  %v5036_v51 = vclamps-f32 %v4207_v31, 11.512916  ;;  %v352_v35 = vunpack.c.2.s8 %v3927_v23 }
 0x126   : > { %2924 = vlog2.f32 %v642_v57  ;;  %v2917_v17 = vpop.eup %2916  ;;  %v645_v55 = vadd.f32 1.0, %v2915_v63  ;;  %v353_v63 = vunpack.c.3.s8 %v3927_v23  ;;  %v5133_v3 = vclamps-f32 %v4213_v53, 11.512916 }
 0x127   : > { %2926 = vlog2.f32 %v643_v28  ;;  %v646_v47 = vadd.f32 1.0, %v2917_v17  ;;  %v608_v45 = vmul.f32 1.442695, %v5036_v51  ;;  %v610_v28 = vmul.f32 1.442695, %v5039_v39 }
 0x128   : > { %2928 = vlog2.f32 %v644_v11  ;;  %v4228_v17 = vcvt.s32.f32 %v352_v35  ;;  %v5132_v11 = vclamps-f32 %v4149_v26, 11.512916  ;;  %v5134_v51 = vclamps-f32 %v4153_v46, 11.512916 }
 0x129   : > { %2930 = vlog2.f32 %v645_v55  ;;  %v612_v55 = vmul.f32 1.442695, %v5133_v3  ;;  %v5135_v22 = vclamps-f32 %v4216_v12, 11.512916  ;;  %v5136_v26 = vclamps-f32 %v4157_v21, 11.512916 }
 0x12a   : > { %2932 = vlog2.f32 %v646_v47  ;;  %v712_v38 = vmul.f32 %v5132_v11, %v3982_v14  ;;  %v713_v44 = vmul.f32 %v5134_v51, %v4000_v50  ;;  %v4240_v47 = vcvt.s32.f32 %v353_v63  ;;  %v4248_v51 = vld [vmem:[#allocation7] ss:$0 sm:$0xff] }
 0x12b   : > { %v614_v39 = vmul.f32 1.442695, %v5135_v22  ;;  %2934 = vpow2.f32 %v608_v45  ;;  %v714_v3 = vmul.f32 %v5136_v26, %v4228_v17  ;;  %v5137_v46 = vclamps-f32 %v4163_v18, 11.512916 }
 0x12c   : > { %2936 = vpow2.f32 %v610_v28  ;;  %v5139_v18 = vclamps-f32 %v4177_v58, 11.512916 }
 0x12d   : > { %v2919_v57 = vpop.eup %2918  ;;  %2938 = vpow2.f32 %v612_v55  ;;  %v715_v22 = vmul.f32 %v5137_v46, %v4240_v47 }
 0x12e   : > { %v2921_v60 = vpop.eup %2920  ;;  %v665_v6 = vmul.f32 0.6931472, %v2919_v57  ;;  %2940 = vpow2.f32 %v614_v39  ;;  %v717_v39 = vmul.f32 %v5139_v18, %v4000_v50 }
 0x12f   : > { %v2923_v34 = vpop.eup %2922  ;;  %v667_v23 = vmul.f32 0.6931472, %v2921_v60 }
 0x130   : > { %v2925_v20 = vpop.eup %2924  ;;  %v647_v35 = vadd.f32 1.0, %v2923_v34  ;;  %v736_v11 = vsub.f32 %v712_v38, %v665_v6  ;;  %v5138_v34 = vclamps-f32 %v4170_v43, 11.512916 }
 0x131   : > { %v2927_v5 = vpop.eup %2926  ;;  %v669_v57 = vmul.f32 0.6931472, %v2925_v20  ;;  %v737_v16 = vsub.f32 %v713_v44, %v667_v23 }
 0x132   : > { %v2929_v60 = vpop.eup %2928  ;;  %v671_v63 = vmul.f32 0.6931472, %v2927_v5  ;;  %2942 = vlog2.f32 %v647_v35  ;;  %v716_v21 = vmul.f32 %v5138_v34, %v3982_v14  ;;  %v764_v6 = vmul.f32 %v4248_v51, %v736_v11 }
 0x133   : > { %v2931_v45 = vpop.eup %2930  ;;  %v673_v28 = vmul.f32 0.6931472, %v2929_v60  ;;  %v738_v55 = vsub.f32 %v714_v3, %v669_v57  ;;  %v765_v44 = vmul.f32 %v4248_v51, %v737_v16  ;;  %v5140_v60 = vclamps-f32 %v4182_v36, 11.512916 }
 0x134   : > { %v2933_v20 = vpop.eup %2932  ;;  %v675_v38 = vmul.f32 0.6931472, %v2931_v45  ;;  %v739_v23 = vsub.f32 %v715_v22, %v671_v63  ;;  %2944 = vlog2.f32 %v3948_v33  ;;  %v5141_v33 = vclamps-f32 %v4195_v15, 11.512916 }
 0x135   : > { %v766_v5 = vmul.f32 %v4248_v51, %v738_v55  ;;  %v2935_v35 = vpop.eup %2934  ;;  %v677_v26 = vmul.f32 0.6931472, %v2933_v20  ;;  %v740_v46 = vsub.f32 %v716_v21, %v673_v28  ;;  %v1610_v43 = vadd.f32 %v765_v44, %v764_v6 }
 0x136   : > { %v2937_v34 = vpop.eup %2936  ;;  %v767_v3 = vmul.f32 %v4248_v51, %v739_v23  ;;  %v718_v16 = vmul.f32 %v5140_v60, %v4228_v17  ;;  %v741_v11 = vsub.f32 %v717_v39, %v675_v38  ;;  %v648_v22 = vadd.f32 1.0, %v2935_v35 }
 0x137   : > { %v2939_v57 = vpop.eup %2938  ;;  %v1611_v29 = vadd.f32 %v1610_v43, %v766_v5  ;;  %v768_v63 = vmul.f32 %v4248_v51, %v740_v46  ;;  %2946 = vlog2.f32 %v3958_v49  ;;  %v649_v21 = vadd.f32 1.0, %v2937_v34 }
 0x138   : > { %v2941_v58 = vpop.eup %2940  ;;  %v742_v28 = vsub.f32 %v718_v16, %v677_v26  ;;  %2948 = vlog2.f32 %v4013_v61  ;;  %v650_v20 = vadd.f32 1.0, %v2939_v57  ;;  %v769_v36 = vmul.f32 %v4248_v51, %v741_v11 }
 0x139   : > { %v1612_v55 = vadd.f32 %v1611_v29, %v767_v3  ;;  %2950 = vlog2.f32 %v4026_v52  ;;  %v651_v6 = vadd.f32 1.0, %v2941_v58  ;;  %v719_v39 = vmul.f32 %v5141_v33, %v4240_v47 }
 0x13a   : > { %2952 = vlog2.f32 %v648_v22  ;;  %v770_v49 = vmul.f32 %v4248_v51, %v742_v28 }
 0x13b   : > { %v1613_v44 = vadd.f32 %v1612_v55, %v768_v63  ;;  %2954 = vlog2.f32 %v649_v21 }
 0x13c   : > { %v2943_v45 = vpop.eup %2942  ;;  %2956 = vlog2.f32 %v650_v20 }
 0x13d   : > { %v679_v18 = vmul.f32 0.6931472, %v2943_v45  ;;  %v1614_v29 = vadd.f32 %v1613_v44, %v769_v36  ;;  %2958 = vlog2.f32 %v651_v6  ;;  %v5144_v45 = vclamps-f32 %v3831_v42, 11.512916 }
 0x13e   : > { %v2945_v3 = vpop.eup %2944  ;;  %v4303_v44 = vsub.f32 1.0, %v4000_v50 }
 0x13f   : > { %v743_v46 = vsub.f32 %v719_v39, %v679_v18  ;;  %v1615_v43 = vadd.f32 %v1614_v29, %v770_v49  ;;  %v4289_v21 = vmul.f32 %v5144_v45, %v4240_v47 }
 0x141   : > { %v4276_v16 = vpop.eup %2946  ;;  %5145 = vst [vmem:[#allocation80_spill] sm:$0xff] %v4289_v21  ;;  %v771_v28 = vmul.f32 %v4248_v51, %v743_v46 }
 0x142   : > { %v4284_v63 = vpop.eup %2948 }
 0x143   : > { %v4292_v55 = vpop.eup %2950 }
 0x144   : > { %5146 = vst [vmem:[#allocation81_spill] sm:$0xff] %v4292_v55  ;;  %v2953_v42 = vpop.eup %2952 }
 0x145   : > { %v2955_v49 = vpop.eup %2954 }
 0x146   : > { %v2957_v29 = vpop.eup %2956 }
 0x1a0   : > { %v2457_v38 = vpop.f32.mrb[0].mxu0 }
 0x1a1   : > { %v1103_v61 = vadd.f32 %v3790_v7, %v2457_v38  ;;  %v1271_v23 = vadd.f32 1e-05, %v2457_v38  ;;  %v983_v5 = vpop.f32.mrb[1].mxu0 }
 0x1a2   : > { %v1102_v52 = vadd.f32 %v3784_v4, %v983_v5  ;;  %v1270_v35 = vadd.f32 1e-05, %v983_v5  ;;  %v5142_v4 = vclamps-f32 %v3829_v41, 11.512916  ;;  %v5147_v41 = vsub.f32 %v4005_v27, %v4031_v56 }
 0x1a3   : > { %v1127_v26 = vadd.f32 1e-05, %v1103_v61  ;;  %2960 = vlog2.f32 %v1271_v23  ;;  %v4307_v27 = vsub.f32 1.0, %v3982_v14  ;;  %v4311_v61 = vsub.f32 1.0, %v4240_v47 }
 0x1a4   : > { %v1126_v15 = vadd.f32 1e-05, %v1102_v52  ;;  %2962 = vlog2.f32 %v1270_v35  ;;  %v2460_v34 = vpop.f32.mrb[2].mxu0  ;;  %v4281_v11 = vmul.f32 %v5142_v4, %v4228_v17  ;;  %v4298_v20 = vmul.f32 %v4248_v51, %v5147_v41  ;;  %v4315_v52 = vpop.eup %2958 }
 0x1a5   : > { %2964 = vlog2.f32 %v1127_v26  ;;  %v1105_v57 = vadd.f32 %v3800_v13, %v2460_v34  ;;  %v1273_v60 = vadd.f32 1e-05, %v2460_v34  ;;  %v993_v7 = vpop.f32.mrb[3].mxu0  ;;  %v4313_v5 = vadd.f32 %v1615_v43, %v771_v28 }
 0x1a6   : > { %5143 = vst [vmem:[#allocation79_spill] sm:$0xff] %v4281_v11  ;;  %2966 = vlog2.f32 %v1126_v15  ;;  %v1104_v58 = vadd.f32 %v3794_v10, %v993_v7  ;;  %v1272_v22 = vadd.f32 1e-05, %v993_v7  ;;  %5148 = vst [vmem:[#allocation82_spill] sm:$0xff] %v4298_v20  ;;  %v4300_v10 = vmul.f32 0.6931472, %v2945_v3 }
 0x1a7   : > { %v1129_v13 = vadd.f32 1e-05, %v1105_v57  ;;  %2968 = vlog2.f32 %v1273_v60  ;;  %5150 = vst [vmem:[#allocation84_spill] sm:$0xff] %v4313_v5  ;;  %v4317_v26 = vmul.f32 0.6931472, %v2953_v42  ;;  %v5151_v5 = vld [vmem:[#allocation22_spill] sm:$0xff] }
 0x1a8   : > { %5149 = vst [vmem:[#allocation83_spill] sm:$0xff] %v4300_v10  ;;  %v1128_v36 = vadd.f32 1e-05, %v1104_v58  ;;  %2970 = vlog2.f32 %v1272_v22  ;;  %v2463_v6 = vpop.f32.mrb[4].mxu0  ;;  %v4322_v57 = vmul.f32 0.6931472, %v2955_v49 }
 0x1a9   : > { %2972 = vlog2.f32 %v1129_v13  ;;  %v1107_v18 = vadd.f32 %v3824_v37, %v2463_v6  ;;  %v1275_v33 = vadd.f32 1e-05, %v2463_v6  ;;  %v1003_v39 = vpop.f32.mrb[5].mxu0  ;;  %v4325_v4 = vmul.f32 0.6931472, %v2957_v29 }
 0x1aa   : > { %2974 = vlog2.f32 %v1128_v36  ;;  %v1106_v56 = vadd.f32 %v3809_v24, %v1003_v39  ;;  %v1274_v38 = vadd.f32 1e-05, %v1003_v39 }
 0x1ab   : > { %v1131_v23 = vadd.f32 1e-05, %v1107_v18  ;;  %2976 = vlog2.f32 %v1275_v33 }
 0x1ac   : > { %v1130_v37 = vadd.f32 1e-05, %v1106_v56  ;;  %2978 = vlog2.f32 %v1274_v38  ;;  %v2466_v35 = vpop.f32.mrb[6].mxu0 }
 0x1ad   : > { %v2961_v24 = vpop.eup %2960  ;;  %2980 = vlog2.f32 %v1131_v23  ;;  %v1109_v15 = vadd.f32 %v3851_v8, %v2466_v35  ;;  %v1277_v34 = vadd.f32 1e-05, %v2466_v35  ;;  %v1013_v3 = vpop.f32.mrb[7].mxu0  ;;  %v4328_v8 = vsub.f32 1.0, %v4228_v17 }
 0x1ae   : > { %v2963_v43 = vpop.eup %2962  ;;  %2982 = vlog2.f32 %v1130_v37  ;;  %v1108_v60 = vadd.f32 %v3835_v48, %v1013_v3  ;;  %v1276_v7 = vadd.f32 1e-05, %v1013_v3  ;;  %v1297_v22 = vmul.f32 0.6931472, %v2961_v24 }
 0x1af   : > { %v2965_v58 = vpop.eup %2964  ;;  %v1295_v45 = vmul.f32 0.6931472, %v2963_v43  ;;  %v1133_v13 = vadd.f32 1e-05, %v1109_v15  ;;  %2984 = vlog2.f32 %v1277_v34 }
 0x1b0   : > { %v2967_v28 = vpop.eup %2966  ;;  %v1153_v41 = vmul.f32 0.6931472, %v2965_v58  ;;  %v1132_v36 = vadd.f32 1e-05, %v1108_v60  ;;  %2986 = vlog2.f32 %v1276_v7  ;;  %v2469_v6 = vpop.f32.mrb[8].mxu0 }
 0x1b1   : > { %v2969_v42 = vpop.eup %2968  ;;  %v1151_v18 = vmul.f32 0.6931472, %v2967_v28  ;;  %2988 = vlog2.f32 %v1133_v13  ;;  %v1111_v48 = vadd.f32 %v3869_v32, %v2469_v6  ;;  %v1279_v33 = vadd.f32 1e-05, %v2469_v6  ;;  %v4331_v39 = vpop.f32.mrb[9].mxu0 }
 0x1b2   : > { %v2971_v49 = vpop.eup %2970  ;;  %v1199_v56 = vsub.f32 %v3709_v1, %v1153_v41  ;;  %v1343_v38 = vsub.f32 %v1297_v22, %v1153_v41  ;;  %v1301_v29 = vmul.f32 0.6931472, %v2969_v42  ;;  %2990 = vlog2.f32 %v1132_v36 }
 0x1b3   : > { %v2973_v23 = vpop.eup %2972  ;;  %v1198_v37 = vsub.f32 %v3707_v0, %v1151_v18  ;;  %v1342_v35 = vsub.f32 %v1295_v45, %v1151_v18  ;;  %v1299_v24 = vmul.f32 0.6931472, %v2971_v49  ;;  %v1135_v15 = vadd.f32 1e-05, %v1111_v48 }
 0x1b4   : > { %v2975_v34 = vpop.eup %2974  ;;  %v1223_v3 = vmax.f32 %v1199_v56, -11.512925  ;;  %v1367_v43 = vmax.f32 %v1343_v38, -11.512925  ;;  %v1157_v60 = vmul.f32 0.6931472, %v2973_v23  ;;  %2992 = vlog2.f32 %v1279_v33 }
 0x1b5   : > { %v2977_v32 = vpop.eup %2976  ;;  %v1222_v7 = vmax.f32 %v1198_v37, -11.512925  ;;  %v1366_v58 = vmax.f32 %v1342_v35, -11.512925  ;;  %v1155_v13 = vmul.f32 0.6931472, %v2975_v34  ;;  %2994 = vlog2.f32 %v1135_v15 }
 0x1b6   : > { %v2979_v1 = vpop.eup %2978  ;;  %v1247_v22 = vmin.f32 %v1223_v3, -1.000005e-05  ;;  %v1391_v28 = vmin.f32 %v1367_v43, -1.000005e-05  ;;  %v1201_v41 = vsub.f32 %v3717_v9, %v1157_v60  ;;  %v1345_v36 = vsub.f32 %v1301_v29, %v1157_v60  ;;  %v4336_v0 = vpop.f32.mrb[10].mxu0 }
 0x1b7   : > { %v2981_v45 = vpop.eup %2980  ;;  %v1246_v6 = vmin.f32 %v1222_v7, -1.000005e-05  ;;  %v1390_v42 = vmin.f32 %v1366_v58, -1.000005e-05  ;;  %v1200_v18 = vsub.f32 %v3711_v2, %v1155_v13  ;;  %v1344_v48 = vsub.f32 %v1299_v24, %v1155_v13  ;;  %v4339_v33 = vpop.f32.mrb[11].mxu0 }
 0x1b8   : > { %v2983_v49 = vpop.eup %2982  ;;  %v1415_v56 = vmul.f32 %v1247_v22, %v4000_v50  ;;  %v1443_v38 = vmul.f32 %v4303_v44, %v1391_v28  ;;  %v1225_v23 = vmax.f32 %v1201_v41, -11.512925  ;;  %v1369_v37 = vmax.f32 %v1345_v36, -11.512925  ;;  %v4343_v35 = vpop.f32.mrb[12].mxu0 }
 0x1b9   : > { %v2985_v9 = vpop.eup %2984  ;;  %v1414_v29 = vmul.f32 %v1246_v6, %v3982_v14  ;;  %v1442_v15 = vmul.f32 %v4307_v27, %v1390_v42  ;;  %v1224_v34 = vmax.f32 %v1200_v18, -11.512925  ;;  %v1368_v3 = vmax.f32 %v1344_v48, -11.512925  ;;  %v4347_v2 = vpop.f32.mrb[13].mxu0 }
 0x1ba   : > { %v2987_v24 = vpop.eup %2986  ;;  %v1467_v43 = vadd.f32 %v1443_v38, %v1415_v56  ;;  %v1249_v60 = vmin.f32 %v1225_v23, -1.000005e-05  ;;  %v1393_v7 = vmin.f32 %v1369_v37, -1.000005e-05  ;;  %v1161_v58 = vmul.f32 0.6931472, %v2981_v45 }
 0x1bb   : > { %v2989_v13 = vpop.eup %2988  ;;  %v1466_v22 = vadd.f32 %v1442_v15, %v1414_v29  ;;  %v1248_v28 = vmin.f32 %v1224_v34, -1.000005e-05  ;;  %v1392_v41 = vmin.f32 %v1368_v3, -1.000005e-05  ;;  %v1305_v36 = vmul.f32 0.6931472, %v2977_v32 }
 0x1bc   : > { %v2991_v46 = vpop.eup %2990  ;;  %v1491_v20 = vmul.f32 %v4248_v51, %v1467_v43  ;;  %v1417_v6 = vmul.f32 %v1249_v60, %v4240_v47  ;;  %v1445_v42 = vmul.f32 %v4311_v61, %v1393_v7  ;;  %v1203_v18 = vsub.f32 %v3731_v19, %v1161_v58  ;;  %v4353_v48 = vpop.f32.mrb[14].mxu0 }
 0x1bd   : > { %v1490_v56 = vmul.f32 %v4248_v51, %v1466_v22  ;;  %v1416_v45 = vmul.f32 %v1248_v28, %v4228_v17  ;;  %v1444_v38 = vmul.f32 %v4328_v8, %v1392_v41  ;;  %v1347_v23 = vsub.f32 %v1305_v36, %v1161_v58  ;;  %v4358_v37 = vpop.f32.mrb[15].mxu0 }
 0x1be   : > { %v2993_v32 = vpop.eup %2992  ;;  %v1469_v29 = vadd.f32 %v1445_v42, %v1417_v6  ;;  %v1227_v15 = vmax.f32 %v1203_v18, -11.512925  ;;  %v1159_v34 = vmul.f32 0.6931472, %v2983_v49  ;;  %v1303_v3 = vmul.f32 0.6931472, %v2979_v1 }
 0x1bf   : > { %v2995_v43 = vpop.eup %2994  ;;  %v1642_v60 = vadd.f32 %v1491_v20, %v1490_v56  ;;  %v1468_v7 = vadd.f32 %v1444_v38, %v1416_v45  ;;  %v1371_v19 = vmax.f32 %v1347_v23, -11.512925  ;;  %v1165_v10 = vmul.f32 0.6931472, %v2989_v13  ;;  %v5152_v6 = vld [vmem:[#allocation24_spill] sm:$0xff] }
 0x1c0   : > { %v1493_v11 = vmul.f32 %v4248_v51, %v1469_v29  ;;  %v1251_v22 = vmin.f32 %v1227_v15, -1.000005e-05  ;;  %v1202_v28 = vsub.f32 %v5151_v5, %v1159_v34  ;;  %v1346_v21 = vsub.f32 %v1303_v3, %v1159_v34  ;;  %v4362_v41 = vpop.f32.mrb[16].mxu0  ;;  %v5153_v34 = vld [vmem:[#allocation23_spill] sm:$0xff] }
 0x1c1   : > { %v1492_v58 = vmul.f32 %v4248_v51, %v1468_v7  ;;  %v1395_v36 = vmin.f32 %v1371_v19, -1.000005e-05  ;;  %v1205_v42 = vsub.f32 %v5152_v6, %v1165_v10  ;;  %v1309_v49 = vmul.f32 0.6931472, %v2985_v9  ;;  %v4366_v1 = vpop.f32.mrb[17].mxu0 }
 0x1c2   : > { %v1419_v20 = vmul.f32 %v1251_v22, %v4000_v50  ;;  %v1226_v18 = vmax.f32 %v1202_v28, -11.512925  ;;  %v1370_v13 = vmax.f32 %v1346_v21, -11.512925  ;;  %v1163_v56 = vmul.f32 0.6931472, %v2991_v46 }
 0x1c3   : > { %v1643_v45 = vadd.f32 %v1642_v60, %v1492_v58  ;;  %v1447_v38 = vmul.f32 %v4303_v44, %v1395_v36  ;;  %v1229_v5 = vmax.f32 %v1205_v42, -11.512925  ;;  %v1349_v23 = vsub.f32 %v1309_v49, %v1165_v10 }
 0x1c4   : > { %v1250_v29 = vmin.f32 %v1226_v18, -1.000005e-05  ;;  %v1394_v15 = vmin.f32 %v1370_v13, -1.000005e-05  ;;  %v1204_v3 = vsub.f32 %v5153_v34, %v1163_v56  ;;  %v1307_v7 = vmul.f32 0.6931472, %v2987_v24 }
 0x1c5   : > { %v1644_v19 = vadd.f32 %v1643_v45, %v1493_v11  ;;  %v1253_v6 = vmin.f32 %v1229_v5, -1.000005e-05  ;;  %v1373_v9 = vmax.f32 %v1349_v23, -11.512925  ;;  %v4371_v55 = vpop.f32.mrb[18].mxu0  ;;  %2996 = vlog2.f32 %v4066_v54  ;;  %v5154_v13 = vld [vmem:[#allocation34_spill] sm:$0xff] }
 0x1c6   : > { %v1418_v21 = vmul.f32 %v1250_v29, %v3982_v14  ;;  %v1446_v46 = vmul.f32 %v4307_v27, %v1394_v15  ;;  %v1228_v60 = vmax.f32 %v1204_v3, -11.512925  ;;  %v1348_v22 = vsub.f32 %v1307_v7, %v1163_v56  ;;  %v4376_v28 = vpop.f32.mrb[19].mxu0 }
 0x1c7   : > { %v1471_v10 = vadd.f32 %v1447_v38, %v1419_v20  ;;  %v1397_v58 = vmin.f32 %v1373_v9, -1.000005e-05  ;;  %v1169_v36 = vmul.f32 0.6931472, %v2995_v43  ;;  %2998 = vlog2.f32 %v4075_v59  ;;  %v5155_v38 = vld [vmem:[#allocation26_spill] sm:$0xff]  ;;  %v5157_v9 = vld [vmem:[#allocation39_spill] sm:$0xff] }
 0x1c8   : > { %v1470_v11 = vadd.f32 %v1446_v46, %v1418_v21  ;;  %v1421_v24 = vmul.f32 %v1253_v6, %v4240_v47  ;;  %v1252_v42 = vmin.f32 %v1228_v60, -1.000005e-05  ;;  %v1372_v49 = vmax.f32 %v1348_v22, -11.512925  ;;  %v4387_v23 = vpop.f32.mrb[0].mxu1 }
 0x1c9   : > { %v1449_v54 = vmul.f32 %v4311_v61, %v1397_v58  ;;  %v1313_v18 = vmul.f32 0.6931472, %v2993_v32  ;;  %v1110_v45 = vadd.f32 %v5154_v13, %v4331_v39  ;;  %v1278_v56 = vadd.f32 1e-05, %v4331_v39  ;;  %v4389_v34 = vpop.f32.mrb[1].mxu1  ;;  %v5160_v13 = vld [vmem:[#allocation43_spill] sm:$0xff] }
 0x1ca   : > { %v1494_v5 = vmul.f32 %v4248_v51, %v1470_v11  ;;  %v1396_v20 = vmin.f32 %v1372_v49, -1.000005e-05  ;;  %v1420_v43 = vmul.f32 %v1252_v42, %v4228_v17  ;;  %v1207_v59 = vsub.f32 %v5155_v38, %v1169_v36 }
 0x1cb   : > { %v1351_v29 = vsub.f32 %v1313_v18, %v1169_v36  ;;  %v1134_v15 = vadd.f32 1e-05, %v1110_v45  ;;  %3000 = vlog2.f32 %v1278_v56  ;;  %v5156_v32 = vclamps-f32 %v4207_v31, 11.512916  ;;  %v4416_v56 = vpop.f32.mrb[20].mxu0 }
 0x1cc   : > { %v1495_v39 = vmul.f32 %v4248_v51, %v1471_v10  ;;  %v1645_v7 = vadd.f32 %v1644_v19, %v1494_v5  ;;  %v1448_v6 = vmul.f32 %v4328_v8, %v1396_v20  ;;  %v1113_v21 = vadd.f32 %v5157_v9, %v4336_v0  ;;  %v4404_v10 = vpop.f32.mrb[2].mxu1 }
 0x1cd   : > { %v720_v3 = vmul.f32 %v5156_v32, %v3982_v14  ;;  %v1473_v46 = vadd.f32 %v1449_v54, %v1421_v24  ;;  %3002 = vlog2.f32 %v1134_v15  ;;  %v1281_v60 = vadd.f32 1e-05, %v4336_v0  ;;  %v5159_v24 = vld [vmem:[#allocation38_spill] sm:$0xff]  ;;  %v4411_v18 = vpop.f32.mrb[3].mxu1 }
 0x1ce   : > { %v5158_v22 = vclamps-f32 %v4210_v40, 11.512916  ;;  %v1472_v36 = vadd.f32 %v1448_v6, %v1420_v43  ;;  %v1646_v31 = vadd.f32 %v1645_v7, %v1495_v39  ;;  %v1231_v11 = vmax.f32 %v1207_v59, -11.512925 }
 0x1cf   : > { %v1137_v42 = vadd.f32 1e-05, %v1113_v21  ;;  %v4406_v19 = vpop.eup %2996  ;;  %v1375_v49 = vmax.f32 %v1351_v29, -11.512925  ;;  %3004 = vlog2.f32 %v1281_v60  ;;  %v1112_v54 = vadd.f32 %v5159_v24, %v4339_v33  ;;  %v4424_v29 = vpop.f32.mrb[21].mxu0  ;;  %v5162_v21 = vld [vmem:[#allocation48_spill] sm:$0xff] }
 0x1d0   : > { %v4402_v58 = vmul.f32 %v5158_v22, %v4000_v50  ;;  %v1280_v0 = vadd.f32 1e-05, %v4339_v33  ;;  %v1496_v40 = vmul.f32 %v4248_v51, %v1472_v36  ;;  %v1115_v45 = vadd.f32 %v5160_v13, %v4343_v35  ;;  %v5161_v33 = vld [vmem:[#allocation42_spill] sm:$0xff]  ;;  %v4439_v60 = vpop.f32.mrb[22].mxu0  ;;  %v4441_v36 = vpop.f32.mrb[4].mxu1 }
 0x1d1   : > { %3006 = vlog2.f32 %v1137_v42  ;;  %v744_v5 = vsub.f32 %v720_v3, %v4317_v26  ;;  %v4419_v20 = vpop.eup %2998  ;;  %v1136_v43 = vadd.f32 1e-05, %v1112_v54  ;;  %v1283_v38 = vadd.f32 1e-05, %v4343_v35  ;;  %5163 = vst [vmem:[#allocation22_spill] sm:$0xff] %v4439_v60  ;;  %v4458_v24 = vpop.f32.mrb[5].mxu1 }
 0x1d2   : > { %3008 = vlog2.f32 %v1280_v0  ;;  %v1114_v59 = vadd.f32 %v5161_v33, %v4347_v2  ;;  %v1497_v15 = vmul.f32 %v4248_v51, %v1473_v46  ;;  %v1647_v32 = vadd.f32 %v1646_v31, %v1496_v40  ;;  %v4443_v31 = vpop.f32.mrb[23].mxu0 }
 0x1d3   : > { %v1255_v39 = vmin.f32 %v1231_v11, -1.000005e-05  ;;  %v4427_v7 = vadd.f32 1e-05, %v1115_v45  ;;  %v1399_v6 = vmin.f32 %v1375_v49, -1.000005e-05  ;;  %3010 = vlog2.f32 %v1136_v43 }
 0x1d4   : > { %v4429_v26 = vadd.f32 1e-05, %v1114_v59  ;;  %v1802_v3 = vsub.f32 %v4063_v25, %v4387_v23  ;;  %v4433_v9 = vadd.f32 %v1647_v32, %v1497_v15  ;;  %v1282_v35 = vadd.f32 1e-05, %v4347_v2  ;;  %5164 = vst [vmem:[#allocation24_spill] sm:$0xff] %v4443_v31  ;;  %v5168_v43 = vld [vmem:[#allocation46_spill] sm:$0xff] }
 0x1d5   : > { %3012 = vlog2.f32 %v4427_v7  ;;  %v1117_v46 = vadd.f32 %v5162_v21, %v4353_v48  ;;  %v3001_v22 = vpop.eup %3000  ;;  %v4446_v11 = vmul.f32 0.6931472, %v4315_v52  ;;  %v5165_v25 = vclamps-f32 %v4213_v53, 11.512916 }
 0x1d6   : > { %3014 = vlog2.f32 %v1283_v38  ;;  %v1423_v42 = vmul.f32 %v1255_v39, %v4000_v50  ;;  %v1801_v49 = vsub.f32 %v4059_v62, %v4389_v34  ;;  %v5166_v54 = vclamps-f32 %v4216_v12, 11.512916 }
 0x1d7   : > { %v4451_v23 = vmul.f32 %v5165_v25, %v4228_v17  ;;  %v4466_v0 = vmul.f32 %v4248_v51, %v744_v5  ;;  %v3003_v53 = vpop.eup %3002  ;;  %v1451_v40 = vmul.f32 %v4303_v44, %v1399_v6  ;;  %3016 = vlog2.f32 %v4429_v26 }
 0x1d8   : > { %v4463_v52 = vmul.f32 %v5166_v54, %v4240_v47  ;;  %v1815_v45 = vmul.f32 1.442695, %v1802_v3  ;;  %v1116_v38 = vadd.f32 %v5168_v43, %v4358_v37  ;;  %v1167_v62 = vmul.f32 0.6931472, %v3003_v53  ;;  %v5171_v3 = vld [vmem:[#allocation25_spill] sm:$0xff] }
 0x1d9   : > { %5167 = vst [vmem:[#allocation23_spill] sm:$0xff] %v4466_v0  ;;  %v1311_v34 = vmul.f32 0.6931472, %v3001_v22  ;;  %3018 = vlog2.f32 %v1282_v35  ;;  %v4472_v59 = vadd.f32 1e-05, %v1117_v46  ;;  %v3005_v12 = vpop.eup %3004  ;;  %v1475_v2 = vadd.f32 %v1451_v40, %v1423_v42  ;;  %v5172_v0 = vld [vmem:[#allocation28_spill] sm:$0xff] }
 0x1da   : > { %v1285_v15 = vadd.f32 1e-05, %v4353_v48  ;;  %v4476_v5 = vmul.f32 0.6931472, %v4276_v16  ;;  %v4479_v32 = vmul.f32 0.6931472, %v4284_v63  ;;  %v1206_v25 = vsub.f32 %v5171_v3, %v1167_v62 }
 0x1db   : > { %v3007_v6 = vpop.eup %3006  ;;  %v1350_v54 = vsub.f32 %v1311_v34, %v1167_v62  ;;  %v1813_v22 = vmul.f32 1.442695, %v1801_v49  ;;  %v1317_v48 = vmul.f32 0.6931472, %v3005_v12  ;;  %3020 = vpow2.f32 %v1815_v45  ;;  %v4490_v49 = vpop.f32.mrb[6].mxu1 }
 0x1dc   : > { %5169 = vst [vmem:[#allocation34_spill] sm:$0xff] %v4476_v5  ;;  %5170 = vst [vmem:[#allocation26_spill] sm:$0xff] %v4479_v32  ;;  %v3009_v46 = vpop.eup %3008  ;;  %v1173_v53 = vmul.f32 0.6931472, %v3007_v6  ;;  %v4486_v16 = vadd.f32 1e-05, %v1116_v38  ;;  %3022 = vlog2.f32 %v4472_v59 }
 0x1dd   : > { %v1230_v63 = vmax.f32 %v1206_v25, -11.512925  ;;  %v1374_v32 = vmax.f32 %v1350_v54, -11.512925  ;;  %v3011_v39 = vpop.eup %3010  ;;  %v1315_v62 = vmul.f32 0.6931472, %v3009_v46  ;;  %3024 = vlog2.f32 %v1285_v15 }
 0x1de   : > { %v1209_v5 = vsub.f32 %v5172_v0, %v1173_v53  ;;  %v1353_v3 = vsub.f32 %v1317_v48, %v1173_v53  ;;  %v1171_v12 = vmul.f32 0.6931472, %v3011_v39  ;;  %3026 = vpow2.f32 %v1813_v22  ;;  %v5173_v54 = vld [vmem:[#allocation27_spill] sm:$0xff]  ;;  %v4496_v53 = vpop.f32.mrb[7].mxu1  ;;  %v5174_v39 = vld [vmem:[#allocation30_spill] sm:$0xff] }
 0x1df   : > { %v3013_v34 = vpop.eup %3012  ;;  %v1254_v35 = vmin.f32 %v1230_v63, -1.000005e-05  ;;  %v1398_v6 = vmin.f32 %v1374_v32, -1.000005e-05  ;;  %3028 = vlog2.f32 %v4486_v16 }
 0x1e0   : > { %v3015_v45 = vpop.eup %3014  ;;  %v1233_v38 = vmax.f32 %v1209_v5, -11.512925  ;;  %v1377_v42 = vmax.f32 %v1353_v3, -11.512925  ;;  %v1177_v40 = vmul.f32 0.6931472, %v3013_v34  ;;  %v1208_v46 = vsub.f32 %v5173_v54, %v1171_v12 }
 0x1e1   : > { %v1422_v25 = vmul.f32 %v1254_v35, %v3982_v14  ;;  %v1450_v0 = vmul.f32 %v4307_v27, %v1398_v6  ;;  %v1352_v15 = vsub.f32 %v1315_v62, %v1171_v12  ;;  %v3017_v48 = vpop.eup %3016  ;;  %v1321_v21 = vmul.f32 0.6931472, %v3015_v45 }
 0x1e2   : > { %v1257_v63 = vmin.f32 %v1233_v38, -1.000005e-05  ;;  %v1401_v32 = vmin.f32 %v1377_v42, -1.000005e-05  ;;  %v1211_v22 = vsub.f32 %v5174_v39, %v1177_v40  ;;  %v1232_v34 = vmax.f32 %v1208_v46, -11.512925 }
 0x1e3   : > { %v3019_v5 = vpop.eup %3018  ;;  %v1474_v3 = vadd.f32 %v1450_v0, %v1422_v25  ;;  %v1376_v43 = vmax.f32 %v1352_v15, -11.512925  ;;  %v1175_v13 = vmul.f32 0.6931472, %v3017_v48  ;;  %v1355_v54 = vsub.f32 %v1321_v21, %v1177_v40  ;;  %v5175_v38 = vld [vmem:[#allocation29_spill] sm:$0xff] }
 0x1e4   : > { %v1425_v35 = vmul.f32 %v1257_v63, %v4240_v47  ;;  %v1453_v6 = vmul.f32 %v4311_v61, %v1401_v32  ;;  %v1235_v33 = vmax.f32 %v1211_v22, -11.512925  ;;  %v1256_v12 = vmin.f32 %v1232_v34, -1.000005e-05  ;;  %v4509_v63 = vpop.f32.mrb[8].mxu1 }
 0x1e5   : > { %v1498_v62 = vmul.f32 %v4248_v51, %v1474_v3  ;;  %v1400_v31 = vmin.f32 %v1376_v43, -1.000005e-05  ;;  %v1210_v42 = vsub.f32 %v5175_v38, %v1175_v13  ;;  %v3021_v60 = vpop.eup %3020  ;;  %v1499_v45 = vmul.f32 %v4248_v51, %v1475_v2  ;;  %5176 = vst [vmem:[#allocation39_spill] sm:$0xff] %v4509_v63  ;;  %v4511_v34 = vpop.f32.mrb[9].mxu1  ;;  %v5178_v63 = vld [vmem:[#allocation51_spill] sm:$0xff] }
 0x1e6   : > { %v1379_v39 = vmax.f32 %v1355_v54, -11.512925  ;;  %v1319_v25 = vmul.f32 0.6931472, %v3019_v5  ;;  %v1804_v0 = vsub.f32 %v4081_v30, %v4404_v10  ;;  %v3023_v46 = vpop.eup %3022  ;;  %v1424_v48 = vmul.f32 %v1256_v12, %v4228_v17 }
 0x1e7   : > { %v1649_v15 = vadd.f32 %v4433_v9, %v1498_v62  ;;  %v1452_v21 = vmul.f32 %v4328_v8, %v1400_v31  ;;  %v1234_v40 = vmax.f32 %v1210_v42, -11.512925  ;;  %v3025_v43 = vpop.eup %3024  ;;  %v1477_v32 = vadd.f32 %v1453_v6, %v1425_v35  ;;  %v5177_v31 = vld [vmem:[#allocation63_spill] sm:$0xff] }
 0x1e8   : > { %v1259_v22 = vmin.f32 %v1235_v33, -1.000005e-05  ;;  %v1403_v3 = vmin.f32 %v1379_v39, -1.000005e-05  ;;  %v1354_v2 = vsub.f32 %v1319_v25, %v1175_v13  ;;  %v3027_v5 = vpop.eup %3026  ;;  %v1838_v38 = vadd.f32 1.0, %v3021_v60 }
 0x1e9   : > { %v1476_v54 = vadd.f32 %v1452_v21, %v1424_v48  ;;  %v1650_v30 = vadd.f32 %v1649_v15, %v1499_v45  ;;  %v1258_v10 = vmin.f32 %v1234_v40, -1.000005e-05  ;;  %v3029_v9 = vpop.eup %3028  ;;  %v1284_v12 = vadd.f32 1e-05, %v4358_v37  ;;  %v4522_v15 = vpop.f32.mrb[10].mxu1 }
 0x1ea   : > { %v1378_v62 = vmax.f32 %v1354_v2, -11.512925  ;;  %v1803_v42 = vsub.f32 %v5177_v31, %v4411_v18  ;;  %v1119_v35 = vadd.f32 %v5178_v63, %v4362_v41  ;;  %3030 = vlog2.f32 %v1838_v38  ;;  %v4525_v21 = vpop.f32.mrb[11].mxu1 }
 0x1eb   : > { %v1500_v33 = vmul.f32 %v4248_v51, %v1476_v54  ;;  %v1837_v13 = vadd.f32 1.0, %v3027_v5  ;;  %v1819_v6 = vmul.f32 1.442695, %v1804_v0  ;;  %v1427_v39 = vmul.f32 %v1259_v22, %v4000_v50  ;;  %v5179_v0 = vld [vmem:[#allocation49_spill] sm:$0xff] }
 0x1ec   : > { %v1455_v45 = vmul.f32 %v4303_v44, %v1403_v3  ;;  %v1402_v60 = vmin.f32 %v1378_v62, -1.000005e-05  ;;  %v1426_v25 = vmul.f32 %v1258_v10, %v3982_v14  ;;  %v1501_v37 = vmul.f32 %v4248_v51, %v1477_v32  ;;  %v5181_v62 = vld [vmem:[#allocation81_spill] sm:$0xff] }
 0x1ed   : > { %v1651_v18 = vadd.f32 %v1650_v30, %v1500_v33  ;;  %v1181_v48 = vmul.f32 0.6931472, %v3023_v46  ;;  %3032 = vlog2.f32 %v1837_v13  ;;  %v1817_v2 = vmul.f32 1.442695, %v1803_v42  ;;  %v5183_v42 = vld [vmem:[#allocation32_spill] sm:$0xff] }
 0x1ee   : > { %v1454_v40 = vmul.f32 %v4307_v27, %v1402_v60  ;;  %v1118_v22 = vadd.f32 %v5179_v0, %v4366_v1  ;;  %v5180_v3 = vsub.f32 %v4402_v58, %v4322_v57  ;;  %v4536_v10 = vmul.f32 0.6931472, %v3029_v9 }
 0x1ef   : > { %v1652_v54 = vadd.f32 %v1651_v18, %v1501_v37  ;;  %3034 = vlog2.f32 %v1284_v12  ;;  %v4538_v46 = vadd.f32 1e-05, %v1119_v35  ;;  %v1479_v32 = vadd.f32 %v1455_v45, %v1427_v39  ;;  %v5186_v45 = vld [vmem:[#allocation31_spill] sm:$0xff] }
 0x1f0   : > { %v4534_v5 = vmul.f32 %v4248_v51, %v5180_v3  ;;  %v1478_v30 = vadd.f32 %v1454_v40, %v1426_v25  ;;  %v1287_v38 = vadd.f32 1e-05, %v4362_v41  ;;  %v4542_v31 = vmul.f32 0.6931472, %v5181_v62  ;;  %v5185_v41 = vld [vmem:[#allocation65_spill] sm:$0xff]  ;;  %v5187_v25 = vld [vmem:[#allocation54_spill] sm:$0xff] }
 0x1f1   : > { %v1213_v33 = vsub.f32 %v5183_v42, %v1181_v48  ;;  %v1325_v13 = vmul.f32 0.6931472, %v3025_v43  ;;  %3036 = vpow2.f32 %v1819_v6  ;;  %v5184_v57 = vsub.f32 %v4451_v23, %v4325_v4  ;;  %v4561_v6 = vld [vmem:[#allocation7 + $0x1] ss:$0 sm:$0xff] }
 0x1f2   : > { %5182 = vst [vmem:[#allocation38_spill] sm:$0xff] %v4542_v31  ;;  %v1502_v9 = vmul.f32 %v4248_v51, %v1478_v30  ;;  %3038 = vpow2.f32 %v1817_v2  ;;  %v4552_v12 = vadd.f32 1e-05, %v1118_v22  ;;  %v1805_v35 = vsub.f32 %v5185_v41, %v4458_v24  ;;  %v5217_v31 = vld [vmem:[#allocation36_spill] sm:$0xff] }
 0x1f3   : > { %v4549_v58 = vmul.f32 %v4248_v51, %v5184_v57  ;;  %v1357_v39 = vsub.f32 %v1325_v13, %v1181_v48  ;;  %v1212_v60 = vsub.f32 %v5186_v45, %v4536_v10  ;;  %3040 = vlog2.f32 %v4538_v46  ;;  %v5192_v57 = vld [vmem:[#allocation58_spill] sm:$0xff] }
 0x1f4   : > { %v1286_v43 = vadd.f32 1e-05, %v4366_v1  ;;  %v1503_v4 = vmul.f32 %v4248_v51, %v1479_v32  ;;  %v1653_v23 = vadd.f32 %v1652_v54, %v1502_v9  ;;  %3042 = vlog2.f32 %v1287_v38  ;;  %v3031_v18 = vpop.eup %3030  ;;  %v5193_v9 = vld [vmem:[#allocation61_spill] sm:$0xff] }
 0x1f5   : > { %v1121_v37 = vadd.f32 %v5187_v25, %v4371_v55  ;;  %v1237_v40 = vmax.f32 %v1213_v33, -11.512925  ;;  %v4566_v24 = vmul.f32 0.6931472, %v4406_v19  ;;  %v4569_v48 = vmul.f32 0.6931472, %v4419_v20 }
 0x1f6   : > { %v5190_v1 = vsub.f32 %v4463_v52, %v4446_v11  ;;  %v1852_v22 = vmul.f32 0.6931472, %v3031_v18  ;;  %v4577_v3 = vadd.f32 %v1653_v23, %v1503_v4  ;;  %3044 = vlog2.f32 %v4552_v12  ;;  %v5191_v19 = vld [vmem:[#allocation70_spill] sm:$0xff] }
 0x1f7   : > { %5188 = vst [vmem:[#allocation25_spill] sm:$0xff] %v4566_v24  ;;  %5189 = vst [vmem:[#allocation28_spill] sm:$0xff] %v4569_v48  ;;  %v1821_v54 = vmul.f32 1.442695, %v1805_v35  ;;  %v3033_v32 = vpop.eup %3032  ;;  %v1381_v30 = vmax.f32 %v1357_v39, -11.512925  ;;  %3046 = vlog2.f32 %v1286_v43  ;;  %v1806_v20 = vsub.f32 %v5191_v19, %v4441_v36 }
 0x1f8   : > { %v4575_v2 = vmul.f32 %v4248_v51, %v5190_v1  ;;  %v1236_v38 = vmax.f32 %v1212_v60, -11.512925  ;;  %3048 = vrcp.f32 %v4427_v7  ;;  %v1878_v11 = vmul.f32 %v4561_v6, %v1852_v22  ;;  %v5196_v39 = vld [vmem:[#allocation53_spill] sm:$0xff]  ;;  %v5197_v1 = vld [vmem:[#allocation40_spill] sm:$0xff] }
 0x1f9   : > { %v1850_v52 = vmul.f32 0.6931472, %v3033_v32  ;;  %v4584_v62 = vadd.f32 1e-05, %v1121_v37  ;;  %v3035_v42 = vpop.eup %3034  ;;  %3050 = vrcp.f32 %v4429_v26  ;;  %v1261_v33 = vmin.f32 %v1237_v40, -1.000005e-05 }
 0x1fa   : > { %v1289_v13 = vadd.f32 1e-05, %v4371_v55  ;;  %v5194_v41 = vsub.f32 %v5192_v57, %v5193_v9  ;;  %v1323_v7 = vmul.f32 0.6931472, %v3035_v42  ;;  %3052 = vpow2.f32 %v1821_v54 }
 0x1fb   : > { %v1877_v36 = vmul.f32 %v4561_v6, %v1850_v52  ;;  %v1120_v45 = vadd.f32 %v5196_v39, %v4376_v28  ;;  %v3037_v60 = vpop.eup %3036  ;;  %v1405_v43 = vmin.f32 %v1381_v30, -1.000005e-05  ;;  %3054 = vrcp.f32 %v4472_v59  ;;  %v5200_v59 = vld [vmem:[#allocation41_spill] sm:$0xff] }
 0x1fc   : > { %v4592_v35 = vmul.f32 %v4248_v51, %v5194_v41  ;;  %v1260_v26 = vmin.f32 %v1236_v38, -1.000005e-05  ;;  %v1823_v4 = vmul.f32 1.442695, %v1806_v20  ;;  %v3039_v55 = vpop.eup %3038  ;;  %v1356_v37 = vsub.f32 %v1323_v7, %v4536_v10  ;;  %v5203_v41 = vld [vmem:[#allocation35_spill] sm:$0xff] }
 0x1fd   : > { %v4598_v23 = vadd.f32 %v1878_v11, %v1877_v36  ;;  %v1840_v51 = vadd.f32 1.0, %v3037_v60  ;;  %3056 = vlog2.f32 %v4584_v62  ;;  %v3041_v18 = vpop.eup %3040  ;;  %v1839_v40 = vadd.f32 1.0, %v3039_v55 }
 0x1fe   : > { %5195 = vst [vmem:[#allocation27_spill] sm:$0xff] %v4592_v35  ;;  %3058 = vlog2.f32 %v1289_v13  ;;  %v5198_v22 = vclamps-f32 %v5197_v1, 11.512916  ;;  %v5201_v32 = vclamps-f32 %v5200_v59, 11.512916  ;;  %v3043_v38 = vpop.eup %3042  ;;  %v1429_v11 = vmul.f32 %v1261_v33, %v4240_v47 }
 0x1ff   : > { %v1380_v19 = vmax.f32 %v1356_v37, -11.512925  ;;  %3060 = vlog2.f32 %v1840_v51  ;;  %v1185_v10 = vmul.f32 0.6931472, %v3041_v18  ;;  %v4612_v20 = vadd.f32 1e-05, %v1120_v45 }
 0x200   : > { %v4605_v54 = vmul.f32 %v5198_v22, %v3982_v14  ;;  %v4610_v30 = vmul.f32 %v5201_v32, %v4000_v50  ;;  %v1457_v52 = vmul.f32 %v4311_v61, %v1405_v43  ;;  %3062 = vlog2.f32 %v1839_v40  ;;  %v3045_v13 = vpop.eup %3044  ;;  %v5204_v51 = vld [vmem:[#allocation74_spill] sm:$0xff] }
 0x201   : > { %v1329_v42 = vmul.f32 0.6931472, %v3043_v38  ;;  %v1404_v57 = vmin.f32 %v1380_v19, -1.000005e-05  ;;  %v1428_v9 = vmul.f32 %v1260_v26, %v4228_v17  ;;  %v1215_v36 = vsub.f32 %v5203_v41, %v1185_v10  ;;  %v3047_v7 = vpop.eup %3046  ;;  %v5206_v38 = vld [vmem:[#allocation64_spill] sm:$0xff] }
 0x202   : > { %5199 = vst [vmem:[#allocation30_spill] sm:$0xff] %v4605_v54  ;;  %5202 = vst [vmem:[#allocation29_spill] sm:$0xff] %v4610_v30  ;;  %3064 = vpow2.f32 %v1823_v4  ;;  %v1183_v55 = vmul.f32 0.6931472, %v3045_v13  ;;  %v1288_v45 = vadd.f32 1e-05, %v4376_v28  ;;  %v4620_v37 = vpop.eup %3048  ;;  %v1808_v26 = vsub.f32 %v5204_v51, %v4490_v49 }
 0x203   : > { %3066 = vrcp.f32 %v4486_v16  ;;  %v1359_v60 = vsub.f32 %v1329_v42, %v1185_v10  ;;  %v1456_v33 = vmul.f32 %v4328_v8, %v1404_v57  ;;  %v1327_v43 = vmul.f32 0.6931472, %v3047_v7  ;;  %v4626_v18 = vpop.eup %3050  ;;  %v5205_v16 = vld [vmem:[#allocation33_spill] sm:$0xff]  ;;  %v4637_v57 = vld [vmem:[#allocation7] ss:$0 sm:$0xff] }
 0x204   : > { %3068 = vlog2.f32 %v4612_v20  ;;  %v1481_v4 = vadd.f32 %v1457_v52, %v1429_v11  ;;  %v1239_v40 = vmax.f32 %v1215_v36, -11.512925  ;;  %v1214_v22 = vsub.f32 %v5205_v16, %v1183_v55  ;;  %v3053_v59 = vpop.eup %3052  ;;  %v5207_v11 = vld [vmem:[#allocation73_spill] sm:$0xff] }
 0x205   : > { %v1383_v1 = vmax.f32 %v1359_v60, -11.512925  ;;  %v1480_v32 = vadd.f32 %v1456_v33, %v1428_v9  ;;  %3070 = vrcp.f32 %v4538_v46  ;;  %v1358_v28 = vsub.f32 %v1327_v43, %v1183_v55  ;;  %v4632_v10 = vpop.eup %3054 }
 0x206   : > { %v1123_v19 = vadd.f32 %v5206_v38, %v4416_v56  ;;  %v1238_v42 = vmax.f32 %v1214_v22, -11.512925  ;;  %3072 = vrcp.f32 %v4552_v12  ;;  %v1841_v49 = vadd.f32 1.0, %v3053_v59 }
 0x207   : > { %v1807_v52 = vsub.f32 %v5207_v11, %v4496_v53  ;;  %v3057_v13 = vpop.eup %3056  ;;  %v1504_v9 = vmul.f32 %v4637_v57, %v1480_v32  ;;  %v1382_v41 = vmax.f32 %v1358_v28, -11.512925  ;;  %3074 = vlog2.f32 %v1288_v45  ;;  %v5211_v11 = vld [vmem:[#allocation75_spill] sm:$0xff] }
 0x208   : > { %v1827_v46 = vmul.f32 1.442695, %v1808_v26  ;;  %v3059_v36 = vpop.eup %3058  ;;  %v4641_v7 = vmul.f32 %v4637_v57, %v1481_v4  ;;  %v1263_v60 = vmin.f32 %v1239_v40, -1.000005e-05  ;;  %v1407_v55 = vmin.f32 %v1383_v1, -1.000005e-05 }
 0x209   : > { %3076 = vlog2.f32 %v1841_v49  ;;  %v3061_v12 = vpop.eup %3060  ;;  %v4644_v33 = vadd.f32 %v4577_v3, %v1504_v9  ;;  %v1262_v53 = vmin.f32 %v1238_v42, -1.000005e-05  ;;  %v1147_v43 = vadd.f32 1e-05, %v1123_v19  ;;  %v5208_v1 = vld [vmem:[#allocation62_spill] sm:$0xff]  ;;  %v5210_v42 = vld [vmem:[#allocation76_spill] sm:$0xff] }
 0x20a   : > { %v1291_v51 = vadd.f32 1e-05, %v4416_v56  ;;  %v3063_v16 = vpop.eup %3062  ;;  %v1856_v22 = vmul.f32 0.6931472, %v3061_v12  ;;  %v1406_v59 = vmin.f32 %v1382_v41, -1.000005e-05  ;;  %3078 = vrcp.f32 %v4584_v62 }
 0x20b   : > { %v1189_v45 = vmul.f32 0.6931472, %v3057_v13  ;;  %v1854_v4 = vmul.f32 0.6931472, %v3063_v16  ;;  %3080 = vpow2.f32 %v1827_v46  ;;  %v1825_v40 = vmul.f32 1.442695, %v1807_v52 }
 0x20c   : > { %v3065_v26 = vpop.eup %3064  ;;  %v1122_v32 = vadd.f32 %v5208_v1, %v4424_v29  ;;  %v1431_v3 = vmul.f32 %v1263_v60, %v4000_v50  ;;  %v1459_v19 = vmul.f32 %v4303_v44, %v1407_v55  ;;  %v5209_v56 = vld [vmem:[#allocation39_spill] sm:$0xff]  ;;  %v1809_v13 = vsub.f32 %v5211_v11, %v4511_v34  ;;  %v5212_v16 = vld [vmem:[#allocation37_spill] sm:$0xff]  ;;  %v5213_v11 = vld [vmem:[#allocation22_spill] sm:$0xff] }
 0x20d   : > { %v4650_v28 = vpop.eup %3066  ;;  %v1810_v49 = vsub.f32 %v5210_v42, %v5209_v56  ;;  %v1880_v9 = vmul.f32 %v4561_v6, %v1856_v22  ;;  %v1879_v52 = vmul.f32 %v4561_v6, %v1854_v4  ;;  %v1333_v41 = vmul.f32 0.6931472, %v3059_v36 }
 0x20e   : > { %v3069_v62 = vpop.eup %3068  ;;  %3082 = vlog2.f32 %v1147_v43  ;;  %v1430_v46 = vmul.f32 %v1262_v53, %v3982_v14  ;;  %v1458_v12 = vmul.f32 %v4307_v27, %v1406_v59  ;;  %v1842_v60 = vadd.f32 1.0, %v3065_v26  ;;  %v5214_v53 = vld [vmem:[#allocation69_spill] sm:$0xff] }
 0x20f   : > { %v1217_v55 = vsub.f32 %v5212_v16, %v1189_v45  ;;  %v4663_v48 = vpop.eup %3070  ;;  %v1890_v56 = vadd.f32 %v4598_v23, %v1879_v52  ;;  %v1361_v42 = vsub.f32 %v1333_v41, %v1189_v45  ;;  %3084 = vpow2.f32 %v1825_v40 }
 0x210   : > { %v1290_v34 = vadd.f32 1e-05, %v4424_v29  ;;  %v4667_v22 = vpop.eup %3072  ;;  %v1187_v4 = vmul.f32 0.6931472, %v3069_v62  ;;  %3086 = vlog2.f32 %v1291_v51  ;;  %v1146_v36 = vadd.f32 1e-05, %v1122_v32 }
 0x211   : > { %v1125_v24 = vadd.f32 %v5214_v53, %v5213_v11  ;;  %v3075_v59 = vpop.eup %3074  ;;  %v1483_v26 = vadd.f32 %v1459_v19, %v1431_v3  ;;  %v1891_v35 = vadd.f32 %v1890_v56, %v1880_v9  ;;  %3088 = vrcp.f32 %v4612_v20  ;;  %v5215_v62 = vld [vmem:[#allocation24_spill] sm:$0xff]  ;;  %v5216_v51 = vld [vmem:[#allocation67_spill] sm:$0xff] }
 0x212   : > { %v1831_v16 = vmul.f32 1.442695, %v1810_v49  ;;  %v1482_v23 = vadd.f32 %v1458_v12, %v1430_v46  ;;  %3090 = vlog2.f32 %v1842_v60  ;;  %v1241_v45 = vmax.f32 %v1217_v55, -11.512925 }
 0x213   : > { %v3077_v30 = vpop.eup %3076  ;;  %v1829_v40 = vmul.f32 1.442695, %v1809_v13  ;;  %v1385_v52 = vmax.f32 %v1361_v42, -11.512925  ;;  %3092 = vrcp.f32 %v1147_v43  ;;  %v1124_v32 = vadd.f32 %v5216_v51, %v5215_v62 }
 0x214   : > { %v1858_v29 = vmul.f32 0.6931472, %v3077_v30  ;;  %v4674_v41 = vpop.eup %3078  ;;  %v1216_v54 = vsub.f32 %v5217_v31, %v1187_v4  ;;  %v1331_v3 = vmul.f32 0.6931472, %v3075_v59  ;;  %3094 = vlog2.f32 %v1146_v36 }
 0x215   : > { %v1149_v19 = vadd.f32 1e-05, %v1125_v24  ;;  %v3081_v20 = vpop.eup %3080  ;;  %v4678_v49 = vmul.f32 %v4637_v57, %v1483_v26  ;;  %3096 = vlog2.f32 %v1290_v34  ;;  %v1293_v30 = vadd.f32 1e-05, %v5213_v11  ;;  %v5218_v11 = vld [vmem:[#allocation78_spill] sm:$0xff] }
 0x216   : > { %v1881_v9 = vmul.f32 %v4561_v6, %v1858_v29  ;;  %v4683_v43 = vmul.f32 %v4637_v57, %v1482_v23  ;;  %v1265_v13 = vmin.f32 %v1241_v45, -1.000005e-05  ;;  %v1360_v46 = vsub.f32 %v1331_v3, %v1187_v4  ;;  %v5219_v26 = vld [vmem:[#allocation42_spill] sm:$0xff] }
 0x217   : > { %3098 = vrcp.f32 %v1146_v36  ;;  %v1409_v60 = vmin.f32 %v1385_v52, -1.000005e-05  ;;  %v1148_v24 = vadd.f32 1e-05, %v1124_v32  ;;  %v4687_v55 = vmax.f32 %v1216_v54, -11.512925 }
 0x218   : > { %v3083_v12 = vpop.eup %3082  ;;  %v4685_v31 = vadd.f32 %v1891_v35, %v1881_v9  ;;  %3100 = vpow2.f32 %v1831_v16  ;;  %v1844_v56 = vadd.f32 1.0, %v3081_v20  ;;  %v1292_v42 = vadd.f32 1e-05, %v5215_v62  ;;  %v5220_v36 = vld [vmem:[#allocation43_spill] sm:$0xff]  ;;  %v5221_v45 = vld [vmem:[#allocation46_spill] sm:$0xff]  ;;  %v5222_v52 = vld [vmem:[#allocation77_spill] sm:$0xff] }
 0x219   : > { %3102 = vpow2.f32 %v1829_v40  ;;  %v3085_v34 = vpop.eup %3084  ;;  %v1812_v59 = vsub.f32 %v5218_v11, %v4522_v15  ;;  %v1563_v4 = vmul.f32 %v4626_v18, %v5219_v26  ;;  %v1565_v35 = vmul.f32 %v4620_v37, %v5220_v36  ;;  %v5223_v20 = vld [vmem:[#allocation48_spill] sm:$0xff] }
 0x21a   : > { %3104 = vlog2.f32 %v1149_v19  ;;  %v3087_v23 = vpop.eup %3086  ;;  %v4696_v16 = vmax.f32 %v1360_v46, -11.512925  ;;  %v4698_v54 = vmul.f32 0.6931472, %v3083_v12  ;;  %v1567_v40 = vmul.f32 %v4650_v28, %v5221_v45 }
 0x21b   : > { %3106 = vlog2.f32 %v1293_v30  ;;  %v3089_v29 = vpop.eup %3088  ;;  %v1811_v15 = vsub.f32 %v5222_v52, %v4525_v21  ;;  %v1586_v62 = vmax.f32 %v1563_v4, 1e-05  ;;  %v1587_v32 = vmax.f32 %v1565_v35, 1e-05 }
 0x21c   : > { %3108 = vlog2.f32 %v1148_v24  ;;  %v3091_v18 = vpop.eup %3090  ;;  %v1843_v3 = vadd.f32 1.0, %v3085_v34  ;;  %v1588_v37 = vmax.f32 %v1567_v40, 1e-05  ;;  %v1569_v9 = vmul.f32 %v4632_v10, %v5223_v20 }
 0x21d   : > { %3110 = vlog2.f32 %v1292_v42  ;;  %v4706_v46 = vpop.eup %3092  ;;  %v1337_v30 = vmul.f32 0.6931472, %v3087_v23  ;;  %v1835_v12 = vmul.f32 1.442695, %v1812_v59  ;;  %v4708_v28 = vmin.f32 %v1586_v62, 0.99999 }
 0x21e   : > { %3112 = vrcp.f32 %v1148_v24  ;;  %v3095_v11 = vpop.eup %3094  ;;  %v1433_v26 = vmul.f32 %v1265_v13, %v4240_v47  ;;  %v1461_v21 = vmul.f32 %v4311_v61, %v1409_v60  ;;  %v4712_v4 = vmin.f32 %v1587_v32, 0.99999 }
 0x21f   : > { %3114 = vrcp.f32 %v1149_v19  ;;  %v3097_v42 = vpop.eup %3096  ;;  %v1860_v34 = vmul.f32 0.6931472, %v3091_v18  ;;  %v1363_v10 = vsub.f32 %v1337_v30, %v4698_v54  ;;  %v1833_v36 = vmul.f32 1.442695, %v1811_v15  ;;  %2573 = vmatprep.mubr.f32.mxu0 %v4708_v28 }
 0x220   : > { %3116 = vlog2.f32 %v1844_v56  ;;  %2574 = vmatmul.mubr.f32.vlgmr.msra.gmra.mrb[24].mxu0 %v4712_v4  ;;  %v4717_v59 = vmin.f32 %v1588_v37, 0.99999  ;;  %v1589_v13 = vmax.f32 %v1569_v9, 1e-05  ;;  %v1571_v19 = vmul.f32 %v4667_v22, %v5179_v0  ;;  %v5224_v0 = vld [vmem:[#allocation55_spill] sm:$0xff] }
 0x221   : > { %v3099_v24 = vpop.eup %3098  ;;  %3118 = vlog2.f32 %v1843_v3  ;;  %v1264_v35 = vmin.f32 %v4687_v55, -1.000005e-05  ;;  %v1408_v56 = vmin.f32 %v4696_v16, -1.000005e-05  ;;  %v1573_v23 = vmul.f32 %v4663_v48, %v5178_v63 }
 0x222   : > { %v3101_v60 = vpop.eup %3100  ;;  %3120 = vpow2.f32 %v1835_v12  ;;  %v1191_v40 = vmul.f32 0.6931472, %v3095_v11  ;;  %2576 = vmatprep.mubr.f32.mxu1 %v4717_v59  ;;  %v4726_v52 = vmin.f32 %v1589_v13, 0.99999  ;;  %v1590_v15 = vmax.f32 %v1571_v19, 1e-05 }
 0x223   : > { %v3103_v45 = vpop.eup %3102  ;;  %v1575_v62 = vmul.f32 %v3089_v29, %v5196_v39  ;;  %v1219_v22 = vsub.f32 %v5224_v0, %v4698_v54  ;;  %v4731_v55 = vmax.f32 %v1363_v10, -11.512925  ;;  %v1335_v16 = vmul.f32 0.6931472, %v3097_v42  ;;  %v5225_v12 = vld [vmem:[#allocation47_spill] sm:$0xff] }
 0x224   : > { %v3105_v32 = vpop.eup %3104  ;;  %3122 = vpow2.f32 %v1833_v36  ;;  %v4733_v3 = vadd.f32 %v1461_v21, %v1433_v26  ;;  %v1846_v63 = vadd.f32 1.0, %v3101_v60  ;;  %2577 = vmatmul.mubr.f32.vlgmr.msra.gmra.mrb[12].mxu1 %v4726_v52  ;;  %v4736_v48 = vmin.f32 %v1590_v15, 0.99999 }
 0x225   : > { %v3107_v18 = vpop.eup %3106  ;;  %v1591_v37 = vmax.f32 %v1573_v23, 1e-05  ;;  %v4739_v39 = vmul.f32 %v4561_v6, %v1860_v34  ;;  %v1845_v29 = vadd.f32 1.0, %v3103_v45  ;;  %v1592_v9 = vmax.f32 %v1575_v62, 1e-05 }
 0x226   : > { %v3109_v20 = vpop.eup %3108  ;;  %v1577_v54 = vmul.f32 %v4674_v41, %v5187_v25  ;;  %v1218_v11 = vsub.f32 %v5225_v12, %v1191_v40  ;;  %v1362_v26 = vsub.f32 %v1335_v16, %v1191_v40  ;;  %2579 = vmatprep.mubr.f32.mxu1 %v4736_v48  ;;  %v1579_v42 = vmul.f32 %v3099_v24, %v5208_v1 }
 0x227   : > { %v3111_v30 = vpop.eup %3110  ;;  %v4745_v21 = vmin.f32 %v1591_v37, 0.99999  ;;  %v1432_v36 = vmul.f32 %v1264_v35, %v4228_v17  ;;  %v4749_v34 = vmax.f32 %v1219_v22, -11.512925  ;;  %v1411_v13 = vmin.f32 %v4731_v55, -1.000005e-05 }
 0x228   : > { %v3113_v10 = vpop.eup %3112  ;;  %v4752_v19 = vmin.f32 %v1592_v9, 0.99999  ;;  %3124 = vlog2.f32 %v1846_v63  ;;  %v1195_v41 = vmul.f32 0.6931472, %v3109_v20  ;;  %v1593_v60 = vmax.f32 %v1577_v54, 1e-05 }
 0x229   : > { %v3115_v25 = vpop.eup %3114  ;;  %2580 = vmatmul.mubr.f32.gmra.mrb[14].mxu1 %v4745_v21  ;;  %v1594_v23 = vmax.f32 %v1579_v42, 1e-05  ;;  %3126 = vlog2.f32 %v1845_v29  ;;  %v1197_v40 = vmul.f32 0.6931472, %v3105_v32  ;;  %v1581_v1 = vmul.f32 %v4706_v46, %v5206_v38  ;;  %v5226_v20 = vld [vmem:[#allocation57_spill] sm:$0xff] }
 0x22a   : > { %v3117_v45 = vpop.eup %3116  ;;  %2582 = vmatprep.mubr.f32.mxu1 %v4752_v19  ;;  %v1583_v24 = vmul.f32 %v3113_v10, %v5216_v51  ;;  %v1460_v15 = vmul.f32 %v4328_v8, %v1408_v56  ;;  %v1242_v62 = vmax.f32 %v1218_v11, -11.512925  ;;  %v1386_v0 = vmax.f32 %v1362_v26, -11.512925  ;;  %v5227_v10 = vld [vmem:[#allocation59_spill] sm:$0xff] }
 0x22b   : > { %v3119_v35 = vpop.eup %3118  ;;  %v1339_v22 = vmul.f32 0.6931472, %v3111_v30  ;;  %v1341_v16 = vmul.f32 0.6931472, %v3107_v18  ;;  %v4760_v63 = vmin.f32 %v1593_v60, 0.99999  ;;  %v1585_v32 = vmul.f32 %v3115_v25, %v5214_v53 }
 0x22c   : > { %v3121_v55 = vpop.eup %3120  ;;  %v4762_v37 = vmin.f32 %v1594_v23, 0.99999  ;;  %v1220_v29 = vsub.f32 %v5226_v20, %v1195_v41  ;;  %v1595_v38 = vmax.f32 %v1581_v1, 1e-05  ;;  %v1596_v46 = vmax.f32 %v1583_v24, 1e-05 }
 0x22d   : > { %v1364_v9 = vsub.f32 %v1339_v22, %v1195_v41  ;;  %v1864_v54 = vmul.f32 0.6931472, %v3117_v45  ;;  %v1862_v12 = vmul.f32 0.6931472, %v3119_v35  ;;  %v1267_v56 = vmin.f32 %v4749_v34, -1.000005e-05  ;;  %2583 = vmatmul.mubr.f32.gmra.mrb[16].mxu1 %v4760_v63 }
 0x22e   : > { %v3123_v51 = vpop.eup %3122  ;;  %v1365_v11 = vsub.f32 %v1341_v16, %v1197_v40  ;;  %v1484_v18 = vadd.f32 %v1460_v15, %v1432_v36  ;;  %v1266_v30 = vmin.f32 %v1242_v62, -1.000005e-05  ;;  %v1848_v26 = vadd.f32 1.0, %v3121_v55  ;;  %2585 = vmatprep.mubr.f32.mxu1 %v4762_v37  ;;  %v5228_v35 = vld [vmem:[#allocation66_spill] sm:$0xff]  ;;  %v5230_v62 = vld [vmem:[#allocation80_spill] sm:$0xff] }
 0x22f   : > { %v4769_v42 = vmin.f32 %v1596_v46, 0.99999  ;;  %v1410_v53 = vmin.f32 %v1386_v0, -1.000005e-05  ;;  %v1221_v25 = vsub.f32 %v5227_v10, %v1197_v40  ;;  %v4772_v41 = vmin.f32 %v1595_v38, 0.99999 }
 0x230   : > { %v1597_v60 = vmax.f32 %v1585_v32, 1e-05  ;;  %v1463_v23 = vmul.f32 %v4303_v44, %v1411_v13  ;;  %v1244_v45 = vmax.f32 %v1220_v29, -11.512925  ;;  %v1388_v34 = vmax.f32 %v1364_v9, -11.512925 }
 0x231   : > { %v1847_v1 = vadd.f32 1.0, %v3123_v51  ;;  %v4776_v24 = vmul.f32 %v4561_v6, %v1864_v54  ;;  %v1389_v36 = vmax.f32 %v1365_v11, -11.512925  ;;  %2586 = vmatmul.mubr.f32.gmra.mrb[18].mxu1 %v4772_v41  ;;  %3128 = vlog2.f32 %v5228_v35  ;;  %v5229_v15 = vld [vmem:[#allocation34_spill] sm:$0xff]  ;;  %v5231_v13 = vld [vmem:[#allocation23_spill] sm:$0xff]  ;;  %v5232_v55 = vld [vmem:[#allocation84_spill] sm:$0xff] }
 0x232   : > { %v751_v0 = vsub.f32 %v5230_v62, %v5229_v15  ;;  %v3125_v40 = vpop.eup %3124  ;;  %v4783_v22 = vmul.f32 %v4561_v6, %v1862_v12  ;;  %v1434_v44 = vmul.f32 %v1266_v30, %v3982_v14  ;;  %3130 = vlog2.f32 %v1848_v26  ;;  %2588 = vmatprep.mubr.f32.mxu1 %v4769_v42  ;;  %v5233_v38 = vld [vmem:[#allocation68_spill] sm:$0xff]  ;;  %v5234_v30 = vld [vmem:[#allocation71_spill] sm:$0xff] }
 0x233   : > { %v1617_v16 = vadd.f32 %v5232_v55, %v5231_v13  ;;  %v3127_v32 = vpop.eup %3126  ;;  %v1462_v20 = vmul.f32 %v4307_v27, %v1410_v53  ;;  %v1245_v29 = vmax.f32 %v1221_v25, -11.512925  ;;  %v4790_v9 = vmin.f32 %v1597_v60, 0.99999  ;;  %v5235_v26 = vld [vmem:[#allocation44_spill] sm:$0xff]  ;;  %v5238_v60 = vld [vmem:[#allocation45_spill] sm:$0xff] }
 0x234   : > { %3132 = vlog2.f32 %v5233_v38  ;;  %v1268_v46 = vmin.f32 %v1244_v45, -1.000005e-05  ;;  %v1412_v51 = vmin.f32 %v1388_v34, -1.000005e-05  ;;  %v4794_v12 = vmul.f32 0.6931472, %v3125_v40 }
 0x235   : > { %3134 = vlog2.f32 %v1847_v1  ;;  %v1618_v54 = vadd.f32 %v1617_v16, %v4534_v5  ;;  %v1413_v11 = vmin.f32 %v1389_v36, -1.000005e-05  ;;  %2589 = vmatmul.mubr.f32.gmra.mrb[20].mxu1 %v4790_v9  ;;  %v5236_v27 = vclamps-f32 %v5235_v26, 11.512916  ;;  %v5237_v25 = vld [vmem:[#allocation72_spill] sm:$0xff]  ;;  %v5240_v1 = vld [vmem:[#allocation50_spill] sm:$0xff] }
 0x236   : > { %3136 = vlog2.f32 %v5234_v30  ;;  %v1866_v10 = vmul.f32 0.6931472, %v3127_v32  ;;  %v5239_v45 = vclamps-f32 %v5238_v60, 11.512916  ;;  %v5241_v36 = vclamps-f32 %v5240_v1, 11.512916 }
 0x237   : > { %v730_v53 = vmul.f32 %v5236_v27, %v4228_v17  ;;  %3138 = vlog2.f32 %v5237_v25  ;;  %v1619_v5 = vadd.f32 %v1618_v54, %v4549_v58  ;;  %v5242_v15 = vld [vmem:[#allocation52_spill] sm:$0xff]  ;;  %v1269_v13 = vmin.f32 %v1245_v29, -1.000005e-05  ;;  %v5250_v25 = vld [vmem:[#allocation79_spill] sm:$0xff] }
 0x238   : > { %v4805_v34 = vmul.f32 %v5239_v45, %v4240_v47  ;;  %v4811_v35 = vmul.f32 %v5241_v36, %v3982_v14  ;;  %v5243_v62 = vclamps-f32 %v5242_v15, 11.512916  ;;  %v1656_v55 = vadd.f32 %v4644_v33, %v4641_v7  ;;  %v5244_v14 = vld [vmem:[#allocation56_spill] sm:$0xff] }
 0x239   : > { %v1620_v16 = vadd.f32 %v1619_v5, %v4575_v2  ;;  %v1435_v32 = vmul.f32 %v1267_v56, %v4000_v50  ;;  %v1436_v58 = vmul.f32 %v1268_v46, %v4228_v17  ;;  %v1464_v38 = vmul.f32 %v4328_v8, %v1412_v51  ;;  %v5246_v7 = vld [vmem:[#allocation60_spill] sm:$0xff]  ;;  %v5249_v56 = vld [vmem:[#allocation30_spill] sm:$0xff]  ;;  %v5251_v8 = vld [vmem:[#allocation83_spill] sm:$0xff] }
 0x23a   : > { %v4816_v40 = vmul.f32 %v5243_v62, %v4000_v50  ;;  %v5245_v54 = vclamps-f32 %v5244_v14, 11.512916  ;;  %v1486_v26 = vadd.f32 %v1462_v20, %v1434_v44  ;;  %v1508_v27 = vmul.f32 %v4637_v57, %v1484_v18  ;;  %v5248_v50 = vld [vmem:[#allocation26_spill] sm:$0xff]  ;;  %v5255_v18 = vld [vmem:[#allocation29_spill] sm:$0xff] }
 0x23b   : > { %v1657_v29 = vadd.f32 %v1656_v55, %v4683_v43  ;;  %v5247_v33 = vclamps-f32 %v5246_v7, 11.512916  ;;  %v752_v46 = vsub.f32 %v5249_v56, %v5248_v50  ;;  %v5252_v51 = vsub.f32 %v5250_v25, %v5251_v8  ;;  %v3129_v44 = vpop.eup %3128  ;;  %v5254_v20 = vld [vmem:[#allocation38_spill] sm:$0xff]  ;;  %v5256_v55 = vld [vmem:[#allocation27_spill] sm:$0xff]  ;;  %v5257_v50 = vld [vmem:[#allocation25_spill] sm:$0xff] }
 0x23c   : > { %v4827_v30 = vmul.f32 %v5245_v54, %v4228_v17  ;;  %v5253_v17 = vld [vmem:[#allocation82_spill] sm:$0xff]  ;;  %v753_v5 = vsub.f32 %v5255_v18, %v5254_v20  ;;  %v1437_v43 = vmul.f32 %v1269_v13, %v4240_v47  ;;  %v1465_v1 = vmul.f32 %v4311_v61, %v1413_v11  ;;  %v3131_v15 = vpop.eup %3130  ;;  %v5258_v11 = vld [vmem:[#allocation28_spill] sm:$0xff] }
 0x23d   : > { %v4834_v2 = vmul.f32 %v5247_v33, %v4240_v47  ;;  %v778_v60 = vmul.f32 %v4637_v57, %v5252_v51  ;;  %v1621_v45 = vadd.f32 %v1620_v16, %v5253_v17  ;;  %v1658_v36 = vadd.f32 %v1657_v29, %v4678_v49 }
 0x23e   : > { %v779_v62 = vmul.f32 %v4637_v57, %v751_v0  ;;  %v1487_v54 = vadd.f32 %v1463_v23, %v1435_v32  ;;  %v1488_v7 = vadd.f32 %v1464_v38, %v1436_v58  ;;  %v3133_v33 = vpop.eup %3132  ;;  %v754_v16 = vsub.f32 %v730_v53, %v5257_v50 }
 0x23f   : > { %v1622_v14 = vadd.f32 %v1621_v45, %v5256_v55  ;;  %v1509_v56 = vmul.f32 %v4637_v57, %v4733_v3  ;;  %v1510_v25 = vmul.f32 %v4637_v57, %v1486_v26  ;;  %v1659_v47 = vadd.f32 %v1658_v36, %v1508_v27  ;;  %v3135_v13 = vpop.eup %3134 }
 0x240   : > { %v705_v61 = vmul.f32 0.6931472, %v3129_v44  ;;  %v755_v49 = vsub.f32 %v4805_v34, %v5258_v11  ;;  %v780_v0 = vmul.f32 %v4637_v57, %v752_v46  ;;  %v3137_v8 = vpop.eup %3136  ;;  %v781_v23 = vmul.f32 %v4637_v57, %v753_v5 }
 0x241   : > { %v1623_v29 = vadd.f32 %v1622_v14, %v778_v60  ;;  %v1489_v32 = vadd.f32 %v1465_v1, %v1437_v43  ;;  %v1660_v58 = vadd.f32 %v1659_v47, %v1509_v56  ;;  %v1893_v53 = vadd.f32 %v4685_v31, %v4739_v39  ;;  %v3139_v3 = vpop.eup %3138 }
 0x242   : > { %v707_v38 = vmul.f32 0.6931472, %v3133_v33  ;;  %v1511_v27 = vmul.f32 %v4637_v57, %v1487_v54  ;;  %v1512_v51 = vmul.f32 %v4637_v57, %v1488_v7  ;;  %v1870_v34 = vmul.f32 0.6931472, %v3135_v13 }
 0x243   : > { %v1624_v26 = vadd.f32 %v1623_v29, %v779_v62  ;;  %v1661_v17 = vadd.f32 %v1660_v58, %v1510_v25  ;;  %v1885_v46 = vmul.f32 %v4561_v6, %v1866_v10  ;;  %v1894_v60 = vadd.f32 %v1893_v53, %v4783_v22 }
 0x244   : > { %v709_v45 = vmul.f32 0.6931472, %v3137_v8  ;;  %v756_v44 = vsub.f32 %v4811_v35, %v705_v61  ;;  %v782_v20 = vmul.f32 %v4637_v57, %v754_v16  ;;  %v1872_v39 = vmul.f32 0.6931472, %v3131_v15 }
 0x245   : > { %v1625_v18 = vadd.f32 %v1624_v26, %v780_v0  ;;  %v1662_v31 = vadd.f32 %v1661_v17, %v1511_v27  ;;  %v1886_v5 = vmul.f32 %v4561_v6, %v4794_v12  ;;  %v1895_v43 = vadd.f32 %v1894_v60, %v4776_v24 }
 0x246   : > { %v711_v1 = vmul.f32 0.6931472, %v3139_v3  ;;  %v757_v36 = vsub.f32 %v4816_v40, %v707_v38  ;;  %v783_v10 = vmul.f32 %v4637_v57, %v755_v49  ;;  %v1513_v22 = vmul.f32 %v4637_v57, %v1489_v32 }
 0x247   : > { %v1626_v62 = vadd.f32 %v1625_v18, %v781_v23  ;;  %v1663_v55 = vadd.f32 %v1662_v31, %v1512_v51  ;;  %v1887_v35 = vmul.f32 %v4561_v6, %v1870_v34  ;;  %v1896_v14 = vadd.f32 %v1895_v43, %v1885_v46 }
 0x248   : > { %v758_v54 = vsub.f32 %v4827_v30, %v709_v45  ;;  %v784_v15 = vmul.f32 %v4637_v57, %v756_v44  ;;  %v1888_v24 = vmul.f32 %v4561_v6, %v1872_v39  ;;  %v759_v40 = vsub.f32 %v4834_v2, %v711_v1 }
 0x249   : > { %v1627_v7 = vadd.f32 %v1626_v62, %v782_v20  ;;  %v1664_v12 = vadd.f32 %v1663_v55, %v1513_v22  ;;  %v1897_v33 = vadd.f32 %v1896_v14, %v1886_v5  ;;  %v785_v50 = vmul.f32 %v4637_v57, %v757_v36 }
 0x24a   : > { %v786_v25 = vmul.f32 %v4637_v57, %v758_v54  ;;  %v787_v61 = vmul.f32 %v4637_v57, %v759_v40 }
 0x24b   : > { %v1628_v16 = vadd.f32 %v1627_v7, %v783_v10  ;;  %v1898_v56 = vadd.f32 %v1897_v33, %v1887_v35 }
 0x24d   : > { %v1629_v47 = vadd.f32 %v1628_v16, %v784_v15  ;;  %v1899_v13 = vadd.f32 %v1898_v56, %v1888_v24 }
 0x24f   : > { %v1630_v30 = vadd.f32 %v1629_v47, %v785_v50  ;;  %1900 = vadd.xlane.f32.xlu1 %v1899_v13 }
 0x251   : > { %v1631_v11 = vadd.f32 %v1630_v30, %v786_v25 }
 0x253   : > { %v1632_v49 = vadd.f32 %v1631_v11, %v787_v61 }
 0x255   : > { %1633 = vadd.xlane.f32.xlu0 %v1632_v49 }
 0x259   : > { %1665 = vadd.xlane.f32.xlu0 %v1664_v12 }
 0x2dc   : > { %v1901_v0 = vpop.xlane.xlu1 %1900 }
 0x2dd   : > { %v1902_v29 = vrot.slane %v1901_v0, 4 }
 0x2df   : > { %v1903_v8 = vadd.f32 %v1902_v29, %v1901_v0 }
 0x2e1   : > { %v1904_v32 = vrot.slane %v1903_v8, 2 }
 0x2e2   : > { %v1634_v2 = vpop.xlane.xlu0 %1633 }
 0x2e3   : > { %v1635_v23 = vrot.slane %v1634_v2, 4  ;;  %v1905_v26 = vadd.f32 %v1904_v32, %v1903_v8 }
 0x2e5   : > { %v1636_v58 = vadd.f32 %v1635_v23, %v1634_v2  ;;  %v1906_v34 = vrot.slane %v1905_v26, 1 }
 0x2e6   : > { %v1666_v53 = vpop.xlane.xlu0 %1665 }
 0x2e7   : > { %v1637_v3 = vrot.slane %v1636_v58, 2  ;;  %v1667_v38 = vrot.slane %v1666_v53, 4  ;;  %v1907_v44 = vadd.f32 %v1906_v34, %v1905_v26 }
 0x2e9   : > { %v1668_v27 = vadd.f32 %v1667_v38, %v1666_v53  ;;  %v1638_v51 = vadd.f32 %v1637_v3, %v1636_v58 }
 0x2eb   : > { %v1669_v57 = vrot.slane %v1668_v27, 2  ;;  %v1639_v17 = vrot.slane %v1638_v51, 1 }
 0x2ed   : > { %v1670_v46 = vadd.f32 %v1669_v57, %v1668_v27  ;;  %v1640_v60 = vadd.f32 %v1639_v17, %v1638_v51 }
 0x2ef   : > { %2705 = vpush %v1640_v60  ;;  %v1671_v45 = vrot.slane %v1670_v46, 1 }
 0x2f1   : > { %v1672_v20 = vadd.f32 %v1671_v45, %v1670_v46 }
 0x2f3   : > { %2707 = vpush %v1672_v20  ;;  %v2575_v18 = vpop.f32.mrb[24].mxu0 }
 0x2f4   : > { %2709 = vpush %v1907_v44  ;;  %v2036_v31 = vsub.f32 %v4712_v4, %v2575_v18  ;;  %v1976_v39 = vpop.f32.mrb[25].mxu0 }
 0x2f5   : > { %v2035_v5 = vsub.f32 %v4708_v28, %v1976_v39 }
 0x2f6   : > { %v2049_v43 = vmul.f32 1.442695, %v2036_v31 }
 0x2f7   : > { %v2047_v1 = vmul.f32 1.442695, %v2035_v5  ;;  %v2578_v36 = vpop.f32.mrb[12].mxu1 }
 0x2f8   : > { %3140 = vpow2.f32 %v2049_v43  ;;  %v2038_v10 = vsub.f32 %v4726_v52, %v2578_v36  ;;  %v1986_v62 = vpop.f32.mrb[13].mxu1  ;;  %v3189_v43 = vld [vmem:[#allocation7 + $0x1] ss:$0 sm:$0xff] }
 0x2f9   : > { %3142 = vpow2.f32 %v2047_v1  ;;  %v2037_v22 = vsub.f32 %v4717_v59, %v1986_v62 }
 0x2fa   : > { %v2053_v55 = vmul.f32 1.442695, %v2038_v10 }
 0x2fb   : > { %v2051_v35 = vmul.f32 1.442695, %v2037_v22 }
 0x2fc   : > { %v2581_v14 = vpop.f32.mrb[14].mxu1  ;;  %3144 = vpow2.f32 %v2053_v55 }
 0x2fd   : > { %v2040_v54 = vsub.f32 %v4745_v21, %v2581_v14  ;;  %v1996_v4 = vpop.f32.mrb[15].mxu1  ;;  %3146 = vpow2.f32 %v2051_v35 }
 0x2fe   : > { %v2039_v28 = vsub.f32 %v4736_v48, %v1996_v4 }
 0x2ff   : > { %v2057_v15 = vmul.f32 1.442695, %v2040_v54 }
 0x300   : > { %v2055_v7 = vmul.f32 1.442695, %v2039_v28  ;;  %v2584_v12 = vpop.f32.mrb[16].mxu1 }
 0x301   : > { %3148 = vpow2.f32 %v2057_v15  ;;  %v2042_v52 = vsub.f32 %v4760_v63, %v2584_v12  ;;  %v2006_v24 = vpop.f32.mrb[17].mxu1 }
 0x302   : > { %3150 = vpow2.f32 %v2055_v7  ;;  %v3141_v33 = vpop.eup %3140  ;;  %v2041_v59 = vsub.f32 %v4752_v19, %v2006_v24 }
 0x303   : > { %v3143_v40 = vpop.eup %3142  ;;  %v2072_v50 = vadd.f32 1.0, %v3141_v33  ;;  %v2061_v16 = vmul.f32 1.442695, %v2042_v52 }
 0x304   : > { %v2071_v56 = vadd.f32 1.0, %v3143_v40  ;;  %v2059_v21 = vmul.f32 1.442695, %v2041_v59  ;;  %v2587_v25 = vpop.f32.mrb[18].mxu1 }
 0x305   : > { %3152 = vlog2.f32 %v2072_v50  ;;  %v2044_v48 = vsub.f32 %v4772_v41, %v2587_v25  ;;  %v2016_v47 = vpop.f32.mrb[19].mxu1 }
 0x306   : > { %v3145_v13 = vpop.eup %3144  ;;  %3154 = vlog2.f32 %v2071_v56  ;;  %v2043_v61 = vsub.f32 %v4762_v37, %v2016_v47 }
 0x307   : > { %v3147_v30 = vpop.eup %3146  ;;  %v2074_v63 = vadd.f32 1.0, %v3145_v13  ;;  %3156 = vpow2.f32 %v2061_v16  ;;  %v2065_v11 = vmul.f32 1.442695, %v2044_v48 }
 0x308   : > { %v2073_v49 = vadd.f32 1.0, %v3147_v30  ;;  %3158 = vpow2.f32 %v2059_v21  ;;  %v2063_v19 = vmul.f32 1.442695, %v2043_v61  ;;  %v2590_v0 = vpop.f32.mrb[20].mxu1 }
 0x309   : > { %3160 = vlog2.f32 %v2074_v63  ;;  %v2046_v29 = vsub.f32 %v4790_v9, %v2590_v0  ;;  %v2026_v8 = vpop.f32.mrb[21].mxu1 }
 0x30a   : > { %3162 = vlog2.f32 %v2073_v49  ;;  %v2045_v41 = vsub.f32 %v4769_v42, %v2026_v8 }
 0x30b   : > { %v3149_v2 = vpop.eup %3148  ;;  %3164 = vpow2.f32 %v2065_v11  ;;  %v2069_v37 = vmul.f32 1.442695, %v2046_v29 }
 0x30c   : > { %v3151_v23 = vpop.eup %3150  ;;  %v2076_v32 = vadd.f32 1.0, %v3149_v2  ;;  %3166 = vpow2.f32 %v2063_v19  ;;  %v2067_v53 = vmul.f32 1.442695, %v2045_v41 }
 0x30d   : > { %v2075_v58 = vadd.f32 1.0, %v3151_v23 }
 0x30e   : > { %3168 = vlog2.f32 %v2076_v32 }
 0x30f   : > { %3170 = vlog2.f32 %v2075_v58  ;;  %v3153_v3 = vpop.eup %3152 }
 0x310   : > { %3172 = vpow2.f32 %v2069_v37  ;;  %v3155_v38 = vpop.eup %3154  ;;  %v2086_v26 = vmul.f32 0.6931472, %v3153_v3 }
 0x311   : > { %3174 = vpow2.f32 %v2067_v53  ;;  %v3157_v9 = vpop.eup %3156  ;;  %v2084_v27 = vmul.f32 0.6931472, %v3155_v38 }
 0x312   : > { %v3159_v51 = vpop.eup %3158  ;;  %v2108_v57 = vmul.f32 %v4561_v6, %v2086_v26  ;;  %v2078_v42 = vadd.f32 1.0, %v3157_v9 }
 0x313   : > { %v3161_v17 = vpop.eup %3160  ;;  %v2107_v34 = vmul.f32 %v4561_v6, %v2084_v27  ;;  %v2077_v46 = vadd.f32 1.0, %v3159_v51 }
 0x314   : > { %v3163_v60 = vpop.eup %3162  ;;  %v2090_v45 = vmul.f32 0.6931472, %v3161_v17  ;;  %3176 = vlog2.f32 %v2078_v42 }
 0x315   : > { %v3165_v44 = vpop.eup %3164  ;;  %v2119_v20 = vadd.f32 %v2108_v57, %v2107_v34  ;;  %v2088_v18 = vmul.f32 0.6931472, %v3163_v60  ;;  %3178 = vlog2.f32 %v2077_v46 }
 0x316   : > { %v3167_v31 = vpop.eup %3166  ;;  %v2080_v39 = vadd.f32 1.0, %v3165_v44  ;;  %v2110_v62 = vmul.f32 %v3189_v43, %v2090_v45 }
 0x317   : > { %v2109_v1 = vmul.f32 %v3189_v43, %v2088_v18  ;;  %v2079_v36 = vadd.f32 1.0, %v3167_v31 }
 0x318   : > { %v3169_v5 = vpop.eup %3168  ;;  %3180 = vlog2.f32 %v2080_v39 }
 0x319   : > { %v3171_v10 = vpop.eup %3170  ;;  %v2120_v55 = vadd.f32 %v2119_v20, %v2109_v1  ;;  %v2094_v6 = vmul.f32 0.6931472, %v3169_v5  ;;  %3182 = vlog2.f32 %v2079_v36 }
 0x31a   : > { %v3173_v22 = vpop.eup %3172  ;;  %v2092_v35 = vmul.f32 0.6931472, %v3171_v10 }
 0x31b   : > { %v3175_v14 = vpop.eup %3174  ;;  %v2082_v54 = vadd.f32 1.0, %v3173_v22  ;;  %v2121_v28 = vadd.f32 %v2120_v55, %v2110_v62  ;;  %v2112_v7 = vmul.f32 %v3189_v43, %v2094_v6 }
 0x31c   : > { %v2111_v4 = vmul.f32 %v3189_v43, %v2092_v35  ;;  %v2081_v15 = vadd.f32 1.0, %v3175_v14 }
 0x31d   : > { %3184 = vlog2.f32 %v2082_v54 }
 0x31e   : > { %v2122_v12 = vadd.f32 %v2121_v28, %v2111_v4  ;;  %3186 = vlog2.f32 %v2081_v15  ;;  %v3177_v52 = vpop.eup %3176 }
 0x31f   : > { %v3179_v24 = vpop.eup %3178  ;;  %v2098_v59 = vmul.f32 0.6931472, %v3177_v52 }
 0x320   : > { %v2123_v33 = vadd.f32 %v2122_v12, %v2112_v7  ;;  %v2096_v40 = vmul.f32 0.6931472, %v3179_v24  ;;  %s2706_s29 = spop %2705 }
 0x321   : > { %v2114_v21 = vmul.f32 %v3189_v43, %v2098_v59 }
 0x322   : > { %v3181_v50 = vpop.eup %3180  ;;  %v2113_v16 = vmul.f32 %v3189_v43, %v2096_v40 }
 0x323   : > { %v3183_v56 = vpop.eup %3182  ;;  %v2102_v25 = vmul.f32 0.6931472, %v3181_v50 }
 0x324   : > { %v2100_v48 = vmul.f32 0.6931472, %v3183_v56  ;;  %v2124_v47 = vadd.f32 %v2123_v33, %v2113_v16  ;;  %s2708_s17 = spop %2707 }
 0x325   : > { %v2116_v19 = vmul.f32 %v3189_v43, %v2102_v25  ;;  %s1674_s16 = sadd.f32 %s2708_s17, %s2706_s29  ;;  %s2710_s26 = spop %2709 }
 0x326   : > { %v2115_v61 = vmul.f32 %v3189_v43, %v2100_v48  ;;  %v2125_v30 = vadd.f32 %v2124_v47, %v2114_v21 }
 0x327   : > { %v3185_v13 = vpop.eup %3184  ;;  %s1675_s10 = ssub.f32 0.0, %s1674_s16 }
 0x328   : > { %v3187_v63 = vpop.eup %3186  ;;  %v2106_v49 = vmul.f32 0.6931472, %v3185_v13  ;;  %v2126_v0 = vadd.f32 %v2125_v30, %v2115_v61 }
 0x329   : > { %v2104_v11 = vmul.f32 0.6931472, %v3187_v63  ;;  %s1909_s3 = sadd.f32 %s2710_s26, %s1675_s10 }
 0x32a   : > { %v2127_v8 = vadd.f32 %v2126_v0, %v2116_v19  ;;  %v2118_v2 = vmul.f32 %v3189_v43, %v2106_v49 }
 0x32b   : > { %v2117_v29 = vmul.f32 %v3189_v43, %v2104_v11 }
 0x32d   : > { %v2128_v41 = vadd.f32 %v2127_v8, %v2117_v29 }
 0x32f   : > { %v2129_v23 = vadd.f32 %v2128_v41, %v2118_v2 }
 0x331   : > { %2130 = vadd.xlane.f32.xlu1 %v2129_v23 }
 0x3be   : > { %v2131_v32 = vpop.xlane.xlu1 %2130 }
 0x3bf   : > { %v2132_v37 = vrot.slane %v2131_v32, 4 }
 0x3c1   : > { %v2133_v58 = vadd.f32 %v2132_v37, %v2131_v32 }
 0x3c3   : > { %v2134_v53 = vrot.slane %v2133_v58, 2 }
 0x3c5   : > { %v2135_v3 = vadd.f32 %v2134_v53, %v2133_v58 }
 0x3c7   : > { %v2136_v38 = vrot.slane %v2135_v3, 1 }
 0x3c9   : > { %v2137_v26 = vadd.f32 %v2136_v38, %v2135_v3 }
 0x3cb   : > { %2711 = vpush %v2137_v26 }
 0x3fc   : > { %s2712_s23 = spop %2711 }
 0x3fd   : > { %s2139_s14 = sadd.f32 %s2712_s23, %s1909_s3 }
 0x3ff   : > { %v2140_v9 = vstv %s2139_s14 }
 0x400   : > { %2141 = vst [vmem:[%s347_s27] sm:$0xff] %v2140_v9 }
 0x401   : > { %3315 = shalt.err (!%p3312_p11)
}
 0x402   : > { %s3316_s13 = scalar_lea.hbm %s4900_s25, 128  ;;  %s3320_s17 = scalar_lea.hbm %s4949_s5, 256 }
 0x403   : > { %p3317_p6 = scmp.ne.s32.totalorder %s4900_s25, %s3316_s13  ;;  %p3321_p12 = scmp.lt.u32.totalorder %s4900_s25, %s4949_s5 }
 0x404   : > { %p3322_p13 = scmp.lt.u32.totalorder %s3320_s17, %s3316_s13  ;;  %p3324_p7 = scmp.lt.u32.totalorder %s3316_s13, %s4900_s25 }
 0x405   : > { %p3318_p4 = pnand %p3317_p6, %p5259_p8 }
 0x406   : > { %p3323_p0 = por %p3322_p13, %p3321_p12 }
 0x407   : > { %p3319_p3 = pneg %p3318_p4 }
 0x408   : > { %p3325_p9 = por %p3324_p7, %p3323_p0 }
 0x40a   : > { %p3326_p10 = pnand %p3325_p9, %p3319_p3 }
 0x40c   : > { %3329 = shalt.err (!%p3326_p10)
}
 0x40d   : > { %2736 = dma.vmem_to_hbm [thread:$0]  (%p5259_p8), %s4902_s0, 128, %s4900_s25, %s2143_s9  }
 0x40e PF: > { %s2168_s26 = sand.u32 1, %s3368_s18   ;;  %p5260_p1 = scmp.ne.s32.totalorder %s5055_s6, 0 }
 0x40f   : > { %p5261_p2 = scmp.ge.s32.totalorder %s3380_s21, 2  ;;  %s2169_s3 = scalar_lea.sflag [#allocation4], %s2168_s26 }
 0x411   : > { %p2749_p5 = pnand %p5261_p2, %p5260_p1 }
 0x413   : > { %3363 = dma.done.wait (!%p2749_p5), %s2169_s3, 128  }
 0x414   : > { %3365 = vsyncadd (!%p2749_p5), %s2169_s3, 4294967168  ;;  %s5262_s21 = sld [smem:[#allocation20_spill]]  ;;  %s5263_s24 = sld [smem:[#allocation21_spill]] }
 0x415   : > { %s5264_s18 = smov %s3372_s19  ;;  %s5265_s19 = smov %s3376_s20 }
 0x41a   : > { %p22_p11 = scmp.ge.s32.totalorder %s5262_s21, 4   ;;  %s5266_s20 = smov %s5263_s24 }
 0x41c   :  { %24 = sbr.rel (!%p22_p11) target bundleno = 11 (0xb), region = 115 }
 0x423   :  { %2174 = vsyncpa [#allocation3], 1 }
 0x424   :  { %2176 = vsyncpa [#allocation3 + $0x1], 1 }
 0x425   :  { %2177 = vsyncpa [#allocation6], 1 }
 0x426   :  { %2179 = vsyncpa [#allocation6 + $0x1], 1 }
 0x427   :  { %2180 = vsyncpa [#allocation9], 1 }
 0x428   :  { %2181 = vsyncpa [#allocation4], 1 }
 0x429   :  { %2183 = vsyncpa [#allocation4 + $0x1], 1 }

</bundles_post_ra>
